<compile_context>
chip_gen: v6e
topology: v6e:2x2x1
jax: 0.10.0
libtpu: 0.0.40
codegen_flags: <defaults>
</compile_context>

<pallas_src>
import functools

import jax
import jax.numpy as jnp
from jax import lax
from jax.experimental import pallas as pl
from jax.experimental.pallas import tpu as pltpu

# ---------------- scaled-down, module-consistent shapes ----------------
B, H, W = 2, 16, 16          # input [B, 1, H, W]  (NCHW like PyTorch)
HW = H * W                   # 256 spatial positions
C1 = 8                       # conv out channels        (128 in the original)
K = 7                        # 7x7 conv, padding='same'
KK = K * K                   # 49
KK_PAD = 56                  # sublane-aligned reduction; row 49 carries the conv bias
FLAT = C1 * HW               # 2048                     (413696 in the original)
E1, E2 = 512, 256            # encoder linear dims      (2048, 1024 originally)
P1, P2 = 128, 128            # projection dims          (512, 128 originally)
NCLS = 6
CLS_PAD = 128                # classifier logits padded lane-dense; sliced to 6 outside


# ---------------- fused Pallas kernel ----------------
def _fused_kernel(patches_ref, wconv_ref, w1_ref, b1_ref, w2_ref, b2_ref,
                  w3_ref, b3_ref, w4_ref, b4_ref, wc_ref, bc_ref,
                  proj_ref, cls_ref):
    """Encoder (conv->ReLU->Flatten->FC1->ReLU->FC2) + both heads, all in VMEM.

    patches_ref : [B, KK_PAD, HW] bf16 im2col (transposed); row 49 is all-ones.
    wconv_ref   : [C1, KK_PAD]    bf16 conv weight, bias folded into column 49.
    w1_ref      : [C1, HW, E1]    bf16; CHW row order of PyTorch's Flatten kept,
                                  indexed per conv channel (no activation relayout).
    proj_ref    : [B, P2]  f32 contrastive-projection output.
    cls_ref     : [B, CLS_PAD] f32 classifier logits (real logits in cols [:NCLS]).
    """
    # Conv per batch as one matmul: [C1, KK_PAD] @ [KK_PAD, HW] -> [C1, HW], ReLU.
    conv = [jnp.maximum(
                jnp.dot(wconv_ref[...], patches_ref[b],
                        preferred_element_type=jnp.float32), 0.0)
            for b in range(B)]                                   # list of [C1, HW] f32

    # Linear(FLAT, E1) channel-outer: one [B, HW] @ [HW, E1] dot per channel so
    # each w1[c] RHS is pushed to the MXU once and reused for both batch rows.
    acc = jnp.zeros((B, E1), jnp.float32)
    for c in range(C1):                                          # static unroll, C1 = 8
        lhs_c = jnp.concatenate([conv[b][c:c + 1, :] for b in range(B)],
                                axis=0).astype(jnp.bfloat16)     # [B, HW] bf16
        acc = acc + jnp.dot(lhs_c, w1_ref[c],
                            preferred_element_type=jnp.float32)
    h1 = jnp.maximum(acc + b1_ref[...], 0.0)                     # [B, E1] f32 (in vregs)

    # Linear(E1, E2) on both batch rows at once.
    feat = jnp.dot(h1.astype(jnp.bfloat16), w2_ref[...],
                   preferred_element_type=jnp.float32) + b2_ref[...]   # [B, E2] f32

    # ---- contrastive head: F.normalize(dim=1) then projection MLP ----
    # x / max(||x||, 1e-12) == x * rsqrt(max(||x||^2, 1e-24))   (EUP slot)
    ssq = jnp.sum(feat * feat, axis=1, keepdims=True)
    fn = (feat * lax.rsqrt(jnp.maximum(ssq, 1e-24))).astype(jnp.bfloat16)
    p1 = jnp.maximum(
        jnp.dot(fn, w3_ref[...], preferred_element_type=jnp.float32) + b3_ref[...],
        0.0)
    proj_ref[...] = jnp.maximum(
        jnp.dot(p1.astype(jnp.bfloat16), w4_ref[...],
                preferred_element_type=jnp.float32) + b4_ref[...],
        0.0)

    # ---- classifier head (.detach() is a no-op for forward values) ----
    cls_ref[...] = (jnp.dot(feat.astype(jnp.bfloat16), wc_ref[...],
                            preferred_element_type=jnp.float32) + bc_ref[...])


# ---------------- wrapper ----------------
_VMEM = pl.BlockSpec(memory_space=pltpu.MemorySpace.VMEM)

_FLOPS = 2 * B * (C1 * KK_PAD * HW + FLAT * E1 + E1 * E2
                  + E2 * P1 + P1 * P2 + E2 * CLS_PAD)
_BYTES = (B * KK_PAD * HW * 2          # patches (bf16)
          + C1 * KK_PAD * 2            # wconv
          + FLAT * E1 * 2 + E1 * 4     # w1, b1
          + E1 * E2 * 2 + E2 * 4       # w2, b2
          + E2 * P1 * 2 + P1 * 4       # w3, b3
          + P1 * P2 * 2 + P2 * 4       # w4, b4
          + E2 * CLS_PAD * 2 + CLS_PAD * 4   # wc, bc
          + B * P2 * 4 + B * CLS_PAD * 4)    # outputs
_COST = pl.CostEstimate(flops=_FLOPS, transcendentals=B, bytes_accessed=_BYTES)


def fused_forward_call(patches, p):
    """One launch, both heads: returns (projection [B,P2], logits [B,CLS_PAD])."""
    return pl.pallas_call(
        _fused_kernel,
        out_shape=(jax.ShapeDtypeStruct((B, P2), jnp.float32),
                   jax.ShapeDtypeStruct((B, CLS_PAD), jnp.float32)),
        in_specs=[_VMEM] * 12,
        out_specs=(_VMEM, _VMEM),
        compiler_params=pltpu.CompilerParams(vmem_limit_bytes=32 << 20),
        cost_estimate=_COST,
    )(patches, p["wconv"], p["w1"], p["b1"], p["w2"], p["b2"],
      p["w3"], p["b3"], p["w4"], p["b4"], p["wc"], p["bc"])


# ---------------- glue (im2col + param setup) ----------------
def _im2col_transposed(x_nchw):
    """x [B,1,H,W] -> [B, KK_PAD, H*W] bf16; window flattened (dy, dx); row 49 = ones."""
    pad = K // 2
    xp = jnp.pad(x_nchw[:, 0], ((0, 0), (pad, pad), (pad, pad)))
    rows = [xp[:, dy:dy + H, dx:dx + W].reshape(B, HW)
            for dy in range(K) for dx in range(K)]
    rows.append(jnp.ones((B, HW), xp.dtype))                    # bias row
    rows.extend([jnp.zeros((B, HW), xp.dtype)] * (KK_PAD - KK - 1))
    return jnp.stack(rows, axis=1).astype(jnp.bfloat16)         # [B, 56, 256] bf16


def init_params(key):
    def linear(k, fan_in, fan_out):
        kw, kb = jax.random.split(k)
        bound = 1.0 / jnp.sqrt(fan_in)
        # stored as [in, out] (PyTorch stores [out, in]; y = x @ W.T + b)
        w = jax.random.uniform(kw, (fan_in, fan_out), jnp.float32, -bound, bound)
        b = jax.random.uniform(kb, (1, fan_out), jnp.float32, -bound, bound)
        return w, b

    keys = jax.random.split(key, 7)
    bound = 1.0 / jnp.sqrt(KK)
    # conv weight PyTorch [C1, 1, 7, 7] -> [C1, 49]; bias folded into column 49.
    w_conv = jax.random.uniform(keys[0], (C1, KK), jnp.float32, -bound, bound)
    b_conv = jax.random.uniform(keys[1], (C1, 1), jnp.float32, -bound, bound)
    wconv = jnp.concatenate(
        [w_conv, b_conv, jnp.zeros((C1, KK_PAD - KK - 1), jnp.float32)],
        axis=1).astype(jnp.bfloat16)

    w1, b1 = linear(keys[2], FLAT, E1)   # rows are CHW-major (PyTorch Flatten order)
    w2, b2 = linear(keys[3], E1, E2)
    w3, b3 = linear(keys[4], E2, P1)
    w4, b4 = linear(keys[5], P1, P2)
    wc, bc = linear(keys[6], E2, NCLS)

    return {
        "wconv": wconv,
        # [FLAT, E1] -> [C1, HW, E1] so the kernel indexes one conv channel at a time.
        # All matmul weights bf16 (weight-streaming bound at B=2); accumulation is f32.
        "w1": w1.reshape(C1, HW, E1).astype(jnp.bfloat16), "b1": b1,
        "w2": w2.astype(jnp.bfloat16), "b2": b2,
        "w3": w3.astype(jnp.bfloat16), "b3": b3,
        "w4": w4.astype(jnp.bfloat16), "b4": b4,
        # classifier padded lane-dense; real logits are columns [:NCLS]
        "wc": jnp.pad(wc, ((0, 0), (0, CLS_PAD - NCLS))).astype(jnp.bfloat16),
        "bc": jnp.pad(bc, ((0, 0), (0, CLS_PAD - NCLS))),
    }


@jax.jit
def forward_both(params, x):
    """Single fused launch producing both heads (what a training harness wants)."""
    patches = _im2col_transposed(x)                              # [B, 56, 256] bf16
    proj, logits = fused_forward_call(patches, params)
    return proj, logits[:, :NCLS]


@functools.partial(jax.jit, static_argnames=("contrastive",))
def forward(params, x, contrastive=True):
    """Matches the PyTorch forward(inputs, contrastive) signature."""
    patches = _im2col_transposed(x)
    proj, logits = fused_forward_call(patches, params)
    if contrastive:
        return proj                                              # [B, 128]
    # TODO(synk): the PyTorch module misspells `self.classifer`, so this branch raises
    # AttributeError upstream; we implement the intended classifier path.
    return logits[:, :NCLS]                                      # [B, 6]


if __name__ == "__main__":
    key = jax.random.PRNGKey(0)
    k_param, k_in = jax.random.split(key)
    params = init_params(k_param)
    x = jax.random.normal(k_in, (B, 1, H, W), jnp.float32)

    # fused path: one kernel launch, both heads
    out_contrastive, out_classifier = forward_both(params, x)
    jax.block_until_ready((out_contrastive, out_classifier))
    assert out_contrastive.shape == (B, P2)
    assert out_classifier.shape == (B, NCLS)

    # per-flag entry point (PyTorch-style signature), reuses the same fused kernel
    oc = forward(params, x, contrastive=True)      # [B, 128]
    ok = forward(params, x, contrastive=False)     # [B, 6]
    jax.block_until_ready((oc, ok))
    assert oc.shape == (B, P2) and ok.shape == (B, NCLS)

    print("KERNEL_OK")
</pallas_src>

<mosaic_0001>
module attributes {stable_mosaic.version = 11 : i64} {
  func.func @_fused_kernel(%arg0: memref<2x56x256xbf16, #tpu.memory_space<vmem>>, %arg1: memref<8x56xbf16, #tpu.memory_space<vmem>>, %arg2: memref<8x256x512xbf16, #tpu.memory_space<vmem>>, %arg3: memref<1x512xf32, #tpu.memory_space<vmem>>, %arg4: memref<512x256xbf16, #tpu.memory_space<vmem>>, %arg5: memref<1x256xf32, #tpu.memory_space<vmem>>, %arg6: memref<256x128xbf16, #tpu.memory_space<vmem>>, %arg7: memref<1x128xf32, #tpu.memory_space<vmem>>, %arg8: memref<128x128xbf16, #tpu.memory_space<vmem>>, %arg9: memref<1x128xf32, #tpu.memory_space<vmem>>, %arg10: memref<256x128xbf16, #tpu.memory_space<vmem>>, %arg11: memref<1x128xf32, #tpu.memory_space<vmem>>, %arg12: memref<2x128xf32, #tpu.memory_space<vmem>>, %arg13: memref<2x128xf32, #tpu.memory_space<vmem>>) attributes {dimension_semantics = [], scalar_prefetch = 0 : i64, scratch_operands = 0 : i64, tpu.core_type = #tpu.core_type<tc>} {
    %c0 = arith.constant 0 : index
    %c0_0 = arith.constant 0 : index
    %0 = vector.load %arg1[%c0, %c0_0] : memref<8x56xbf16, #tpu.memory_space<vmem>>, vector<8x56xbf16>
    %c0_1 = arith.constant 0 : index
    %c0_2 = arith.constant 0 : index
    %c0_3 = arith.constant 0 : index
    %1 = vector.load %arg0[%c0_1, %c0_2, %c0_3] : memref<2x56x256xbf16, #tpu.memory_space<vmem>>, vector<1x56x256xbf16>
    %2 = vector.shape_cast %1 : vector<1x56x256xbf16> to vector<56x256xbf16>
    %cst = arith.constant dense<0.000000e+00> : vector<8x256xf32>
    %3 = tpu.matmul %0, %2, %cst {dimension_numbers = #tpu.dot_dimension_numbers<[1], [0], [0], [1], [0, 0, 1, 1], [], []>} : vector<8x56xbf16>, vector<56x256xbf16>, vector<8x256xf32> -> vector<8x256xf32>
    %cst_4 = arith.constant 0.000000e+00 : f32
    %4 = vector.broadcast %cst_4 : f32 to vector<8x256xf32>
    %5 = arith.maximumf %3, %4 : vector<8x256xf32>
    %c0_5 = arith.constant 0 : index
    %c0_6 = arith.constant 0 : index
    %6 = vector.load %arg1[%c0_5, %c0_6] : memref<8x56xbf16, #tpu.memory_space<vmem>>, vector<8x56xbf16>
    %c1 = arith.constant 1 : index
    %c0_7 = arith.constant 0 : index
    %c0_8 = arith.constant 0 : index
    %7 = vector.load %arg0[%c1, %c0_7, %c0_8] : memref<2x56x256xbf16, #tpu.memory_space<vmem>>, vector<1x56x256xbf16>
    %8 = vector.shape_cast %7 : vector<1x56x256xbf16> to vector<56x256xbf16>
    %cst_9 = arith.constant dense<0.000000e+00> : vector<8x256xf32>
    %9 = tpu.matmul %6, %8, %cst_9 {dimension_numbers = #tpu.dot_dimension_numbers<[1], [0], [0], [1], [0, 0, 1, 1], [], []>} : vector<8x56xbf16>, vector<56x256xbf16>, vector<8x256xf32> -> vector<8x256xf32>
    %cst_10 = arith.constant 0.000000e+00 : f32
    %10 = vector.broadcast %cst_10 : f32 to vector<8x256xf32>
    %11 = arith.maximumf %9, %10 : vector<8x256xf32>
    %cst_11 = arith.constant 0.000000e+00 : f32
    %12 = vector.broadcast %cst_11 : f32 to vector<2x512xf32>
    %13 = vector.extract_strided_slice %5 {offsets = [0, 0], sizes = [1, 256], strides = [1, 1]} : vector<8x256xf32> to vector<1x256xf32>
    %14 = vector.extract_strided_slice %11 {offsets = [0, 0], sizes = [1, 256], strides = [1, 1]} : vector<8x256xf32> to vector<1x256xf32>
    %15 = tpu.concatenate %13, %14 in 0 : vector<1x256xf32>, vector<1x256xf32> -> vector<2x256xf32>
    %16 = arith.truncf %15 : vector<2x256xf32> to vector<2x256xbf16>
    %c0_12 = arith.constant 0 : index
    %c0_13 = arith.constant 0 : index
    %c0_14 = arith.constant 0 : index
    %17 = vector.load %arg2[%c0_12, %c0_13, %c0_14] : memref<8x256x512xbf16, #tpu.memory_space<vmem>>, vector<1x256x512xbf16>
    %18 = vector.shape_cast %17 : vector<1x256x512xbf16> to vector<256x512xbf16>
    %cst_15 = arith.constant dense<0.000000e+00> : vector<2x512xf32>
    %19 = tpu.matmul %16, %18, %cst_15 {dimension_numbers = #tpu.dot_dimension_numbers<[1], [0], [0], [1], [0, 0, 1, 1], [], []>} : vector<2x256xbf16>, vector<256x512xbf16>, vector<2x512xf32> -> vector<2x512xf32>
    %20 = arith.addf %12, %19 : vector<2x512xf32>
    %21 = vector.extract_strided_slice %5 {offsets = [1, 0], sizes = [1, 256], strides = [1, 1]} : vector<8x256xf32> to vector<1x256xf32>
    %22 = vector.extract_strided_slice %11 {offsets = [1, 0], sizes = [1, 256], strides = [1, 1]} : vector<8x256xf32> to vector<1x256xf32>
    %23 = tpu.concatenate %21, %22 in 0 : vector<1x256xf32>, vector<1x256xf32> -> vector<2x256xf32>
    %24 = arith.truncf %23 : vector<2x256xf32> to vector<2x256xbf16>
    %c1_16 = arith.constant 1 : index
    %c0_17 = arith.constant 0 : index
    %c0_18 = arith.constant 0 : index
    %25 = vector.load %arg2[%c1_16, %c0_17, %c0_18] : memref<8x256x512xbf16, #tpu.memory_space<vmem>>, vector<1x256x512xbf16>
    %26 = vector.shape_cast %25 : vector<1x256x512xbf16> to vector<256x512xbf16>
    %cst_19 = arith.constant dense<0.000000e+00> : vector<2x512xf32>
    %27 = tpu.matmul %24, %26, %cst_19 {dimension_numbers = #tpu.dot_dimension_numbers<[1], [0], [0], [1], [0, 0, 1, 1], [], []>} : vector<2x256xbf16>, vector<256x512xbf16>, vector<2x512xf32> -> vector<2x512xf32>
    %28 = arith.addf %20, %27 : vector<2x512xf32>
    %29 = vector.extract_strided_slice %5 {offsets = [2, 0], sizes = [1, 256], strides = [1, 1]} : vector<8x256xf32> to vector<1x256xf32>
    %30 = vector.extract_strided_slice %11 {offsets = [2, 0], sizes = [1, 256], strides = [1, 1]} : vector<8x256xf32> to vector<1x256xf32>
    %31 = tpu.concatenate %29, %30 in 0 : vector<1x256xf32>, vector<1x256xf32> -> vector<2x256xf32>
    %32 = arith.truncf %31 : vector<2x256xf32> to vector<2x256xbf16>
    %c2 = arith.constant 2 : index
    %c0_20 = arith.constant 0 : index
    %c0_21 = arith.constant 0 : index
    %33 = vector.load %arg2[%c2, %c0_20, %c0_21] : memref<8x256x512xbf16, #tpu.memory_space<vmem>>, vector<1x256x512xbf16>
    %34 = vector.shape_cast %33 : vector<1x256x512xbf16> to vector<256x512xbf16>
    %cst_22 = arith.constant dense<0.000000e+00> : vector<2x512xf32>
    %35 = tpu.matmul %32, %34, %cst_22 {dimension_numbers = #tpu.dot_dimension_numbers<[1], [0], [0], [1], [0, 0, 1, 1], [], []>} : vector<2x256xbf16>, vector<256x512xbf16>, vector<2x512xf32> -> vector<2x512xf32>
    %36 = arith.addf %28, %35 : vector<2x512xf32>
    %37 = vector.extract_strided_slice %5 {offsets = [3, 0], sizes = [1, 256], strides = [1, 1]} : vector<8x256xf32> to vector<1x256xf32>
    %38 = vector.extract_strided_slice %11 {offsets = [3, 0], sizes = [1, 256], strides = [1, 1]} : vector<8x256xf32> to vector<1x256xf32>
    %39 = tpu.concatenate %37, %38 in 0 : vector<1x256xf32>, vector<1x256xf32> -> vector<2x256xf32>
    %40 = arith.truncf %39 : vector<2x256xf32> to vector<2x256xbf16>
    %c3 = arith.constant 3 : index
    %c0_23 = arith.constant 0 : index
    %c0_24 = arith.constant 0 : index
    %41 = vector.load %arg2[%c3, %c0_23, %c0_24] : memref<8x256x512xbf16, #tpu.memory_space<vmem>>, vector<1x256x512xbf16>
    %42 = vector.shape_cast %41 : vector<1x256x512xbf16> to vector<256x512xbf16>
    %cst_25 = arith.constant dense<0.000000e+00> : vector<2x512xf32>
    %43 = tpu.matmul %40, %42, %cst_25 {dimension_numbers = #tpu.dot_dimension_numbers<[1], [0], [0], [1], [0, 0, 1, 1], [], []>} : vector<2x256xbf16>, vector<256x512xbf16>, vector<2x512xf32> -> vector<2x512xf32>
    %44 = arith.addf %36, %43 : vector<2x512xf32>
    %45 = vector.extract_strided_slice %5 {offsets = [4, 0], sizes = [1, 256], strides = [1, 1]} : vector<8x256xf32> to vector<1x256xf32>
    %46 = vector.extract_strided_slice %11 {offsets = [4, 0], sizes = [1, 256], strides = [1, 1]} : vector<8x256xf32> to vector<1x256xf32>
    %47 = tpu.concatenate %45, %46 in 0 : vector<1x256xf32>, vector<1x256xf32> -> vector<2x256xf32>
    %48 = arith.truncf %47 : vector<2x256xf32> to vector<2x256xbf16>
    %c4 = arith.constant 4 : index
    %c0_26 = arith.constant 0 : index
    %c0_27 = arith.constant 0 : index
    %49 = vector.load %arg2[%c4, %c0_26, %c0_27] : memref<8x256x512xbf16, #tpu.memory_space<vmem>>, vector<1x256x512xbf16>
    %50 = vector.shape_cast %49 : vector<1x256x512xbf16> to vector<256x512xbf16>
    %cst_28 = arith.constant dense<0.000000e+00> : vector<2x512xf32>
    %51 = tpu.matmul %48, %50, %cst_28 {dimension_numbers = #tpu.dot_dimension_numbers<[1], [0], [0], [1], [0, 0, 1, 1], [], []>} : vector<2x256xbf16>, vector<256x512xbf16>, vector<2x512xf32> -> vector<2x512xf32>
    %52 = arith.addf %44, %51 : vector<2x512xf32>
    %53 = vector.extract_strided_slice %5 {offsets = [5, 0], sizes = [1, 256], strides = [1, 1]} : vector<8x256xf32> to vector<1x256xf32>
    %54 = vector.extract_strided_slice %11 {offsets = [5, 0], sizes = [1, 256], strides = [1, 1]} : vector<8x256xf32> to vector<1x256xf32>
    %55 = tpu.concatenate %53, %54 in 0 : vector<1x256xf32>, vector<1x256xf32> -> vector<2x256xf32>
    %56 = arith.truncf %55 : vector<2x256xf32> to vector<2x256xbf16>
    %c5 = arith.constant 5 : index
    %c0_29 = arith.constant 0 : index
    %c0_30 = arith.constant 0 : index
    %57 = vector.load %arg2[%c5, %c0_29, %c0_30] : memref<8x256x512xbf16, #tpu.memory_space<vmem>>, vector<1x256x512xbf16>
    %58 = vector.shape_cast %57 : vector<1x256x512xbf16> to vector<256x512xbf16>
    %cst_31 = arith.constant dense<0.000000e+00> : vector<2x512xf32>
    %59 = tpu.matmul %56, %58, %cst_31 {dimension_numbers = #tpu.dot_dimension_numbers<[1], [0], [0], [1], [0, 0, 1, 1], [], []>} : vector<2x256xbf16>, vector<256x512xbf16>, vector<2x512xf32> -> vector<2x512xf32>
    %60 = arith.addf %52, %59 : vector<2x512xf32>
    %61 = vector.extract_strided_slice %5 {offsets = [6, 0], sizes = [1, 256], strides = [1, 1]} : vector<8x256xf32> to vector<1x256xf32>
    %62 = vector.extract_strided_slice %11 {offsets = [6, 0], sizes = [1, 256], strides = [1, 1]} : vector<8x256xf32> to vector<1x256xf32>
    %63 = tpu.concatenate %61, %62 in 0 : vector<1x256xf32>, vector<1x256xf32> -> vector<2x256xf32>
    %64 = arith.truncf %63 : vector<2x256xf32> to vector<2x256xbf16>
    %c6 = arith.constant 6 : index
    %c0_32 = arith.constant 0 : index
    %c0_33 = arith.constant 0 : index
    %65 = vector.load %arg2[%c6, %c0_32, %c0_33] : memref<8x256x512xbf16, #tpu.memory_space<vmem>>, vector<1x256x512xbf16>
    %66 = vector.shape_cast %65 : vector<1x256x512xbf16> to vector<256x512xbf16>
    %cst_34 = arith.constant dense<0.000000e+00> : vector<2x512xf32>
    %67 = tpu.matmul %64, %66, %cst_34 {dimension_numbers = #tpu.dot_dimension_numbers<[1], [0], [0], [1], [0, 0, 1, 1], [], []>} : vector<2x256xbf16>, vector<256x512xbf16>, vector<2x512xf32> -> vector<2x512xf32>
    %68 = arith.addf %60, %67 : vector<2x512xf32>
    %69 = vector.extract_strided_slice %5 {offsets = [7, 0], sizes = [1, 256], strides = [1, 1]} : vector<8x256xf32> to vector<1x256xf32>
    %70 = vector.extract_strided_slice %11 {offsets = [7, 0], sizes = [1, 256], strides = [1, 1]} : vector<8x256xf32> to vector<1x256xf32>
    %71 = tpu.concatenate %69, %70 in 0 : vector<1x256xf32>, vector<1x256xf32> -> vector<2x256xf32>
    %72 = arith.truncf %71 : vector<2x256xf32> to vector<2x256xbf16>
    %c7 = arith.constant 7 : index
    %c0_35 = arith.constant 0 : index
    %c0_36 = arith.constant 0 : index
    %73 = vector.load %arg2[%c7, %c0_35, %c0_36] : memref<8x256x512xbf16, #tpu.memory_space<vmem>>, vector<1x256x512xbf16>
    %74 = vector.shape_cast %73 : vector<1x256x512xbf16> to vector<256x512xbf16>
    %cst_37 = arith.constant dense<0.000000e+00> : vector<2x512xf32>
    %75 = tpu.matmul %72, %74, %cst_37 {dimension_numbers = #tpu.dot_dimension_numbers<[1], [0], [0], [1], [0, 0, 1, 1], [], []>} : vector<2x256xbf16>, vector<256x512xbf16>, vector<2x512xf32> -> vector<2x512xf32>
    %76 = arith.addf %68, %75 : vector<2x512xf32>
    %c0_38 = arith.constant 0 : index
    %c0_39 = arith.constant 0 : index
    %77 = vector.load %arg3[%c0_38, %c0_39] : memref<1x512xf32, #tpu.memory_space<vmem>>, vector<1x512xf32>
    %78 = vector.broadcast %77 : vector<1x512xf32> to vector<2x512xf32>
    %79 = arith.addf %76, %78 : vector<2x512xf32>
    %cst_40 = arith.constant 0.000000e+00 : f32
    %80 = vector.broadcast %cst_40 : f32 to vector<2x512xf32>
    %81 = arith.maximumf %79, %80 : vector<2x512xf32>
    %82 = arith.truncf %81 : vector<2x512xf32> to vector<2x512xbf16>
    %c0_41 = arith.constant 0 : index
    %c0_42 = arith.constant 0 : index
    %83 = vector.load %arg4[%c0_41, %c0_42] : memref<512x256xbf16, #tpu.memory_space<vmem>>, vector<512x256xbf16>
    %cst_43 = arith.constant dense<0.000000e+00> : vector<2x256xf32>
    %84 = tpu.matmul %82, %83, %cst_43 {dimension_numbers = #tpu.dot_dimension_numbers<[1], [0], [0], [1], [0, 0, 1, 1], [], []>} : vector<2x512xbf16>, vector<512x256xbf16>, vector<2x256xf32> -> vector<2x256xf32>
    %c0_44 = arith.constant 0 : index
    %c0_45 = arith.constant 0 : index
    %85 = vector.load %arg5[%c0_44, %c0_45] : memref<1x256xf32, #tpu.memory_space<vmem>>, vector<1x256xf32>
    %86 = vector.broadcast %85 : vector<1x256xf32> to vector<2x256xf32>
    %87 = arith.addf %84, %86 : vector<2x256xf32>
    %88 = arith.mulf %87, %87 : vector<2x256xf32>
    %cst_46 = arith.constant dense<0.000000e+00> : vector<2xf32>
    %89 = vector.multi_reduction <add>, %88, %cst_46 [1] : vector<2x256xf32> to vector<2xf32>
    %90 = vector.shape_cast %89 : vector<2xf32> to vector<2x1xf32>
    %cst_47 = arith.constant 1.000000e-24 : f32
    %91 = vector.broadcast %cst_47 : f32 to vector<2x1xf32>
    %92 = arith.maximumf %90, %91 : vector<2x1xf32>
    %93 = math.rsqrt %92 : vector<2x1xf32>
    %94 = vector.broadcast %93 : vector<2x1xf32> to vector<2x256xf32>
    %95 = arith.mulf %87, %94 : vector<2x256xf32>
    %96 = arith.truncf %95 : vector<2x256xf32> to vector<2x256xbf16>
    %c0_48 = arith.constant 0 : index
    %c0_49 = arith.constant 0 : index
    %97 = vector.load %arg6[%c0_48, %c0_49] : memref<256x128xbf16, #tpu.memory_space<vmem>>, vector<256x128xbf16>
    %cst_50 = arith.constant dense<0.000000e+00> : vector<2x128xf32>
    %98 = tpu.matmul %96, %97, %cst_50 {dimension_numbers = #tpu.dot_dimension_numbers<[1], [0], [0], [1], [0, 0, 1, 1], [], []>} : vector<2x256xbf16>, vector<256x128xbf16>, vector<2x128xf32> -> vector<2x128xf32>
    %c0_51 = arith.constant 0 : index
    %c0_52 = arith.constant 0 : index
    %99 = vector.load %arg7[%c0_51, %c0_52] : memref<1x128xf32, #tpu.memory_space<vmem>>, vector<1x128xf32>
    %100 = vector.broadcast %99 : vector<1x128xf32> to vector<2x128xf32>
    %101 = arith.addf %98, %100 : vector<2x128xf32>
    %cst_53 = arith.constant 0.000000e+00 : f32
    %102 = vector.broadcast %cst_53 : f32 to vector<2x128xf32>
    %103 = arith.maximumf %101, %102 : vector<2x128xf32>
    %104 = arith.truncf %103 : vector<2x128xf32> to vector<2x128xbf16>
    %c0_54 = arith.constant 0 : index
    %c0_55 = arith.constant 0 : index
    %105 = vector.load %arg8[%c0_54, %c0_55] : memref<128x128xbf16, #tpu.memory_space<vmem>>, vector<128x128xbf16>
    %cst_56 = arith.constant dense<0.000000e+00> : vector<2x128xf32>
    %106 = tpu.matmul %104, %105, %cst_56 {dimension_numbers = #tpu.dot_dimension_numbers<[1], [0], [0], [1], [0, 0, 1, 1], [], []>} : vector<2x128xbf16>, vector<128x128xbf16>, vector<2x128xf32> -> vector<2x128xf32>
    %c0_57 = arith.constant 0 : index
    %c0_58 = arith.constant 0 : index
    %107 = vector.load %arg9[%c0_57, %c0_58] : memref<1x128xf32, #tpu.memory_space<vmem>>, vector<1x128xf32>
    %108 = vector.broadcast %107 : vector<1x128xf32> to vector<2x128xf32>
    %109 = arith.addf %106, %108 : vector<2x128xf32>
    %cst_59 = arith.constant 0.000000e+00 : f32
    %110 = vector.broadcast %cst_59 : f32 to vector<2x128xf32>
    %111 = arith.maximumf %109, %110 : vector<2x128xf32>
    %c0_60 = arith.constant 0 : index
    %c0_61 = arith.constant 0 : index
    %112 = vector.load %arg12[%c0_60, %c0_61] : memref<2x128xf32, #tpu.memory_space<vmem>>, vector<2x128xf32>
    tpu.vector_store %arg12[%c0_60, %c0_61], %111 {strides = array<i32>} : memref<2x128xf32, #tpu.memory_space<vmem>>, vector<2x128xf32>,
    %113 = arith.truncf %87 : vector<2x256xf32> to vector<2x256xbf16>
    %c0_62 = arith.constant 0 : index
    %c0_63 = arith.constant 0 : index
    %114 = vector.load %arg10[%c0_62, %c0_63] : memref<256x128xbf16, #tpu.memory_space<vmem>>, vector<256x128xbf16>
    %cst_64 = arith.constant dense<0.000000e+00> : vector<2x128xf32>
    %115 = tpu.matmul %113, %114, %cst_64 {dimension_numbers = #tpu.dot_dimension_numbers<[1], [0], [0], [1], [0, 0, 1, 1], [], []>} : vector<2x256xbf16>, vector<256x128xbf16>, vector<2x128xf32> -> vector<2x128xf32>
    %c0_65 = arith.constant 0 : index
    %c0_66 = arith.constant 0 : index
    %116 = vector.load %arg11[%c0_65, %c0_66] : memref<1x128xf32, #tpu.memory_space<vmem>>, vector<1x128xf32>
    %117 = vector.broadcast %116 : vector<1x128xf32> to vector<2x128xf32>
    %118 = arith.addf %115, %117 : vector<2x128xf32>
    %c0_67 = arith.constant 0 : index
    %c0_68 = arith.constant 0 : index
    %119 = vector.load %arg13[%c0_67, %c0_68] : memref<2x128xf32, #tpu.memory_space<vmem>>, vector<2x128xf32>
    tpu.vector_store %arg13[%c0_67, %c0_68], %118 {strides = array<i32>} : memref<2x128xf32, #tpu.memory_space<vmem>>, vector<2x128xf32>,
    return
  }
}

</mosaic_0001>

<bundles_post_ra>
// kernel: forward_both.1
= control target key start
LH: loop header
LB: loop body
LE: loop exit
PB: predicated region body
PF: predicated region fallthrough
CT: control target
= control target key end

     0   :  { %19 = vsyncpa [#allocation3], 0  ;;  %s7567_s0 = inlined_call_operand.vmem [shape: bf16[2,56,256], index: 0, kind: input, shape index: {}]   ;;  %s7568_s1 = inlined_call_operand.hbm [shape: bf16[8,56], index: 1, kind: input, shape index: {}]   ;;  %s7569_s2 = inlined_call_operand.hbm [shape: bf16[8,256,512], index: 2, kind: input, shape index: {}]   ;;  %s7570_s3 = inlined_call_operand.hbm [shape: f32[1,512], index: 3, kind: input, shape index: {}]   ;;  %s7571_s4 = inlined_call_operand.hbm [shape: bf16[512,256], index: 4, kind: input, shape index: {}]   ;;  %s7572_s5 = inlined_call_operand.hbm [shape: f32[1,256], index: 5, kind: input, shape index: {}]   ;;  %s7573_s6 = inlined_call_operand.hbm [shape: bf16[256,128], index: 6, kind: input, shape index: {}]   ;;  %s7574_s7 = inlined_call_operand.hbm [shape: f32[1,128], index: 7, kind: input, shape index: {}]   ;;  %s7575_s8 = inlined_call_operand.hbm [shape: bf16[128,128], index: 8, kind: input, shape index: {}]   ;;  %s7576_s9 = inlined_call_operand.hbm [shape: f32[1,128], index: 9, kind: input, shape index: {}]   ;;  %s7577_s10 = inlined_call_operand.hbm [shape: bf16[256,128], index: 10, kind: input, shape index: {}]   ;;  %s7578_s11 = inlined_call_operand.hbm [shape: f32[1,128], index: 11, kind: input, shape index: {}]   ;;  %s7579_s12 = inlined_call_operand.hbm [shape: f32[2,128], index: 12, kind: output, shape index: {0}]   ;;  %s7580_s13 = inlined_call_operand.hbm [shape: f32[2,128], index: 13, kind: output, shape index: {1}]  }
   0x1   :  { %20 = vsyncpa [#allocation6], 0 }
   0x2   :  { %21 = vsyncpa [#allocation9], 0 }
   0x3   :  { %22 = vsyncpa [#allocation12], 0 }
   0x4   :  { %23 = vsyncpa [#allocation15], 0 }
   0x5   :  { %24 = vsyncpa [#allocation18], 0 }
   0x6   :  { %25 = vsyncpa [#allocation4], 0 }
   0x7   :  { %26 = vsyncpa [#allocation22], 0  ;;  %s7197_s25 = smov [#allocation5]  }
   0x8   :  { %s44_s26 = sshll.u32 %s7197_s25, 4  ;;  %s45_s26 = int_to_ptr.vmem [resolvable:$true] %s44_s26 }
   0x9   :  { %s6929_s27 = scalar_lea.vmem %s45_s26, 65536  ;;  %p6934_p1 = scmp.lt.s32.totalorder %s45_s26, %s45_s26 }
   0xa   :  { %p6930_p0 = scmp.ne.s32.totalorder %s45_s26, %s6929_s27  ;;  %p6935_p2 = scmp.lt.s32.totalorder %s6929_s27, %s6929_s27 }
   0xc   :  { %p6936_p3 = por %p6935_p2, %p6934_p1 }
   0xe   :  { %p6937_p4 = pnand %p6936_p3, %p6930_p0 }
  0x10   :  { %6940 = shalt.err (!%p6937_p4)
}
  0x11   :  { %s7198_s28 = smov 256   ;;  %s7199_s29 = smov 16  }
  0x12   :  { %50 = dma.hbm_to_vmem [thread:$0]  %s7569_s2, 65536, %s45_s26, [#allocation6], %s7198_s28, %s7198_s28, %s7199_s29  }
  0x13   :  { %s7200_s15 = smov [#allocation8]  }
  0x14   :  { %s66_s16 = sshll.u32 %s7200_s15, 4  ;;  %s67_s16 = int_to_ptr.vmem [resolvable:$true] %s66_s16 }
  0x15   :  { %s6949_s17 = scalar_lea.vmem %s67_s16, 8192  ;;  %p6954_p6 = scmp.lt.s32.totalorder %s67_s16, %s67_s16 }
  0x16   :  { %p6950_p5 = scmp.ne.s32.totalorder %s67_s16, %s6949_s17  ;;  %p6955_p7 = scmp.lt.s32.totalorder %s6949_s17, %s6949_s17 }
  0x18   :  { %p6956_p8 = por %p6955_p7, %p6954_p6 }
  0x1a   :  { %p6957_p9 = pnand %p6956_p8, %p6950_p5 }
  0x1c   :  { %6960 = shalt.err (!%p6957_p9)
}
  0x1d   :  { %s7201_s18 = smov 128   ;;  %s7202_s19 = smov 8  }
  0x1e   :  { %72 = dma.hbm_to_vmem [thread:$0]  %s7571_s4, 8192, %s67_s16, [#allocation9], %s7201_s18, %s7201_s18, %s7202_s19  }
  0x1f   :  { %s7203_s22 = smov [#allocation11]  }
  0x20   :  { %s88_s23 = sshll.u32 %s7203_s22, 4  ;;  %s89_s23 = int_to_ptr.vmem [resolvable:$true] %s88_s23 }
  0x21   :  { %s6969_s2 = scalar_lea.vmem %s89_s23, 2048  ;;  %p6974_p11 = scmp.lt.s32.totalorder %s89_s23, %s89_s23 }
  0x22   :  { %p6970_p10 = scmp.ne.s32.totalorder %s89_s23, %s6969_s2  ;;  %p6975_p12 = scmp.lt.s32.totalorder %s6969_s2, %s6969_s2 }
  0x24   :  { %p6976_p13 = por %p6975_p12, %p6974_p11 }
  0x26   :  { %p6977_p0 = pnand %p6976_p13, %p6970_p10 }
  0x28   :  { %6980 = shalt.err (!%p6977_p0)
}
  0x29   :  { %s7204_s24 = smov 64   ;;  %s7205_s25 = smov 4  }
  0x2a   :  { %94 = dma.hbm_to_vmem [thread:$0]  %s7573_s6, 2048, %s89_s23, [#allocation12], %s7204_s24, %s7204_s24, %s7205_s25  }
  0x2b   :  { %s7206_s28 = smov [#allocation14]   ;;  %s7207_s4 = smov [#allocation17]  }
  0x2c   :  { %s110_s29 = sshll.u32 %s7206_s28, 4  ;;  %s132_s30 = sshll.u32 %s7207_s4, 4  ;;  %s111_s29 = int_to_ptr.vmem [resolvable:$true] %s110_s29  ;;  %s133_s30 = int_to_ptr.vmem [resolvable:$true] %s132_s30 }
  0x2d   :  { %s6989_s14 = scalar_lea.vmem %s111_s29, 1024  ;;  %p6994_p2 = scmp.lt.s32.totalorder %s111_s29, %s111_s29 }
  0x2e   :  { %p6990_p1 = scmp.ne.s32.totalorder %s111_s29, %s6989_s14  ;;  %p6995_p3 = scmp.lt.s32.totalorder %s6989_s14, %s6989_s14 }
  0x30   :  { %p6996_p4 = por %p6995_p3, %p6994_p2 }
  0x32   :  { %p6997_p5 = pnand %p6996_p4, %p6990_p1 }
  0x34   :  { %7000 = shalt.err (!%p6997_p5)
}
  0x35   :  { %116 = dma.hbm_to_vmem [thread:$0]  %s7575_s8, 1024, %s111_s29, [#allocation15], %s7204_s24, %s7204_s24, %s7205_s25  }
  0x36   :  { %s7009_s17 = scalar_lea.vmem %s133_s30, 2048  ;;  %p7014_p7 = scmp.lt.s32.totalorder %s133_s30, %s133_s30 }
  0x37   :  { %p7010_p6 = scmp.ne.s32.totalorder %s133_s30, %s7009_s17  ;;  %p7015_p8 = scmp.lt.s32.totalorder %s7009_s17, %s7009_s17 }
  0x39   :  { %p7016_p9 = por %p7015_p8, %p7014_p7 }
  0x3b   :  { %p7017_p10 = pnand %p7016_p9, %p7010_p6 }
  0x3d   :  { %7020 = shalt.err (!%p7017_p10)
}
  0x3e   :  { %138 = dma.hbm_to_vmem [thread:$0]  %s7577_s10, 2048, %s133_s30, [#allocation18], %s7204_s24, %s7204_s24, %s7205_s25  }
  0x3f   :  { %s7208_s19 = smov [#allocation2]   ;;  %s7209_s21 = smov [#allocation7]  }
  0x40   :  { %s35_s20 = sshll.u32 %s7208_s19, 4  ;;  %s57_s22 = sshll.u32 %s7209_s21, 4  ;;  %s36_s20 = int_to_ptr.vmem [resolvable:$true] %s35_s20  ;;  %s58_s22 = int_to_ptr.vmem [resolvable:$true] %s57_s22 }
  0x41   :  { %s7029_s23 = scalar_lea.vmem %s36_s20, 64  ;;  %p7034_p12 = scmp.lt.s32.totalorder %s36_s20, %s36_s20 }
  0x42   :  { %p7030_p11 = scmp.ne.s32.totalorder %s36_s20, %s7029_s23  ;;  %p7035_p13 = scmp.lt.s32.totalorder %s7029_s23, %s7029_s23 }
  0x44   :  { %p7036_p0 = por %p7035_p13, %p7034_p12 }
  0x46   :  { %p7037_p1 = pnand %p7036_p0, %p7030_p11 }
  0x48   :  { %7040 = shalt.err (!%p7037_p1)
}
  0x49   :  { %38 = dma.hbm_to_vmem [thread:$0]  %s7568_s1, 64, %s36_s20, [#allocation3]  }
  0x4a   :  { %s7049_s26 = scalar_lea.vmem %s58_s22, 64  ;;  %p7054_p3 = scmp.lt.s32.totalorder %s58_s22, %s58_s22 }
  0x4b   :  { %p7050_p2 = scmp.ne.s32.totalorder %s58_s22, %s7049_s26  ;;  %p7055_p4 = scmp.lt.s32.totalorder %s7049_s26, %s7049_s26 }
  0x4d   :  { %p7056_p5 = por %p7055_p4, %p7054_p3 }
  0x4f   :  { %p7057_p6 = pnand %p7056_p5, %p7050_p2 }
  0x51   :  { %7060 = shalt.err (!%p7057_p6)
}
  0x52   :  { %60 = dma.hbm_to_vmem [thread:$0]  %s7570_s3, 64, %s58_s22, [#allocation6]  }
  0x53   :  { %s7210_s25 = smov [#allocation10]   ;;  %s7211_s28 = smov [#allocation13]  }
  0x54   :  { %s79_s27 = sshll.u32 %s7210_s25, 4  ;;  %s101_s29 = sshll.u32 %s7211_s28, 4  ;;  %s80_s27 = int_to_ptr.vmem [resolvable:$true] %s79_s27  ;;  %s102_s29 = int_to_ptr.vmem [resolvable:$true] %s101_s29 }
  0x55   :  { %s7069_s4 = scalar_lea.vmem %s80_s27, 32  ;;  %p7074_p8 = scmp.lt.s32.totalorder %s80_s27, %s80_s27 }
  0x56   :  { %p7070_p7 = scmp.ne.s32.totalorder %s80_s27, %s7069_s4  ;;  %p7075_p9 = scmp.lt.s32.totalorder %s7069_s4, %s7069_s4 }
  0x58   :  { %p7076_p10 = por %p7075_p9, %p7074_p8 }
  0x5a   :  { %p7077_p11 = pnand %p7076_p10, %p7070_p7 }
  0x5c   :  { %7080 = shalt.err (!%p7077_p11)
}
  0x5d   :  { %82 = dma.hbm_to_vmem [thread:$0]  %s7572_s5, 32, %s80_s27, [#allocation9]  }
  0x5e   :  { %s7089_s14 = scalar_lea.vmem %s102_s29, 16  ;;  %s7093_s3 = scalar_lea.vmem %s102_s29, 32 }
  0x5f   :  { %p7090_p12 = scmp.ne.s32.totalorder %s102_s29, %s7089_s14  ;;  %p7094_p13 = scmp.lt.s32.totalorder %s102_s29, %s102_s29 }
  0x60   :  { %p7095_p0 = scmp.lt.s32.totalorder %s7093_s3, %s7089_s14 }
  0x62   :  { %p7096_p1 = por %p7095_p0, %p7094_p13 }
  0x64   :  { %p7097_p2 = pnand %p7096_p1, %p7090_p12 }
  0x66   :  { %7100 = shalt.err (!%p7097_p2)
}
  0x67   :  { %104 = dma.hbm_to_vmem [thread:$0]  %s7574_s7, 16, %s102_s29, [#allocation12]  }
  0x68   :  { %s7212_s17 = smov [#allocation16]   ;;  %s7213_s18 = smov [#allocation19]  }
  0x69   :  { %s123_s6 = sshll.u32 %s7212_s17, 4  ;;  %s145_s19 = sshll.u32 %s7213_s18, 4  ;;  %s124_s6 = int_to_ptr.vmem [resolvable:$true] %s123_s6  ;;  %s146_s19 = int_to_ptr.vmem [resolvable:$true] %s145_s19 }
  0x6a   :  { %s7109_s20 = scalar_lea.vmem %s124_s6, 16  ;;  %s7113_s5 = scalar_lea.vmem %s124_s6, 32 }
  0x6b   :  { %p7110_p3 = scmp.ne.s32.totalorder %s124_s6, %s7109_s20  ;;  %p7114_p4 = scmp.lt.s32.totalorder %s124_s6, %s124_s6 }
  0x6c   :  { %p7115_p5 = scmp.lt.s32.totalorder %s7113_s5, %s7109_s20 }
  0x6e   :  { %p7116_p6 = por %p7115_p5, %p7114_p4 }
  0x70   :  { %p7117_p7 = pnand %p7116_p6, %p7110_p3 }
  0x72   :  { %7120 = shalt.err (!%p7117_p7)
}
  0x73   :  { %126 = dma.hbm_to_vmem [thread:$0]  %s7576_s9, 16, %s124_s6, [#allocation15]  }
  0x74   :  { %s7129_s23 = scalar_lea.vmem %s146_s19, 16  ;;  %s7133_s7 = scalar_lea.vmem %s146_s19, 32 }
  0x75   :  { %p7130_p8 = scmp.ne.s32.totalorder %s146_s19, %s7129_s23  ;;  %p7134_p9 = scmp.lt.s32.totalorder %s146_s19, %s146_s19 }
  0x76   :  { %p7135_p10 = scmp.lt.s32.totalorder %s7133_s7, %s7129_s23 }
  0x78   :  { %p7136_p11 = por %p7135_p10, %p7134_p9 }
  0x7a   :  { %p7137_p12 = pnand %p7136_p11, %p7130_p8 }
  0x7c   :  { %7140 = shalt.err (!%p7137_p12)
}
  0x7d   :  { %148 = dma.hbm_to_vmem [thread:$0]  %s7578_s11, 16, %s146_s19, [#allocation18]  }
  0x7e   :  { %7181 = dma.done.wait [#allocation3], 64  }
  0x7f   :  { %7182 = vsyncadd [#allocation3], 4294967232 }
  0x80   :  { %7183 = dma.done.wait [#allocation6], 65600  }
  0x81   :  { %7184 = vsyncadd [#allocation6], 4294901696 }
  0x82   :  { %7185 = dma.done.wait [#allocation9], 8224  }
  0x83   :  { %7186 = vsyncadd [#allocation9], 4294959072 }
  0x84   :  { %7187 = dma.done.wait [#allocation12], 2064  }
  0x85   :  { %7188 = vsyncadd [#allocation12], 4294965232 }
  0x86   :  { %7189 = dma.done.wait [#allocation15], 1040  }
  0x87   :  { %7190 = vsyncadd [#allocation15], 4294966256 }
  0x88   :  { %7191 = dma.done.wait [#allocation18], 2064  }
  0x89   :  { %7192 = vsyncadd [#allocation18], 4294965232  ;;  %v7214_v0 = vmov 0   ;;  %v190_v1 = vld [vmem:[%s7567_s0 + $0x30] sm:$0xff]  ;;  %vm230_vm0 = vcmask 1043456   ;;  %v5268_v11 = vld [vmem:[%s7567_s0 + $0x68] sm:$0xff] }
  0x8a   :  { %269 = vmatprep.mubr.bf16.mxu1 %v7214_v0  ;;  %v5259_v2 = vcombine.high %v190_v1, %v190_v1  ;;  %v5258_v3 = vcombine.low %v190_v1, %v190_v1  ;;  %v5995_v4 = vld [vmem:[%s7567_s0 + $0x24] ss:$8 sps:$4 sm:$0xff]   ;;  %v5997_v6 = vld [vmem:[%s7567_s0 + $0x20] ss:$8 sps:$4 sm:$0xff]   ;;  %v5998_v7 = vld [vmem:[%s7567_s0 + $0x14] ss:$8 sps:$4 sm:$0xff]   ;;  %v5276_v15 = vcombine.high %v5268_v11, %v5268_v11  ;;  %v5275_v16 = vcombine.low %v5268_v11, %v5268_v11 }
  0x8b   :  { %v6000_v8 = vld [vmem:[%s7567_s0 + $0x10] ss:$8 sps:$4 sm:$0xff]   ;;  %v6001_v9 = vld [vmem:[%s7567_s0 + $0x4] ss:$8 sps:$4 sm:$0xff]   ;;  %v6003_v12 = vld [vmem:[%s7567_s0] ss:$8 sps:$4 sm:$0xff]  }
  0x8c   :  { %5260 = vmatprep.subr.msk.bf16.mxu1 %vm230_vm0, %v5259_v2  ;;  %v232_v5 = vsel %vm230_vm0, %v5258_v3, 0  ;;  %v6015_v10 = vld [vmem:[#allocation5 + $0x2e4] ss:$16 sps:$4 sm:$0xff]   ;;  %v6020_v13 = vld [vmem:[#allocation5 + $0x2e0] ss:$16 sps:$4 sm:$0xff]   ;;  %vm226_vm1 = vcmask 457728  }
  0x8d   :  { %246 = vmatpush1.bf16.msra.mxu1 %v232_v5  ;;  %842 = vmatprep.subr.bf16.mxu0 %v6015_v10  ;;  %v6021_v14 = vld [vmem:[#allocation5 + $0x2c4] ss:$16 sps:$4 sm:$0xff]   ;;  %v6026_v17 = vld [vmem:[#allocation5 + $0x2c0] ss:$16 sps:$4 sm:$0xff]   ;;  %v183_v19 = vld [vmem:[#allocation2] sm:$0xf] }
  0x8e   :  { %247 = vmatprep.subr.bf16.mxu1 %v5995_v4  ;;  %843 = vmatpush1.bf16.msra.mxu0 %v6020_v13  ;;  %v6027_v18 = vld [vmem:[#allocation5 + $0x2a4] ss:$16 sps:$4 sm:$0xff]   ;;  %v6008_v20 = vld [vmem:[%s7567_s0 + $0x5c] ss:$8 sps:$4 sm:$0xff]   ;;  %v324_v21 = vsel %vm230_vm0, %v5275_v16, 0  ;;  %vm378_vm2 = vcmask 1040384  }
  0x8f   :  { %844 = vmatprep.subr.bf16.mxu0 %v6021_v14  ;;  %v6032_v22 = vld [vmem:[#allocation5 + $0x2a0] ss:$16 sps:$4 sm:$0xff]   ;;  %v6033_v23 = vld [vmem:[#allocation5 + $0x284] ss:$16 sps:$4 sm:$0xff]   ;;  %v6019_v33 = vld [vmem:[#allocation5 + $0x2ec] ss:$16 sps:$4 sm:$0xff]  }
  0x90   :  { %v6006_v24 = vld [vmem:[%s7567_s0 + $0x58] ss:$8 sps:$4 sm:$0xff]   ;;  %v6011_v25 = vld [vmem:[%s7567_s0 + $0x4c] ss:$8 sps:$4 sm:$0xff]   ;;  %v6009_v28 = vld [vmem:[%s7567_s0 + $0x48] ss:$8 sps:$4 sm:$0xff]  }
  0x91   :  { %248 = vmatpush1.bf16.msra.mxu1 %v5997_v6  ;;  %v6038_v26 = vld [vmem:[#allocation5 + $0x280] ss:$16 sps:$4 sm:$0xff]   ;;  %v6039_v27 = vld [vmem:[#allocation5 + $0x264] ss:$16 sps:$4 sm:$0xff]   ;;  %v6017_v36 = vld [vmem:[#allocation5 + $0x2e8] ss:$16 sps:$4 sm:$0xff]  }
  0x92   :  { %249 = vmatprep.subr.bf16.mxu1 %v5998_v7  ;;  %845 = vmatpush1.bf16.msra.mxu0 %v6026_v17  ;;  %v6014_v29 = vld [vmem:[%s7567_s0 + $0x3c] ss:$8 sps:$4 sm:$0xff]   ;;  %v6045_v31 = vld [vmem:[#allocation5 + $0x244] ss:$16 sps:$4 sm:$0xff]   ;;  %v6025_v37 = vld [vmem:[#allocation5 + $0x2cc] ss:$16 sps:$4 sm:$0xff]  }
  0x93   :  { %846 = vmatprep.subr.bf16.mxu0 %v6027_v18  ;;  %v6044_v30 = vld [vmem:[#allocation5 + $0x260] ss:$16 sps:$4 sm:$0xff]   ;;  %v6012_v32 = vld [vmem:[%s7567_s0 + $0x38] ss:$8 sps:$4 sm:$0xff]   ;;  %v6023_v39 = vld [vmem:[#allocation5 + $0x2c8] ss:$16 sps:$4 sm:$0xff]  }
  0x94   :  { %v6050_v34 = vld [vmem:[#allocation5 + $0x240] ss:$16 sps:$4 sm:$0xff]   ;;  %v6051_v35 = vld [vmem:[#allocation5 + $0x224] ss:$16 sps:$4 sm:$0xff]   ;;  %v6031_v41 = vld [vmem:[#allocation5 + $0x2ac] ss:$16 sps:$4 sm:$0xff]  }
  0x95   :  { %250 = vmatpush1.bf16.msra.mxu1 %v6000_v8  ;;  %v6056_v38 = vld [vmem:[#allocation5 + $0x220] ss:$16 sps:$4 sm:$0xff]   ;;  %v6057_v40 = vld [vmem:[#allocation5 + $0x204] ss:$16 sps:$4 sm:$0xff]   ;;  %v6029_v44 = vld [vmem:[#allocation5 + $0x2a8] ss:$16 sps:$4 sm:$0xff]  }
  0x96   :  { %251 = vmatprep.subr.bf16.mxu1 %v6001_v9  ;;  %847 = vmatpush1.bf16.msra.mxu0 %v6032_v22  ;;  %v6062_v42 = vld [vmem:[#allocation5 + $0x200] ss:$16 sps:$4 sm:$0xff]   ;;  %v6063_v43 = vld [vmem:[#allocation5 + $0x3e4] ss:$16 sps:$4 sm:$0xff]   ;;  %v6037_v45 = vld [vmem:[#allocation5 + $0x28c] ss:$16 sps:$4 sm:$0xff]  }
  0x97   :  { %848 = vmatprep.subr.bf16.mxu0 %v6033_v23  ;;  %v6068_v46 = vld [vmem:[#allocation5 + $0x3e0] ss:$16 sps:$4 sm:$0xff]   ;;  %v6069_v47 = vld [vmem:[#allocation5 + $0x3c4] ss:$16 sps:$4 sm:$0xff]   ;;  %v6035_v48 = vld [vmem:[#allocation5 + $0x288] ss:$16 sps:$4 sm:$0xff]  }
  0x98   :  { %v6043_v49 = vld [vmem:[#allocation5 + $0x26c] ss:$16 sps:$4 sm:$0xff]   ;;  %v6074_v50 = vld [vmem:[#allocation5 + $0x3c0] ss:$16 sps:$4 sm:$0xff]   ;;  %v6041_v51 = vld [vmem:[#allocation5 + $0x268] ss:$16 sps:$4 sm:$0xff]  }
  0x99   :  { %252 = vmatpush1.bf16.msra.mxu1 %v6003_v12  ;;  %v6049_v52 = vld [vmem:[#allocation5 + $0x24c] ss:$16 sps:$4 sm:$0xff]   ;;  %v6047_v53 = vld [vmem:[#allocation5 + $0x248] ss:$16 sps:$4 sm:$0xff]   ;;  %v6075_v62 = vld [vmem:[#allocation5 + $0x3a4] ss:$16 sps:$4 sm:$0xff]  }
  0x9a   :  { %5277 = vmatprep.subr.msk.bf16.mxu1 %vm230_vm0, %v5276_v15  ;;  %849 = vmatpush1.bf16.msra.mxu0 %v6038_v26  ;;  %v6055_v54 = vld [vmem:[#allocation5 + $0x22c] ss:$16 sps:$4 sm:$0xff]   ;;  %v6053_v55 = vld [vmem:[#allocation5 + $0x228] ss:$16 sps:$4 sm:$0xff]   ;;  %v6080_v1 = vld [vmem:[#allocation5 + $0x3a0] ss:$16 sps:$4 sm:$0xff]  }
  0x9b   :  { %850 = vmatprep.subr.bf16.mxu0 %v6039_v27  ;;  %v6061_v56 = vld [vmem:[#allocation5 + $0x20c] ss:$16 sps:$4 sm:$0xff]   ;;  %v6059_v57 = vld [vmem:[#allocation5 + $0x208] ss:$16 sps:$4 sm:$0xff]   ;;  %v6081_v2 = vld [vmem:[#allocation5 + $0x384] ss:$16 sps:$4 sm:$0xff]  }
  0x9c   :  { %5261 = vmatmul.mubr.msk.bf16.vlgmr.msra.gmra.mxu1 %vm226_vm1, %v183_v19  ;;  %v6067_v58 = vld [vmem:[#allocation5 + $0x3ec] ss:$16 sps:$4 sm:$0xff]   ;;  %v6065_v59 = vld [vmem:[#allocation5 + $0x3e8] ss:$16 sps:$4 sm:$0xff]   ;;  %v6086_v5 = vld [vmem:[#allocation5 + $0x380] ss:$16 sps:$4 sm:$0xff]  }
  0x9d   :  { %338 = vmatpush1.bf16.msra.mxu1 %v324_v21  ;;  %361 = vmatprep.mubr.bf16.mxu1 %v7214_v0  ;;  %v6073_v60 = vld [vmem:[#allocation5 + $0x3cc] ss:$16 sps:$4 sm:$0xff]   ;;  %v6071_v61 = vld [vmem:[#allocation5 + $0x3c8] ss:$16 sps:$4 sm:$0xff]   ;;  %v6087_v6 = vld [vmem:[#allocation5 + $0x364] ss:$16 sps:$4 sm:$0xff]  }
  0x9e   :  { %339 = vmatprep.subr.bf16.mxu1 %v6008_v20  ;;  %851 = vmatpush1.bf16.msra.mxu0 %v6044_v30  ;;  %v6079_v63 = vld [vmem:[#allocation5 + $0x3ac] ss:$16 sps:$4 sm:$0xff]   ;;  %v6077_v0 = vld [vmem:[#allocation5 + $0x3a8] ss:$16 sps:$4 sm:$0xff]   ;;  %v6092_v9 = vld [vmem:[#allocation5 + $0x360] ss:$16 sps:$4 sm:$0xff]  }
  0x9f   :  { %852 = vmatprep.subr.bf16.mxu0 %v6045_v31  ;;  %v6085_v3 = vld [vmem:[#allocation5 + $0x38c] ss:$16 sps:$4 sm:$0xff]   ;;  %v6083_v4 = vld [vmem:[#allocation5 + $0x388] ss:$16 sps:$4 sm:$0xff]   ;;  %v6093_v10 = vld [vmem:[#allocation5 + $0x344] ss:$16 sps:$4 sm:$0xff]  }
  0xa0   :  { %v6089_v7 = vld [vmem:[#allocation5 + $0x368] ss:$16 sps:$4 sm:$0xff]   ;;  %v6091_v8 = vld [vmem:[#allocation5 + $0x36c] ss:$16 sps:$4 sm:$0xff]   ;;  %v6098_v13 = vld [vmem:[#allocation5 + $0x340] ss:$16 sps:$4 sm:$0xff]  }
  0xa1   :  { %340 = vmatpush1.bf16.msra.mxu1 %v6006_v24  ;;  %v6095_v11 = vld [vmem:[#allocation5 + $0x348] ss:$16 sps:$4 sm:$0xff]   ;;  %v6097_v12 = vld [vmem:[#allocation5 + $0x34c] ss:$16 sps:$4 sm:$0xff]   ;;  %v6099_v14 = vld [vmem:[#allocation5 + $0x324] ss:$16 sps:$4 sm:$0xff]  }
  0xa2   :  { %341 = vmatprep.subr.bf16.mxu1 %v6011_v25  ;;  %853 = vmatpush1.bf16.msra.mxu0 %v6050_v34  ;;  %v6103_v15 = vld [vmem:[#allocation5 + $0x32c] ss:$16 sps:$4 sm:$0xff]   ;;  %v6101_v16 = vld [vmem:[#allocation5 + $0x328] ss:$16 sps:$4 sm:$0xff]   ;;  %v6104_v17 = vld [vmem:[#allocation5 + $0x320] ss:$16 sps:$4 sm:$0xff]  }
  0xa3   :  { %854 = vmatprep.subr.bf16.mxu0 %v6051_v35  ;;  %v6105_v18 = vld [vmem:[#allocation5 + $0x304] ss:$16 sps:$4 sm:$0xff]   ;;  %v6107_v20 = vld [vmem:[#allocation5 + $0x308] ss:$16 sps:$4 sm:$0xff]   ;;  %v6110_v21 = vld [vmem:[#allocation5 + $0x300] ss:$16 sps:$4 sm:$0xff]  }
  0xa4   :  { %v6113_v22 = vld [vmem:[#allocation5 + $0xe4] ss:$16 sps:$4 sm:$0xff]   ;;  %v6116_v23 = vld [vmem:[#allocation5 + $0xec] ss:$16 sps:$4 sm:$0xff]   ;;  %vm4738_vm3 = vcmask 1041408   ;;  %vm7216_vm4 = vmmov 0  }
  0xa5   :  { %342 = vmatpush1.bf16.msra.mxu1 %v6009_v28  ;;  %s7217_s0 = smov [#allocation21]  }
  0xa6   :  { %343 = vmatprep.subr.bf16.mxu1 %v6014_v29  ;;  %855 = vmatpush1.bf16.msra.mxu0 %v6056_v38  ;;  %s5234_s9 = sshll.u32 %s7217_s0, 4  ;;  %s5235_s9 = int_to_ptr.vmem [resolvable:$true] %s5234_s9 }
  0xa7   :  { %856 = vmatprep.subr.bf16.mxu0 %v6057_v40  ;;  %s7141_s26 = scalar_lea.vmem %s5235_s9, 32  ;;  %p7146_p0 = scmp.lt.s32.totalorder %s5235_s9, %s5235_s9 }
  0xa8   :  { %p7142_p13 = scmp.ne.s32.totalorder %s5235_s9, %s7141_s26  ;;  %p7147_p1 = scmp.lt.s32.totalorder %s7141_s26, %s7141_s26 }
  0xa9   :  { %344 = vmatpush1.bf16.msra.mxu1 %v6012_v32 }
  0xaa   :  { %883 = vmatprep.subr.bf16.mxu1 %v6019_v33  ;;  %857 = vmatpush1.bf16.msra.mxu0 %v6062_v42  ;;  %p7148_p2 = por %p7147_p1, %p7146_p0 }
  0xab   :  { %858 = vmatprep.subr.bf16.mxu0 %v6063_v43  ;;  %v6111_v43 = vld [vmem:[#allocation5 + $0xe0] ss:$16 sps:$4 sm:$0xff]  }
  0xac   :  { %5278 = vmatmul.mubr.msk.bf16.vlgmr.msra.gmra.mxu1 %vm226_vm1, %v183_v19  ;;  %v6109_v19 = vld [vmem:[#allocation5 + $0x30c] ss:$16 sps:$4 sm:$0xff]   ;;  %p7149_p3 = pnand %p7148_p2, %p7142_p13 }
  0xad   :  { %884 = vmatpush1.bf16.msra.mxu1 %v6017_v36 }
  0xae   :  { %885 = vmatprep.subr.bf16.mxu1 %v6025_v37  ;;  %859 = vmatpush2.bf16.msra.mxu0 %v6068_v46 }
  0xaf   :  { %860 = vmatprep.subr.bf16.mxu0 %v6069_v47 }
  0xb1   :  { %886 = vmatpush1.bf16.msra.mxu1 %v6023_v39 }
  0xb2   :  { %887 = vmatprep.subr.bf16.mxu1 %v6031_v41  ;;  %861 = vmatpush2.bf16.msra.mxu0 %v6074_v50 }
  0xb3   :  { %862 = vmatprep.subr.bf16.mxu0 %v6075_v62 }
  0xb5   :  { %888 = vmatpush1.bf16.msra.mxu1 %v6029_v44  ;;  %v6114_v44 = vld [vmem:[#allocation5 + $0xe8] ss:$16 sps:$4 sm:$0xff]  }
  0xb6   :  { %889 = vmatprep.subr.bf16.mxu1 %v6037_v45  ;;  %863 = vmatpush2.bf16.msra.mxu0 %v6080_v1  ;;  %v6117_v1 = vld [vmem:[#allocation5 + $0xc0] ss:$16 sps:$4 sm:$0xff]  }
  0xb7   :  { %864 = vmatprep.subr.bf16.mxu0 %v6081_v2  ;;  %v6120_v2 = vld [vmem:[#allocation5 + $0xc8] ss:$16 sps:$4 sm:$0xff]  }
  0xb9   :  { %890 = vmatpush1.bf16.msra.mxu1 %v6035_v48 }
  0xba   :  { %891 = vmatprep.subr.bf16.mxu1 %v6043_v49  ;;  %865 = vmatpush2.bf16.msra.mxu0 %v6086_v5 }
  0xbb   :  { %866 = vmatprep.subr.bf16.mxu0 %v6087_v6  ;;  %v6125_v6 = vld [vmem:[#allocation5 + $0xa4] ss:$16 sps:$4 sm:$0xff]  }
  0xbd   :  { %892 = vmatpush1.bf16.msra.mxu1 %v6041_v51 }
  0xbe   :  { %893 = vmatprep.subr.bf16.mxu1 %v6049_v52  ;;  %867 = vmatpush2.bf16.msra.mxu0 %v6092_v9 }
  0xbf   :  { %868 = vmatprep.subr.bf16.mxu0 %v6093_v10 }
  0xc1   :  { %894 = vmatpush1.bf16.msra.mxu1 %v6047_v53 }
  0xc2   :  { %895 = vmatprep.subr.bf16.mxu1 %v6055_v54  ;;  %869 = vmatpush2.bf16.msra.mxu0 %v6098_v13 }
  0xc3   :  { %870 = vmatprep.subr.bf16.mxu0 %v6099_v14 }
  0xc5   :  { %896 = vmatpush1.bf16.msra.mxu1 %v6053_v55  ;;  %v6119_v55 = vld [vmem:[#allocation5 + $0xc4] ss:$16 sps:$4 sm:$0xff]  }
  0xc6   :  { %897 = vmatprep.subr.bf16.mxu1 %v6061_v56  ;;  %871 = vmatpush2.bf16.msra.mxu0 %v6104_v17  ;;  %v6122_v56 = vld [vmem:[#allocation5 + $0xcc] ss:$16 sps:$4 sm:$0xff]  }
  0xc7   :  { %872 = vmatprep.subr.bf16.mxu0 %v6105_v18 }
  0xc9   :  { %898 = vmatpush1.bf16.msra.mxu1 %v6059_v57 }
  0xca   :  { %899 = vmatprep.subr.bf16.mxu1 %v6067_v58  ;;  %873 = vmatpush2.bf16.msra.mxu0 %v6110_v21 }
  0xcb   :  { %1244 = vmatprep.subr.bf16.mxu0 %v6113_v22  ;;  %v6126_v22 = vld [vmem:[#allocation5 + $0xa8] ss:$16 sps:$4 sm:$0xff]  }
  0xcd   :  { %900 = vmatpush2.bf16.msra.mxu1 %v6065_v59 }
  0xce   :  { %901 = vmatprep.subr.bf16.mxu1 %v6073_v60 }
  0xd1   :  { %902 = vmatpush2.bf16.msra.mxu1 %v6071_v61 }
  0xd2   :  { %903 = vmatprep.subr.bf16.mxu1 %v6079_v63 }
  0xd5   :  { %904 = vmatpush2.bf16.msra.mxu1 %v6077_v0 }
  0xd6   :  { %905 = vmatprep.subr.bf16.mxu1 %v6085_v3 }
  0xd9   :  { %906 = vmatpush2.bf16.msra.mxu1 %v6083_v4 }
  0xda   :  { %907 = vmatprep.subr.bf16.mxu1 %v6091_v8 }
  0xdd   :  { %908 = vmatpush2.bf16.msra.mxu1 %v6089_v7  ;;  %v6128_v7 = vld [vmem:[#allocation5 + $0xac] ss:$16 sps:$4 sm:$0xff]  }
  0xde   :  { %909 = vmatprep.subr.bf16.mxu1 %v6097_v12 }
  0xe1   :  { %910 = vmatpush2.bf16.msra.mxu1 %v6095_v11 }
  0xe2   :  { %911 = vmatprep.subr.bf16.mxu1 %v6103_v15 }
  0xe5   :  { %912 = vmatpush2.bf16.msra.mxu1 %v6101_v16 }
  0xe6   :  { %913 = vmatprep.subr.bf16.mxu1 %v6109_v19 }
  0xe9   :  { %914 = vmatpush2.bf16.msra.mxu1 %v6107_v20  ;;  %v6123_v20 = vld [vmem:[#allocation5 + $0xa0] ss:$16 sps:$4 sm:$0xff]  }
  0xea   :  { %1285 = vmatprep.subr.bf16.mxu1 %v6116_v23 }
 0x15c   :  { %v271_v24 = vpop.f32.mrf.mxu1 }
 0x15d   :  { %v7370_v28 = vmax.f32 %v271_v24, 0.0 }
 0x15e   :  { %v273_v25 = vpop.f32.mrf.mxu1 }
 0x15f   :  { %v7372_v29 = vmax.f32 %v273_v25, 0.0  ;;  %v449_v32 = vrot.slane %v7370_v28, 1  ;;  %v1326_v33 = vrot.slane %v7370_v28, 2  ;;  %v1809_v37 = vrot.slane %v7370_v28, 3 }
 0x160   :  { %v275_v26 = vpop.f32.mrf.mxu1  ;;  %v2292_v48 = vrot.slane %v7370_v28, 4  ;;  %v2775_v5 = vrot.slane %v7370_v28, 5  ;;  %v3258_v11 = vrot.slane %v7370_v28, 6 }
 0x161   :  { %v450_v35 = vrot.slane %v7372_v29, 1  ;;  %v1327_v36 = vrot.slane %v7372_v29, 2  ;;  %v1810_v40 = vrot.slane %v7372_v29, 3  ;;  %v2293_v41 = vrot.slane %v7372_v29, 4 }
 0x162   :  { %v276_v27 = vpop.f32.mrf.mxu1  ;;  %v2776_v59 = vrot.slane %v7372_v29, 5  ;;  %v3259_v10 = vrot.slane %v7372_v29, 6  ;;  %v3742_v18 = vrot.slane %v7372_v29, 7  ;;  %v3741_v26 = vrot.slane %v7370_v28, 7 }
 0x16c   :  { %v363_v30 = vpop.f32.mrf.mxu1 }
 0x16d   :  { %v7374_v31 = vmax.f32 %v363_v30, 0.0  ;;  %v6134_v30 = vld [vmem:[#allocation5 + $0x8c] ss:$16 sps:$4 sm:$0xff]  }
 0x16e   :  { %v365_v34 = vpop.f32.mrf.mxu1 }
 0x16f   :  { %v7381_v38 = vmax.f32 %v365_v34, 0.0  ;;  %v374_v39 = vrot.slane %v7374_v31, 7  ;;  %v453_v45 = vsel %vm378_vm2, %v449_v32, %v7374_v31  ;;  %v1330_v46 = vrot.slane %v7374_v31, 1  ;;  %v6129_v32 = vld [vmem:[#allocation5 + $0x80] ss:$16 sps:$4 sm:$0xff]  }
 0x170   :  { %v367_v42 = vpop.f32.mrf.mxu1  ;;  %v1813_v47 = vrot.slane %v7374_v31, 2  ;;  %v455_v60 = vpack.c.bf16 %v453_v45, %v453_v45  ;;  %v2296_v8 = vrot.slane %v7374_v31, 3  ;;  %v2779_v13 = vrot.slane %v7374_v31, 4  ;;  %v6155_v45 = vld [vmem:[#allocation5 + $0x4] ss:$16 sps:$4 sm:$0xff]  }
 0x171   :  { %v454_v49 = vsel %vm378_vm2, %v450_v35, %v7381_v38  ;;  %v375_v50 = vrot.slane %v7381_v38, 7  ;;  %v7396_v51 = vsel %vm378_vm2, %v7370_v28, %v374_v39  ;;  %v1331_v52 = vrot.slane %v7381_v38, 1  ;;  %v6137_v35 = vld [vmem:[#allocation5 + $0x64] ss:$16 sps:$4 sm:$0xff]   ;;  %v6141_v39 = vld [vmem:[#allocation5 + $0x40] ss:$16 sps:$4 sm:$0xff]  }
 0x172   :  { %v368_v53 = vpop.f32.mrf.mxu1  ;;  %v456_v54 = vpack.c.bf16 %v454_v49, %v454_v49  ;;  %v7400_v57 = vsel %vm378_vm2, %v1326_v33, %v1330_v46  ;;  %v1814_v58 = vrot.slane %v7381_v38, 2  ;;  %v7410_v63 = vsel %vm378_vm2, %v1809_v37, %v1813_v47  ;;  %v6132_v33 = vld [vmem:[#allocation5 + $0x88] ss:$16 sps:$4 sm:$0xff]   ;;  %v6135_v37 = vld [vmem:[#allocation5 + $0x60] ss:$16 sps:$4 sm:$0xff]  }
 0x173   :  { %v380_v61 = vsel %vm378_vm2, %v7372_v29, %v375_v50  ;;  %v7407_v62 = vsel %vm378_vm2, %v1327_v36, %v1331_v52  ;;  %v2297_v4 = vrot.slane %v7381_v38, 3  ;;  %v2780_v9 = vrot.slane %v7381_v38, 4  ;;  %v6131_v29 = vld [vmem:[#allocation5 + $0x84] ss:$16 sps:$4 sm:$0xff]   ;;  %v6140_v36 = vld [vmem:[#allocation5 + $0x6c] ss:$16 sps:$4 sm:$0xff]  }
 0x174   :  { %874 = vmatprep.mubr.bf16.mxu0 %v456_v54  ;;  %915 = vmatprep.mubr.bf16.mxu1 %v456_v54  ;;  %v382_v0 = vpack.c.bf16 %v380_v61, %v380_v61  ;;  %v7413_v3 = vsel %vm378_vm2, %v1810_v40, %v1814_v58  ;;  %v3263_v14 = vrot.slane %v7381_v38, 5  ;;  %v3262_v15 = vrot.slane %v7374_v31, 5  ;;  %v6143_v28 = vld [vmem:[#allocation5 + $0x44] ss:$16 sps:$4 sm:$0xff]   ;;  %v6144_v40 = vld [vmem:[#allocation5 + $0x48] ss:$16 sps:$4 sm:$0xff]  }
 0x175   :  { %875 = vmatmul.mubr.bf16.vlgmr.msra.gmra.mxu0 %v455_v60  ;;  %916 = vmatmul.mubr.bf16.vlgmr.msra.gmra.mxu1 %v455_v60  ;;  %v7422_v12 = vsel %vm378_vm2, %v2293_v41, %v2297_v4  ;;  %v7428_v16 = vsel %vm378_vm2, %v2292_v48, %v2296_v8  ;;  %v7431_v17 = vsel %vm378_vm2, %v2776_v59, %v2780_v9  ;;  %v3746_v19 = vrot.slane %v7381_v38, 6  ;;  %v6138_v38 = vld [vmem:[#allocation5 + $0x68] ss:$16 sps:$4 sm:$0xff]   ;;  %v6149_v41 = vld [vmem:[#allocation5 + $0x24] ss:$16 sps:$4 sm:$0xff]  }
 0x176   :  { %1245 = vmatpush1.bf16.msra.mxu0 %v6111_v43  ;;  %1286 = vmatpush1.bf16.msra.mxu1 %v6114_v44  ;;  %v7436_v21 = vsel %vm378_vm2, %v2775_v5, %v2779_v13  ;;  %v7439_v23 = vsel %vm378_vm2, %v3259_v10, %v3263_v14  ;;  %v7442_v24 = vsel %vm378_vm2, %v3258_v11, %v3262_v15  ;;  %v3745_v27 = vrot.slane %v7374_v31, 6  ;;  %v6146_v31 = vld [vmem:[#allocation5 + $0x4c] ss:$16 sps:$4 sm:$0xff]   ;;  %v6147_v43 = vld [vmem:[#allocation5 + $0x20] ss:$16 sps:$4 sm:$0xff]  }
 0x177   :  { %1276 = vmatprep.mubr.bf16.mxu0 %v382_v0  ;;  %1317 = vmatprep.mubr.bf16.mxu1 %v382_v0  ;;  %v7445_v25 = vsel %vm378_vm2, %v3742_v18, %v3746_v19  ;;  %v6152_v42 = vld [vmem:[#allocation5 + $0x2c] ss:$16 sps:$4 sm:$0xff]   ;;  %v6150_v44 = vld [vmem:[#allocation5 + $0x28] ss:$16 sps:$4 sm:$0xff]   ;;  %v6153_v47 = vld [vmem:[#allocation5] ss:$16 sps:$4 sm:$0xff]  }
 0x178   :  { %1246 = vmatprep.subr.bf16.mxu0 %v6119_v55  ;;  %1287 = vmatprep.subr.bf16.mxu1 %v6122_v56  ;;  %v7450_v34 = vsel %vm378_vm2, %v3741_v26, %v3745_v27  ;;  %v6158_v46 = vld [vmem:[#allocation5 + $0xc] ss:$16 sps:$4 sm:$0xff]   ;;  %v6156_v48 = vld [vmem:[#allocation5 + $0x8] ss:$16 sps:$4 sm:$0xff]   ;;  %v6161_v49 = vld [vmem:[#allocation5 + $0x1e4] ss:$16 sps:$4 sm:$0xff]  }
 0x179   :  { %v6164_v50 = vld [vmem:[#allocation5 + $0x1ec] ss:$16 sps:$4 sm:$0xff]   ;;  %v6159_v52 = vld [vmem:[#allocation5 + $0x1e0] ss:$16 sps:$4 sm:$0xff]   ;;  %v6162_v53 = vld [vmem:[#allocation5 + $0x1e8] ss:$16 sps:$4 sm:$0xff]  }
 0x17a   :  { %1247 = vmatpush1.bf16.msra.mxu0 %v6117_v1  ;;  %1288 = vmatpush1.bf16.msra.mxu1 %v6120_v2  ;;  %v6167_v54 = vld [vmem:[#allocation5 + $0x1c4] ss:$16 sps:$4 sm:$0xff]   ;;  %v6170_v55 = vld [vmem:[#allocation5 + $0x1cc] ss:$16 sps:$4 sm:$0xff]   ;;  %v6165_v56 = vld [vmem:[#allocation5 + $0x1c0] ss:$16 sps:$4 sm:$0xff]  }
 0x17b   :  { %1248 = vmatprep.subr.bf16.mxu0 %v6125_v6  ;;  %1289 = vmatprep.subr.bf16.mxu1 %v6128_v7  ;;  %v6168_v58 = vld [vmem:[#allocation5 + $0x1c8] ss:$16 sps:$4 sm:$0xff]   ;;  %v6173_v59 = vld [vmem:[#allocation5 + $0x1a4] ss:$16 sps:$4 sm:$0xff]   ;;  %v6176_v60 = vld [vmem:[#allocation5 + $0x1ac] ss:$16 sps:$4 sm:$0xff]  }
 0x17c   :  { %v6171_v61 = vld [vmem:[#allocation5 + $0x1a0] ss:$16 sps:$4 sm:$0xff]   ;;  %v6174_v0 = vld [vmem:[#allocation5 + $0x1a8] ss:$16 sps:$4 sm:$0xff]   ;;  %v6179_v1 = vld [vmem:[#allocation5 + $0x184] ss:$16 sps:$4 sm:$0xff]  }
 0x17d   :  { %v6182_v2 = vld [vmem:[#allocation5 + $0x18c] ss:$16 sps:$4 sm:$0xff]   ;;  %v6177_v4 = vld [vmem:[#allocation5 + $0x180] ss:$16 sps:$4 sm:$0xff]   ;;  %v6180_v5 = vld [vmem:[#allocation5 + $0x188] ss:$16 sps:$4 sm:$0xff]  }
 0x17e   :  { %1249 = vmatpush1.bf16.msra.mxu0 %v6123_v20  ;;  %1290 = vmatpush1.bf16.msra.mxu1 %v6126_v22  ;;  %v6185_v6 = vld [vmem:[#allocation5 + $0x164] ss:$16 sps:$4 sm:$0xff]   ;;  %v6188_v7 = vld [vmem:[#allocation5 + $0x16c] ss:$16 sps:$4 sm:$0xff]   ;;  %v6183_v8 = vld [vmem:[#allocation5 + $0x160] ss:$16 sps:$4 sm:$0xff]  }
 0x17f   :  { %1250 = vmatprep.subr.bf16.mxu0 %v6131_v29  ;;  %1291 = vmatprep.subr.bf16.mxu1 %v6134_v30  ;;  %v6186_v9 = vld [vmem:[#allocation5 + $0x168] ss:$16 sps:$4 sm:$0xff]   ;;  %v6191_v10 = vld [vmem:[#allocation5 + $0x144] ss:$16 sps:$4 sm:$0xff]   ;;  %v6194_v11 = vld [vmem:[#allocation5 + $0x14c] ss:$16 sps:$4 sm:$0xff]  }
 0x180   :  { %v6189_v13 = vld [vmem:[#allocation5 + $0x140] ss:$16 sps:$4 sm:$0xff]   ;;  %v6192_v14 = vld [vmem:[#allocation5 + $0x148] ss:$16 sps:$4 sm:$0xff]   ;;  %v6197_v15 = vld [vmem:[#allocation5 + $0x124] ss:$16 sps:$4 sm:$0xff]  }
 0x181   :  { %v6200_v18 = vld [vmem:[#allocation5 + $0x12c] ss:$16 sps:$4 sm:$0xff]   ;;  %v6195_v19 = vld [vmem:[#allocation5 + $0x120] ss:$16 sps:$4 sm:$0xff]   ;;  %v6198_v20 = vld [vmem:[#allocation5 + $0x128] ss:$16 sps:$4 sm:$0xff]  }
 0x182   :  { %1251 = vmatpush1.bf16.msra.mxu0 %v6129_v32  ;;  %1292 = vmatpush1.bf16.msra.mxu1 %v6132_v33  ;;  %v6203_v22 = vld [vmem:[#allocation5 + $0x104] ss:$16 sps:$4 sm:$0xff]   ;;  %v6206_v26 = vld [vmem:[#allocation5 + $0x10c] ss:$16 sps:$4 sm:$0xff]   ;;  %v6201_v27 = vld [vmem:[#allocation5 + $0x100] ss:$16 sps:$4 sm:$0xff]  }
 0x183   :  { %1252 = vmatprep.subr.bf16.mxu0 %v6137_v35  ;;  %1293 = vmatprep.subr.bf16.mxu1 %v6140_v36  ;;  %v6204_v29 = vld [vmem:[#allocation5 + $0x108] ss:$16 sps:$4 sm:$0xff]   ;;  %v6209_v30 = vld [vmem:[#allocation5 + $0x4e4] ss:$16 sps:$4 sm:$0xff]   ;;  %v6212_v32 = vld [vmem:[#allocation5 + $0x4ec] ss:$16 sps:$4 sm:$0xff]  }
 0x184   :  { %v6207_v33 = vld [vmem:[#allocation5 + $0x4e0] ss:$16 sps:$4 sm:$0xff]   ;;  %v6210_v35 = vld [vmem:[#allocation5 + $0x4e8] ss:$16 sps:$4 sm:$0xff]   ;;  %v6215_v36 = vld [vmem:[#allocation5 + $0x4c4] ss:$16 sps:$4 sm:$0xff]  }
 0x186   :  { %1253 = vmatpush1.bf16.msra.mxu0 %v6135_v37  ;;  %1294 = vmatpush1.bf16.msra.mxu1 %v6138_v38  ;;  %v6218_v37 = vld [vmem:[#allocation5 + $0x4cc] ss:$16 sps:$4 sm:$0xff]   ;;  %v381_v38 = vpack.c.bf16 %v7396_v51, %v7396_v51  ;;  %v6222_v51 = vld [vmem:[#allocation5 + $0x4a8] ss:$16 sps:$4 sm:$0xff]  }
 0x187   :  { %1254 = vmatprep.subr.bf16.mxu0 %v6143_v28  ;;  %1295 = vmatprep.subr.bf16.mxu1 %v6146_v31  ;;  %v1337_v28 = vpack.c.bf16 %v7407_v62, %v7407_v62  ;;  %v6213_v31 = vld [vmem:[#allocation5 + $0x4c0] ss:$16 sps:$4 sm:$0xff]  }
 0x188   :  { %v6225_v62 = vld [vmem:[#allocation5 + $0x480] ss:$16 sps:$4 sm:$0xff]  }
 0x18a   :  { %1255 = vmatpush1.bf16.msra.mxu0 %v6141_v39  ;;  %1296 = vmatpush1.bf16.msra.mxu1 %v6144_v40  ;;  %v6216_v39 = vld [vmem:[#allocation5 + $0x4c8] ss:$16 sps:$4 sm:$0xff]   ;;  %v6221_v40 = vld [vmem:[#allocation5 + $0x4a4] ss:$16 sps:$4 sm:$0xff]  }
 0x18b   :  { %1256 = vmatprep.subr.bf16.mxu0 %v6149_v41  ;;  %1297 = vmatprep.subr.bf16.mxu1 %v6152_v42  ;;  %v6224_v41 = vld [vmem:[#allocation5 + $0x4ac] ss:$16 sps:$4 sm:$0xff]   ;;  %v6219_v42 = vld [vmem:[#allocation5 + $0x4a0] ss:$16 sps:$4 sm:$0xff]  }
 0x18e   :  { %1257 = vmatpush1.bf16.msra.mxu0 %v6147_v43  ;;  %1298 = vmatpush1.bf16.msra.mxu1 %v6150_v44  ;;  %v6227_v43 = vld [vmem:[#allocation5 + $0x484] ss:$16 sps:$4 sm:$0xff]   ;;  %v6230_v44 = vld [vmem:[#allocation5 + $0x48c] ss:$16 sps:$4 sm:$0xff]  }
 0x18f   :  { %1258 = vmatprep.subr.bf16.mxu0 %v6155_v45  ;;  %1299 = vmatprep.subr.bf16.mxu1 %v6158_v46  ;;  %v6228_v45 = vld [vmem:[#allocation5 + $0x488] ss:$16 sps:$4 sm:$0xff]   ;;  %v6233_v46 = vld [vmem:[#allocation5 + $0x464] ss:$16 sps:$4 sm:$0xff]  }
 0x192   :  { %1259 = vmatpush1.bf16.msra.mxu0 %v6153_v47  ;;  %1300 = vmatpush1.bf16.msra.mxu1 %v6156_v48  ;;  %v6231_v47 = vld [vmem:[#allocation5 + $0x460] ss:$16 sps:$4 sm:$0xff]   ;;  %v6236_v48 = vld [vmem:[#allocation5 + $0x46c] ss:$16 sps:$4 sm:$0xff]  }
 0x193   :  { %1260 = vmatprep.subr.bf16.mxu0 %v6161_v49  ;;  %1301 = vmatprep.subr.bf16.mxu1 %v6164_v50  ;;  %v6234_v49 = vld [vmem:[#allocation5 + $0x468] ss:$16 sps:$4 sm:$0xff]   ;;  %v6239_v50 = vld [vmem:[#allocation5 + $0x444] ss:$16 sps:$4 sm:$0xff]  }
 0x196   :  { %1261 = vmatpush2.bf16.msra.mxu0 %v6159_v52  ;;  %1302 = vmatpush2.bf16.msra.mxu1 %v6162_v53  ;;  %v6237_v52 = vld [vmem:[#allocation5 + $0x440] ss:$16 sps:$4 sm:$0xff]   ;;  %v6242_v53 = vld [vmem:[#allocation5 + $0x44c] ss:$16 sps:$4 sm:$0xff]  }
 0x197   :  { %1262 = vmatprep.subr.bf16.mxu0 %v6167_v54  ;;  %1303 = vmatprep.subr.bf16.mxu1 %v6170_v55  ;;  %v6240_v54 = vld [vmem:[#allocation5 + $0x448] ss:$16 sps:$4 sm:$0xff]   ;;  %v6245_v55 = vld [vmem:[#allocation5 + $0x424] ss:$16 sps:$4 sm:$0xff]  }
 0x19a   :  { %1263 = vmatpush2.bf16.msra.mxu0 %v6165_v56  ;;  %1304 = vmatpush2.bf16.msra.mxu1 %v6168_v58  ;;  %v6243_v56 = vld [vmem:[#allocation5 + $0x420] ss:$16 sps:$4 sm:$0xff]   ;;  %v6248_v58 = vld [vmem:[#allocation5 + $0x42c] ss:$16 sps:$4 sm:$0xff]  }
 0x19b   :  { %1264 = vmatprep.subr.bf16.mxu0 %v6173_v59  ;;  %1305 = vmatprep.subr.bf16.mxu1 %v6176_v60  ;;  %v6246_v59 = vld [vmem:[#allocation5 + $0x428] ss:$16 sps:$4 sm:$0xff]   ;;  %v6251_v60 = vld [vmem:[#allocation5 + $0x404] ss:$16 sps:$4 sm:$0xff]  }
 0x19e   :  { %1265 = vmatpush2.bf16.msra.mxu0 %v6171_v61  ;;  %1306 = vmatpush2.bf16.msra.mxu1 %v6174_v0  ;;  %v6254_v61 = vld [vmem:[#allocation5 + $0x40c] ss:$16 sps:$4 sm:$0xff]   ;;  %v6249_v0 = vld [vmem:[#allocation5 + $0x400] ss:$16 sps:$4 sm:$0xff]  }
 0x19f   :  { %1266 = vmatprep.subr.bf16.mxu0 %v6179_v1  ;;  %1307 = vmatprep.subr.bf16.mxu1 %v6182_v2  ;;  %v6252_v1 = vld [vmem:[#allocation5 + $0x408] ss:$16 sps:$4 sm:$0xff]   ;;  %v6257_v2 = vld [vmem:[#allocation5 + $0x5e4] ss:$16 sps:$4 sm:$0xff]  }
 0x1a2   :  { %1267 = vmatpush2.bf16.msra.mxu0 %v6177_v4  ;;  %1308 = vmatpush2.bf16.msra.mxu1 %v6180_v5  ;;  %v6260_v4 = vld [vmem:[#allocation5 + $0x5ec] ss:$16 sps:$4 sm:$0xff]   ;;  %v6255_v5 = vld [vmem:[#allocation5 + $0x5e0] ss:$16 sps:$4 sm:$0xff]  }
 0x1a3   :  { %1268 = vmatprep.subr.bf16.mxu0 %v6185_v6  ;;  %1309 = vmatprep.subr.bf16.mxu1 %v6188_v7  ;;  %v6258_v6 = vld [vmem:[#allocation5 + $0x5e8] ss:$16 sps:$4 sm:$0xff]   ;;  %v6263_v7 = vld [vmem:[#allocation5 + $0x5c4] ss:$16 sps:$4 sm:$0xff]  }
 0x1a6   :  { %1269 = vmatpush2.bf16.msra.mxu0 %v6183_v8  ;;  %1310 = vmatpush2.bf16.msra.mxu1 %v6186_v9  ;;  %v6266_v8 = vld [vmem:[#allocation5 + $0x5cc] ss:$16 sps:$4 sm:$0xff]   ;;  %v6261_v9 = vld [vmem:[#allocation5 + $0x5c0] ss:$16 sps:$4 sm:$0xff]  }
 0x1a7   :  { %1270 = vmatprep.subr.bf16.mxu0 %v6191_v10  ;;  %1311 = vmatprep.subr.bf16.mxu1 %v6194_v11  ;;  %v6264_v10 = vld [vmem:[#allocation5 + $0x5c8] ss:$16 sps:$4 sm:$0xff]   ;;  %v6269_v11 = vld [vmem:[#allocation5 + $0x5a4] ss:$16 sps:$4 sm:$0xff]  }
 0x1aa   :  { %1271 = vmatpush2.bf16.msra.mxu0 %v6189_v13  ;;  %1312 = vmatpush2.bf16.msra.mxu1 %v6192_v14  ;;  %v6272_v13 = vld [vmem:[#allocation5 + $0x5ac] ss:$16 sps:$4 sm:$0xff]   ;;  %v6267_v14 = vld [vmem:[#allocation5 + $0x5a0] ss:$16 sps:$4 sm:$0xff]  }
 0x1ab   :  { %1272 = vmatprep.subr.bf16.mxu0 %v6197_v15  ;;  %1313 = vmatprep.subr.bf16.mxu1 %v6200_v18  ;;  %v6270_v15 = vld [vmem:[#allocation5 + $0x5a8] ss:$16 sps:$4 sm:$0xff]   ;;  %v6275_v18 = vld [vmem:[#allocation5 + $0x584] ss:$16 sps:$4 sm:$0xff]  }
 0x1ae   :  { %1273 = vmatpush2.bf16.msra.mxu0 %v6195_v19  ;;  %1314 = vmatpush2.bf16.msra.mxu1 %v6198_v20  ;;  %v6278_v19 = vld [vmem:[#allocation5 + $0x58c] ss:$16 sps:$4 sm:$0xff]   ;;  %v6273_v20 = vld [vmem:[#allocation5 + $0x580] ss:$16 sps:$4 sm:$0xff]  }
 0x1af   :  { %1274 = vmatprep.subr.bf16.mxu0 %v6203_v22  ;;  %1315 = vmatprep.subr.bf16.mxu1 %v6206_v26  ;;  %v6276_v22 = vld [vmem:[#allocation5 + $0x588] ss:$16 sps:$4 sm:$0xff]   ;;  %v6281_v26 = vld [vmem:[#allocation5 + $0x564] ss:$16 sps:$4 sm:$0xff]  }
 0x1b2   :  { %1275 = vmatpush2.bf16.msra.mxu0 %v6201_v27  ;;  %1316 = vmatpush2.bf16.msra.mxu1 %v6204_v29  ;;  %v6284_v27 = vld [vmem:[#allocation5 + $0x56c] ss:$16 sps:$4 sm:$0xff]   ;;  %v6279_v29 = vld [vmem:[#allocation5 + $0x560] ss:$16 sps:$4 sm:$0xff]  }
 0x1b3   :  { %1723 = vmatprep.subr.bf16.mxu0 %v6209_v30  ;;  %1764 = vmatprep.subr.bf16.mxu1 %v6212_v32  ;;  %v6282_v30 = vld [vmem:[#allocation5 + $0x568] ss:$16 sps:$4 sm:$0xff]   ;;  %v6287_v32 = vld [vmem:[#allocation5 + $0x544] ss:$16 sps:$4 sm:$0xff]  }
 0x1b5   :  { %1277 = vmatmul.mubr.bf16.vlgmr.msra.gmra.mxu0 %v381_v38  ;;  %1318 = vmatmul.mubr.bf16.vlgmr.msra.gmra.mxu1 %v381_v38  ;;  %v6296_v38 = vld [vmem:[#allocation5 + $0x52c] ss:$16 sps:$4 sm:$0xff]  }
 0x1b6   :  { %1724 = vmatpush1.bf16.msra.mxu0 %v6207_v33  ;;  %1755 = vmatprep.mubr.bf16.mxu0 %v1337_v28  ;;  %v6290_v33 = vld [vmem:[#allocation5 + $0x54c] ss:$16 sps:$4 sm:$0xff]  }
 0x1b7   :  { %1765 = vmatpush1.bf16.msra.mxu1 %v6210_v35  ;;  %1796 = vmatprep.mubr.bf16.mxu1 %v1337_v28  ;;  %v6285_v35 = vld [vmem:[#allocation5 + $0x540] ss:$16 sps:$4 sm:$0xff]  }
 0x1b8   :  { %1725 = vmatprep.subr.bf16.mxu0 %v6215_v36  ;;  %1766 = vmatprep.subr.bf16.mxu1 %v6218_v37  ;;  %v6288_v36 = vld [vmem:[#allocation5 + $0x548] ss:$16 sps:$4 sm:$0xff]   ;;  %v6293_v37 = vld [vmem:[#allocation5 + $0x524] ss:$16 sps:$4 sm:$0xff]   ;;  %v6291_v28 = vld [vmem:[#allocation5 + $0x520] ss:$16 sps:$4 sm:$0xff]  }
 0x1ba   :  { %1726 = vmatpush1.bf16.msra.mxu0 %v6213_v31  ;;  %v6294_v31 = vld [vmem:[#allocation5 + $0x528] ss:$16 sps:$4 sm:$0xff]  }
 0x1bb   :  { %1767 = vmatpush1.bf16.msra.mxu1 %v6216_v39  ;;  %1727 = vmatprep.subr.bf16.mxu0 %v6221_v40  ;;  %v6299_v39 = vld [vmem:[#allocation5 + $0x504] ss:$16 sps:$4 sm:$0xff]   ;;  %v6302_v40 = vld [vmem:[#allocation5 + $0x50c] ss:$16 sps:$4 sm:$0xff]  }
 0x1bc   :  { %1768 = vmatprep.subr.bf16.mxu1 %v6224_v41  ;;  %v6297_v41 = vld [vmem:[#allocation5 + $0x500] ss:$16 sps:$4 sm:$0xff]  }
 0x1be   :  { %1728 = vmatpush1.bf16.msra.mxu0 %v6219_v42  ;;  %v6300_v42 = vld [vmem:[#allocation5 + $0x508] ss:$16 sps:$4 sm:$0xff]  }
 0x1bf   :  { %1769 = vmatpush1.bf16.msra.mxu1 %v6222_v51  ;;  %1729 = vmatprep.subr.bf16.mxu0 %v6227_v43  ;;  %v6305_v51 = vld [vmem:[#allocation5 + $0x6e4] ss:$16 sps:$4 sm:$0xff]   ;;  %v6308_v43 = vld [vmem:[#allocation5 + $0x6ec] ss:$16 sps:$4 sm:$0xff]  }
 0x1c0   :  { %1770 = vmatprep.subr.bf16.mxu1 %v6230_v44  ;;  %v1336_v44 = vpack.c.bf16 %v7400_v57, %v7400_v57  ;;  %v6315_v57 = vld [vmem:[#allocation5 + $0x6a0] ss:$16 sps:$4 sm:$0xff]  }
 0x1c2   :  { %1730 = vmatpush1.bf16.msra.mxu0 %v6225_v62  ;;  %v6303_v62 = vld [vmem:[#allocation5 + $0x6e0] ss:$16 sps:$4 sm:$0xff]  }
 0x1c3   :  { %1771 = vmatpush1.bf16.msra.mxu1 %v6228_v45  ;;  %1731 = vmatprep.subr.bf16.mxu0 %v6233_v46  ;;  %v6306_v45 = vld [vmem:[#allocation5 + $0x6e8] ss:$16 sps:$4 sm:$0xff]   ;;  %v6311_v46 = vld [vmem:[#allocation5 + $0x6c4] ss:$16 sps:$4 sm:$0xff]  }
 0x1c4   :  { %1772 = vmatprep.subr.bf16.mxu1 %v6236_v48  ;;  %v6314_v48 = vld [vmem:[#allocation5 + $0x6cc] ss:$16 sps:$4 sm:$0xff]  }
 0x1c6   :  { %1732 = vmatpush1.bf16.msra.mxu0 %v6231_v47  ;;  %v1820_v47 = vpack.c.bf16 %v7413_v3, %v7413_v3  ;;  %v6326_v3 = vld [vmem:[#allocation5 + $0x68c] ss:$16 sps:$4 sm:$0xff]  }
 0x1c7   :  { %1773 = vmatpush1.bf16.msra.mxu1 %v6234_v49  ;;  %1733 = vmatprep.subr.bf16.mxu0 %v6239_v50  ;;  %v6309_v49 = vld [vmem:[#allocation5 + $0x6c0] ss:$16 sps:$4 sm:$0xff]   ;;  %v6312_v50 = vld [vmem:[#allocation5 + $0x6c8] ss:$16 sps:$4 sm:$0xff]  }
 0x1c8   :  { %1774 = vmatprep.subr.bf16.mxu1 %v6242_v53  ;;  %v6320_v53 = vld [vmem:[#allocation5 + $0x6ac] ss:$16 sps:$4 sm:$0xff]  }
 0x1ca   :  { %1734 = vmatpush1.bf16.msra.mxu0 %v6237_v52  ;;  %v6317_v52 = vld [vmem:[#allocation5 + $0x6a4] ss:$16 sps:$4 sm:$0xff]  }
 0x1cb   :  { %1775 = vmatpush1.bf16.msra.mxu1 %v6240_v54  ;;  %1735 = vmatprep.subr.bf16.mxu0 %v6245_v55  ;;  %v6318_v54 = vld [vmem:[#allocation5 + $0x6a8] ss:$16 sps:$4 sm:$0xff]   ;;  %v6323_v55 = vld [vmem:[#allocation5 + $0x684] ss:$16 sps:$4 sm:$0xff]  }
 0x1cc   :  { %1776 = vmatprep.subr.bf16.mxu1 %v6248_v58  ;;  %v6324_v58 = vld [vmem:[#allocation5 + $0x688] ss:$16 sps:$4 sm:$0xff]  }
 0x1ce   :  { %1736 = vmatpush1.bf16.msra.mxu0 %v6243_v56  ;;  %v6321_v56 = vld [vmem:[#allocation5 + $0x680] ss:$16 sps:$4 sm:$0xff]  }
 0x1cf   :  { %1777 = vmatpush1.bf16.msra.mxu1 %v6246_v59  ;;  %1737 = vmatprep.subr.bf16.mxu0 %v6251_v60  ;;  %v6329_v59 = vld [vmem:[#allocation5 + $0x664] ss:$16 sps:$4 sm:$0xff]   ;;  %v6332_v60 = vld [vmem:[#allocation5 + $0x66c] ss:$16 sps:$4 sm:$0xff]  }
 0x1d0   :  { %1778 = vmatprep.subr.bf16.mxu1 %v6254_v61  ;;  %v6327_v61 = vld [vmem:[#allocation5 + $0x660] ss:$16 sps:$4 sm:$0xff]  }
 0x1d2   :  { %1738 = vmatpush1.bf16.msra.mxu0 %v6249_v0  ;;  %v6330_v0 = vld [vmem:[#allocation5 + $0x668] ss:$16 sps:$4 sm:$0xff]  }
 0x1d3   :  { %1779 = vmatpush1.bf16.msra.mxu1 %v6252_v1  ;;  %1739 = vmatprep.subr.bf16.mxu0 %v6257_v2  ;;  %v6335_v1 = vld [vmem:[#allocation5 + $0x644] ss:$16 sps:$4 sm:$0xff]   ;;  %v6338_v2 = vld [vmem:[#allocation5 + $0x64c] ss:$16 sps:$4 sm:$0xff]  }
 0x1d4   :  { %1780 = vmatprep.subr.bf16.mxu1 %v6260_v4  ;;  %v6333_v4 = vld [vmem:[#allocation5 + $0x640] ss:$16 sps:$4 sm:$0xff]  }
 0x1d6   :  { %1740 = vmatpush2.bf16.msra.mxu0 %v6255_v5  ;;  %v6336_v5 = vld [vmem:[#allocation5 + $0x648] ss:$16 sps:$4 sm:$0xff]  }
 0x1d7   :  { %1781 = vmatpush2.bf16.msra.mxu1 %v6258_v6  ;;  %1741 = vmatprep.subr.bf16.mxu0 %v6263_v7  ;;  %v6341_v6 = vld [vmem:[#allocation5 + $0x624] ss:$16 sps:$4 sm:$0xff]   ;;  %v6344_v7 = vld [vmem:[#allocation5 + $0x62c] ss:$16 sps:$4 sm:$0xff]  }
 0x1d8   :  { %1782 = vmatprep.subr.bf16.mxu1 %v6266_v8  ;;  %v6339_v8 = vld [vmem:[#allocation5 + $0x620] ss:$16 sps:$4 sm:$0xff]  }
 0x1da   :  { %1742 = vmatpush2.bf16.msra.mxu0 %v6261_v9  ;;  %v6342_v9 = vld [vmem:[#allocation5 + $0x628] ss:$16 sps:$4 sm:$0xff]  }
 0x1db   :  { %1783 = vmatpush2.bf16.msra.mxu1 %v6264_v10  ;;  %1743 = vmatprep.subr.bf16.mxu0 %v6269_v11  ;;  %v6347_v10 = vld [vmem:[#allocation5 + $0x604] ss:$16 sps:$4 sm:$0xff]   ;;  %v6350_v11 = vld [vmem:[#allocation5 + $0x60c] ss:$16 sps:$4 sm:$0xff]  }
 0x1dc   :  { %1784 = vmatprep.subr.bf16.mxu1 %v6272_v13  ;;  %v6345_v13 = vld [vmem:[#allocation5 + $0x600] ss:$16 sps:$4 sm:$0xff]  }
 0x1de   :  { %1744 = vmatpush2.bf16.msra.mxu0 %v6267_v14  ;;  %v6348_v14 = vld [vmem:[#allocation5 + $0x608] ss:$16 sps:$4 sm:$0xff]  }
 0x1df   :  { %1785 = vmatpush2.bf16.msra.mxu1 %v6270_v15  ;;  %1745 = vmatprep.subr.bf16.mxu0 %v6275_v18  ;;  %v6353_v15 = vld [vmem:[#allocation5 + $0x7e4] ss:$16 sps:$4 sm:$0xff]   ;;  %v6356_v18 = vld [vmem:[#allocation5 + $0x7ec] ss:$16 sps:$4 sm:$0xff]  }
 0x1e0   :  { %1786 = vmatprep.subr.bf16.mxu1 %v6278_v19  ;;  %v6351_v19 = vld [vmem:[#allocation5 + $0x7e0] ss:$16 sps:$4 sm:$0xff]  }
 0x1e2   :  { %1746 = vmatpush2.bf16.msra.mxu0 %v6273_v20  ;;  %v6354_v20 = vld [vmem:[#allocation5 + $0x7e8] ss:$16 sps:$4 sm:$0xff]  }
 0x1e3   :  { %1787 = vmatpush2.bf16.msra.mxu1 %v6276_v22  ;;  %1747 = vmatprep.subr.bf16.mxu0 %v6281_v26  ;;  %v6359_v22 = vld [vmem:[#allocation5 + $0x7c4] ss:$16 sps:$4 sm:$0xff]   ;;  %v6362_v26 = vld [vmem:[#allocation5 + $0x7cc] ss:$16 sps:$4 sm:$0xff]  }
 0x1e4   :  { %1788 = vmatprep.subr.bf16.mxu1 %v6284_v27  ;;  %v6357_v27 = vld [vmem:[#allocation5 + $0x7c0] ss:$16 sps:$4 sm:$0xff]  }
 0x1e6   :  { %1748 = vmatpush2.bf16.msra.mxu0 %v6279_v29  ;;  %v6360_v29 = vld [vmem:[#allocation5 + $0x7c8] ss:$16 sps:$4 sm:$0xff]  }
 0x1e7   :  { %1789 = vmatpush2.bf16.msra.mxu1 %v6282_v30  ;;  %1749 = vmatprep.subr.bf16.mxu0 %v6287_v32  ;;  %v6365_v30 = vld [vmem:[#allocation5 + $0x7a4] ss:$16 sps:$4 sm:$0xff]   ;;  %v6368_v32 = vld [vmem:[#allocation5 + $0x7ac] ss:$16 sps:$4 sm:$0xff]  }
 0x1e8   :  { %1790 = vmatprep.subr.bf16.mxu1 %v6290_v33  ;;  %v6363_v33 = vld [vmem:[#allocation5 + $0x7a0] ss:$16 sps:$4 sm:$0xff]  }
 0x1ea   :  { %1750 = vmatpush2.bf16.msra.mxu0 %v6285_v35  ;;  %v6366_v35 = vld [vmem:[#allocation5 + $0x7a8] ss:$16 sps:$4 sm:$0xff]  }
 0x1eb   :  { %1791 = vmatpush2.bf16.msra.mxu1 %v6288_v36  ;;  %1751 = vmatprep.subr.bf16.mxu0 %v6293_v37  ;;  %v6371_v36 = vld [vmem:[#allocation5 + $0x784] ss:$16 sps:$4 sm:$0xff]   ;;  %v6374_v37 = vld [vmem:[#allocation5 + $0x78c] ss:$16 sps:$4 sm:$0xff]  }
 0x1ec   :  { %1792 = vmatprep.subr.bf16.mxu1 %v6296_v38  ;;  %v6369_v38 = vld [vmem:[#allocation5 + $0x780] ss:$16 sps:$4 sm:$0xff]  }
 0x1ee   :  { %1752 = vmatpush2.bf16.msra.mxu0 %v6291_v28  ;;  %v6372_v28 = vld [vmem:[#allocation5 + $0x788] ss:$16 sps:$4 sm:$0xff]  }
 0x1ef   :  { %1793 = vmatpush2.bf16.msra.mxu1 %v6294_v31  ;;  %1753 = vmatprep.subr.bf16.mxu0 %v6299_v39  ;;  %v6377_v31 = vld [vmem:[#allocation5 + $0x764] ss:$16 sps:$4 sm:$0xff]   ;;  %v6380_v39 = vld [vmem:[#allocation5 + $0x76c] ss:$16 sps:$4 sm:$0xff]  }
 0x1f0   :  { %1794 = vmatprep.subr.bf16.mxu1 %v6302_v40  ;;  %v6375_v40 = vld [vmem:[#allocation5 + $0x760] ss:$16 sps:$4 sm:$0xff]  }
 0x1f2   :  { %1754 = vmatpush2.bf16.msra.mxu0 %v6297_v41  ;;  %v6378_v41 = vld [vmem:[#allocation5 + $0x768] ss:$16 sps:$4 sm:$0xff]  }
 0x1f3   :  { %1795 = vmatpush2.bf16.msra.mxu1 %v6300_v42  ;;  %2206 = vmatprep.subr.bf16.mxu0 %v6305_v51  ;;  %v6383_v42 = vld [vmem:[#allocation5 + $0x744] ss:$16 sps:$4 sm:$0xff]   ;;  %v6386_v51 = vld [vmem:[#allocation5 + $0x74c] ss:$16 sps:$4 sm:$0xff]  }
 0x1f4   :  { %2247 = vmatprep.subr.bf16.mxu1 %v6308_v43  ;;  %v6381_v43 = vld [vmem:[#allocation5 + $0x740] ss:$16 sps:$4 sm:$0xff]  }
 0x1f5   :  { %1756 = vmatmul.mubr.bf16.vlgmr.msra.gmra.mxu0 %v1336_v44 }
 0x1f6   :  { %1797 = vmatmul.mubr.bf16.vlgmr.msra.gmra.mxu1 %v1336_v44  ;;  %2207 = vmatpush1.bf16.msra.mxu0 %v6303_v62  ;;  %v6384_v62 = vld [vmem:[#allocation5 + $0x748] ss:$16 sps:$4 sm:$0xff]   ;;  %v6389_v44 = vld [vmem:[#allocation5 + $0x724] ss:$16 sps:$4 sm:$0xff]  }
 0x1f7   :  { %2238 = vmatprep.mubr.bf16.mxu0 %v1820_v47  ;;  %2248 = vmatpush1.bf16.msra.mxu1 %v6306_v45  ;;  %v6392_v45 = vld [vmem:[#allocation5 + $0x72c] ss:$16 sps:$4 sm:$0xff]  }
 0x1f8   :  { %2279 = vmatprep.mubr.bf16.mxu1 %v1820_v47  ;;  %2208 = vmatprep.subr.bf16.mxu0 %v6311_v46  ;;  %v6387_v46 = vld [vmem:[#allocation5 + $0x720] ss:$16 sps:$4 sm:$0xff]   ;;  %v6390_v47 = vld [vmem:[#allocation5 + $0x728] ss:$16 sps:$4 sm:$0xff]  }
 0x1f9   :  { %2249 = vmatprep.subr.bf16.mxu1 %v6314_v48  ;;  %v6395_v48 = vld [vmem:[#allocation5 + $0x704] ss:$16 sps:$4 sm:$0xff]  }
 0x1fa   :  { %2209 = vmatpush1.bf16.msra.mxu0 %v6309_v49  ;;  %v6398_v49 = vld [vmem:[#allocation5 + $0x70c] ss:$16 sps:$4 sm:$0xff]  }
 0x1fb   :  { %2250 = vmatpush1.bf16.msra.mxu1 %v6312_v50  ;;  %2210 = vmatprep.subr.bf16.mxu0 %v6317_v52  ;;  %v6393_v50 = vld [vmem:[#allocation5 + $0x700] ss:$16 sps:$4 sm:$0xff]   ;;  %v6396_v52 = vld [vmem:[#allocation5 + $0x708] ss:$16 sps:$4 sm:$0xff]  }
 0x1fc   :  { %2251 = vmatprep.subr.bf16.mxu1 %v6320_v53  ;;  %v6401_v53 = vld [vmem:[#allocation5 + $0x8e4] ss:$16 sps:$4 sm:$0xff]  }
 0x1fe   :  { %2211 = vmatpush1.bf16.msra.mxu0 %v6315_v57  ;;  %v6404_v57 = vld [vmem:[#allocation5 + $0x8ec] ss:$16 sps:$4 sm:$0xff]  }
 0x1ff   :  { %2252 = vmatpush1.bf16.msra.mxu1 %v6318_v54  ;;  %2212 = vmatprep.subr.bf16.mxu0 %v6323_v55  ;;  %v6399_v54 = vld [vmem:[#allocation5 + $0x8e0] ss:$16 sps:$4 sm:$0xff]   ;;  %v1819_v55 = vpack.c.bf16 %v7410_v63, %v7410_v63 }
 0x200   :  { %2253 = vmatprep.subr.bf16.mxu1 %v6326_v3  ;;  %v6402_v3 = vld [vmem:[#allocation5 + $0x8e8] ss:$16 sps:$4 sm:$0xff]  }
 0x202   :  { %2213 = vmatpush1.bf16.msra.mxu0 %v6321_v56  ;;  %v6407_v56 = vld [vmem:[#allocation5 + $0x8c4] ss:$16 sps:$4 sm:$0xff]  }
 0x203   :  { %2254 = vmatpush1.bf16.msra.mxu1 %v6324_v58  ;;  %2214 = vmatprep.subr.bf16.mxu0 %v6329_v59 }
 0x204   :  { %2255 = vmatprep.subr.bf16.mxu1 %v6332_v60  ;;  %v2303_v60 = vpack.c.bf16 %v7422_v12, %v7422_v12  ;;  %v6411_v12 = vld [vmem:[#allocation5 + $0x8a0] ss:$16 sps:$4 sm:$0xff]  }
 0x206   :  { %2215 = vmatpush1.bf16.msra.mxu0 %v6327_v61  ;;  %v6410_v61 = vld [vmem:[#allocation5 + $0x8cc] ss:$16 sps:$4 sm:$0xff]  }
 0x207   :  { %2256 = vmatpush1.bf16.msra.mxu1 %v6330_v0  ;;  %2216 = vmatprep.subr.bf16.mxu0 %v6335_v1  ;;  %v6405_v0 = vld [vmem:[#allocation5 + $0x8c0] ss:$16 sps:$4 sm:$0xff]  }
 0x208   :  { %2257 = vmatprep.subr.bf16.mxu1 %v6338_v2  ;;  %v6408_v2 = vld [vmem:[#allocation5 + $0x8c8] ss:$16 sps:$4 sm:$0xff]  }
 0x20a   :  { %2217 = vmatpush1.bf16.msra.mxu0 %v6333_v4  ;;  %v6413_v4 = vld [vmem:[#allocation5 + $0x8a4] ss:$16 sps:$4 sm:$0xff]  }
 0x20b   :  { %2258 = vmatpush1.bf16.msra.mxu1 %v6336_v5  ;;  %2218 = vmatprep.subr.bf16.mxu0 %v6341_v6  ;;  %v6416_v5 = vld [vmem:[#allocation5 + $0x8ac] ss:$16 sps:$4 sm:$0xff]  }
 0x20c   :  { %2259 = vmatprep.subr.bf16.mxu1 %v6344_v7 }
 0x20e   :  { %2219 = vmatpush1.bf16.msra.mxu0 %v6339_v8 }
 0x20f   :  { %2260 = vmatpush1.bf16.msra.mxu1 %v6342_v9  ;;  %2220 = vmatprep.subr.bf16.mxu0 %v6347_v10  ;;  %v6414_v10 = vld [vmem:[#allocation5 + $0x8a8] ss:$16 sps:$4 sm:$0xff]  }
 0x210   :  { %2261 = vmatprep.subr.bf16.mxu1 %v6350_v11  ;;  %v6419_v11 = vld [vmem:[#allocation5 + $0x884] ss:$16 sps:$4 sm:$0xff]  }
 0x212   :  { %2221 = vmatpush1.bf16.msra.mxu0 %v6345_v13  ;;  %v6422_v13 = vld [vmem:[#allocation5 + $0x88c] ss:$16 sps:$4 sm:$0xff]  }
 0x213   :  { %2262 = vmatpush1.bf16.msra.mxu1 %v6348_v14  ;;  %2222 = vmatprep.subr.bf16.mxu0 %v6353_v15  ;;  %v6417_v14 = vld [vmem:[#allocation5 + $0x880] ss:$16 sps:$4 sm:$0xff]   ;;  %v6420_v15 = vld [vmem:[#allocation5 + $0x888] ss:$16 sps:$4 sm:$0xff]  }
 0x214   :  { %2263 = vmatprep.subr.bf16.mxu1 %v6356_v18  ;;  %v6425_v18 = vld [vmem:[#allocation5 + $0x864] ss:$16 sps:$4 sm:$0xff]  }
 0x216   :  { %2223 = vmatpush2.bf16.msra.mxu0 %v6351_v19  ;;  %v6428_v19 = vld [vmem:[#allocation5 + $0x86c] ss:$16 sps:$4 sm:$0xff]  }
 0x217   :  { %2264 = vmatpush2.bf16.msra.mxu1 %v6354_v20  ;;  %2224 = vmatprep.subr.bf16.mxu0 %v6359_v22  ;;  %v6423_v20 = vld [vmem:[#allocation5 + $0x860] ss:$16 sps:$4 sm:$0xff]   ;;  %v6426_v22 = vld [vmem:[#allocation5 + $0x868] ss:$16 sps:$4 sm:$0xff]  }
 0x218   :  { %2265 = vmatprep.subr.bf16.mxu1 %v6362_v26  ;;  %v6431_v26 = vld [vmem:[#allocation5 + $0x844] ss:$16 sps:$4 sm:$0xff]  }
 0x21a   :  { %2225 = vmatpush2.bf16.msra.mxu0 %v6357_v27  ;;  %v6434_v27 = vld [vmem:[#allocation5 + $0x84c] ss:$16 sps:$4 sm:$0xff]  }
 0x21b   :  { %2266 = vmatpush2.bf16.msra.mxu1 %v6360_v29  ;;  %2226 = vmatprep.subr.bf16.mxu0 %v6365_v30  ;;  %v6429_v29 = vld [vmem:[#allocation5 + $0x840] ss:$16 sps:$4 sm:$0xff]   ;;  %v6432_v30 = vld [vmem:[#allocation5 + $0x848] ss:$16 sps:$4 sm:$0xff]  }
 0x21c   :  { %2267 = vmatprep.subr.bf16.mxu1 %v6368_v32  ;;  %v6437_v32 = vld [vmem:[#allocation5 + $0x824] ss:$16 sps:$4 sm:$0xff]  }
 0x21e   :  { %2227 = vmatpush2.bf16.msra.mxu0 %v6363_v33  ;;  %v6440_v33 = vld [vmem:[#allocation5 + $0x82c] ss:$16 sps:$4 sm:$0xff]  }
 0x21f   :  { %2268 = vmatpush2.bf16.msra.mxu1 %v6366_v35  ;;  %2228 = vmatprep.subr.bf16.mxu0 %v6371_v36  ;;  %v6435_v35 = vld [vmem:[#allocation5 + $0x820] ss:$16 sps:$4 sm:$0xff]   ;;  %v6438_v36 = vld [vmem:[#allocation5 + $0x828] ss:$16 sps:$4 sm:$0xff]  }
 0x220   :  { %2269 = vmatprep.subr.bf16.mxu1 %v6374_v37  ;;  %v6443_v37 = vld [vmem:[#allocation5 + $0x804] ss:$16 sps:$4 sm:$0xff]  }
 0x222   :  { %2229 = vmatpush2.bf16.msra.mxu0 %v6369_v38  ;;  %v6446_v38 = vld [vmem:[#allocation5 + $0x80c] ss:$16 sps:$4 sm:$0xff]  }
 0x223   :  { %2270 = vmatpush2.bf16.msra.mxu1 %v6372_v28  ;;  %2230 = vmatprep.subr.bf16.mxu0 %v6377_v31  ;;  %v6441_v28 = vld [vmem:[#allocation5 + $0x800] ss:$16 sps:$4 sm:$0xff]   ;;  %v6444_v31 = vld [vmem:[#allocation5 + $0x808] ss:$16 sps:$4 sm:$0xff]  }
 0x224   :  { %2271 = vmatprep.subr.bf16.mxu1 %v6380_v39  ;;  %v6449_v39 = vld [vmem:[#allocation5 + $0x9e4] ss:$16 sps:$4 sm:$0xff]  }
 0x226   :  { %2231 = vmatpush2.bf16.msra.mxu0 %v6375_v40  ;;  %v6452_v40 = vld [vmem:[#allocation5 + $0x9ec] ss:$16 sps:$4 sm:$0xff]  }
 0x227   :  { %2272 = vmatpush2.bf16.msra.mxu1 %v6378_v41  ;;  %2232 = vmatprep.subr.bf16.mxu0 %v6383_v42  ;;  %v6447_v41 = vld [vmem:[#allocation5 + $0x9e0] ss:$16 sps:$4 sm:$0xff]   ;;  %v6450_v42 = vld [vmem:[#allocation5 + $0x9e8] ss:$16 sps:$4 sm:$0xff]  }
 0x228   :  { %2273 = vmatprep.subr.bf16.mxu1 %v6386_v51  ;;  %v6455_v51 = vld [vmem:[#allocation5 + $0x9c4] ss:$16 sps:$4 sm:$0xff]  }
 0x22a   :  { %2233 = vmatpush2.bf16.msra.mxu0 %v6381_v43  ;;  %v6458_v43 = vld [vmem:[#allocation5 + $0x9cc] ss:$16 sps:$4 sm:$0xff]  }
 0x22b   :  { %2274 = vmatpush2.bf16.msra.mxu1 %v6384_v62  ;;  %2234 = vmatprep.subr.bf16.mxu0 %v6389_v44  ;;  %v6453_v62 = vld [vmem:[#allocation5 + $0x9c0] ss:$16 sps:$4 sm:$0xff]   ;;  %v6456_v44 = vld [vmem:[#allocation5 + $0x9c8] ss:$16 sps:$4 sm:$0xff]  }
 0x22c   :  { %2275 = vmatprep.subr.bf16.mxu1 %v6392_v45  ;;  %v6461_v45 = vld [vmem:[#allocation5 + $0x9a4] ss:$16 sps:$4 sm:$0xff]  }
 0x22e   :  { %2235 = vmatpush2.bf16.msra.mxu0 %v6387_v46  ;;  %v6464_v46 = vld [vmem:[#allocation5 + $0x9ac] ss:$16 sps:$4 sm:$0xff]  }
 0x22f   :  { %2276 = vmatpush2.bf16.msra.mxu1 %v6390_v47  ;;  %2236 = vmatprep.subr.bf16.mxu0 %v6395_v48  ;;  %v6459_v47 = vld [vmem:[#allocation5 + $0x9a0] ss:$16 sps:$4 sm:$0xff]   ;;  %v6462_v48 = vld [vmem:[#allocation5 + $0x9a8] ss:$16 sps:$4 sm:$0xff]  }
 0x230   :  { %2277 = vmatprep.subr.bf16.mxu1 %v6398_v49  ;;  %v6467_v49 = vld [vmem:[#allocation5 + $0x984] ss:$16 sps:$4 sm:$0xff]  }
 0x232   :  { %2237 = vmatpush2.bf16.msra.mxu0 %v6393_v50  ;;  %v6470_v50 = vld [vmem:[#allocation5 + $0x98c] ss:$16 sps:$4 sm:$0xff]  }
 0x233   :  { %2278 = vmatpush2.bf16.msra.mxu1 %v6396_v52  ;;  %2689 = vmatprep.subr.bf16.mxu0 %v6401_v53  ;;  %v6465_v52 = vld [vmem:[#allocation5 + $0x980] ss:$16 sps:$4 sm:$0xff]   ;;  %v6468_v53 = vld [vmem:[#allocation5 + $0x988] ss:$16 sps:$4 sm:$0xff]  }
 0x234   :  { %2730 = vmatprep.subr.bf16.mxu1 %v6404_v57  ;;  %v6473_v57 = vld [vmem:[#allocation5 + $0x964] ss:$16 sps:$4 sm:$0xff]  }
 0x235   :  { %2239 = vmatmul.mubr.bf16.vlgmr.msra.gmra.mxu0 %v1819_v55  ;;  %v7462_v58 = vpop.f32.mrf.mxu0  ;;  %v7464_v59 = vpop.f32.mrf.mxu1 }
 0x236   :  { %2280 = vmatmul.mubr.bf16.vlgmr.msra.gmra.mxu1 %v1819_v55  ;;  %2690 = vmatpush1.bf16.msra.mxu0 %v6399_v54  ;;  %v6476_v54 = vld [vmem:[#allocation5 + $0x96c] ss:$16 sps:$4 sm:$0xff]   ;;  %v6471_v55 = vld [vmem:[#allocation5 + $0x960] ss:$16 sps:$4 sm:$0xff]  }
 0x237   :  { %2721 = vmatprep.mubr.bf16.mxu0 %v2303_v60  ;;  %2731 = vmatpush1.bf16.msra.mxu1 %v6402_v3  ;;  %v7468_v1 = vpop.f32.mrf.mxu0  ;;  %v7470_v63 = vpop.f32.mrf.mxu1  ;;  %v6474_v3 = vld [vmem:[#allocation5 + $0x968] ss:$16 sps:$4 sm:$0xff]  }
 0x238   :  { %2762 = vmatprep.mubr.bf16.mxu1 %v2303_v60  ;;  %2691 = vmatprep.subr.bf16.mxu0 %v6407_v56  ;;  %v6479_v56 = vld [vmem:[#allocation5 + $0x944] ss:$16 sps:$4 sm:$0xff]   ;;  %v6482_v60 = vld [vmem:[#allocation5 + $0x94c] ss:$16 sps:$4 sm:$0xff]  }
 0x239   :  { %2732 = vmatprep.subr.bf16.mxu1 %v6410_v61  ;;  %v880_v6 = vpop.f32.mrf.mxu0  ;;  %v921_v7 = vpop.f32.mrf.mxu1  ;;  %v6477_v61 = vld [vmem:[#allocation5 + $0x940] ss:$16 sps:$4 sm:$0xff]  }
 0x23a   :  { %2692 = vmatpush1.bf16.msra.mxu0 %v6405_v0  ;;  %v6480_v0 = vld [vmem:[#allocation5 + $0x948] ss:$16 sps:$4 sm:$0xff]   ;;  %v6491_v7 = vld [vmem:[#allocation5 + $0x904] ss:$16 sps:$4 sm:$0xff]  }
 0x23b   :  { %2733 = vmatpush1.bf16.msra.mxu1 %v6408_v2  ;;  %v881_v8 = vpop.f32.mrf.mxu0  ;;  %v922_v9 = vpop.f32.mrf.mxu1  ;;  %2693 = vmatprep.subr.bf16.mxu0 %v6413_v4  ;;  %v6485_v2 = vld [vmem:[#allocation5 + $0x924] ss:$16 sps:$4 sm:$0xff]   ;;  %v6488_v4 = vld [vmem:[#allocation5 + $0x92c] ss:$16 sps:$4 sm:$0xff]   ;;  %v6486_v6 = vld [vmem:[#allocation5 + $0x928] ss:$16 sps:$4 sm:$0xff]  }
 0x23c   :  { %2734 = vmatprep.subr.bf16.mxu1 %v6416_v5  ;;  %v6483_v5 = vld [vmem:[#allocation5 + $0x920] ss:$16 sps:$4 sm:$0xff]   ;;  %v6492_v9 = vld [vmem:[#allocation5 + $0x908] ss:$16 sps:$4 sm:$0xff]  }
 0x23d   :  { %v6489_v8 = vld [vmem:[#allocation5 + $0x900] ss:$16 sps:$4 sm:$0xff]  }
 0x23e   :  { %2694 = vmatpush1.bf16.msra.mxu0 %v6411_v12  ;;  %v6494_v12 = vld [vmem:[#allocation5 + $0x90c] ss:$16 sps:$4 sm:$0xff]  }
 0x23f   :  { %2735 = vmatpush1.bf16.msra.mxu1 %v6414_v10  ;;  %2695 = vmatprep.subr.bf16.mxu0 %v6419_v11  ;;  %v6497_v10 = vld [vmem:[#allocation5 + $0xae4] ss:$16 sps:$4 sm:$0xff]   ;;  %v6500_v11 = vld [vmem:[#allocation5 + $0xaec] ss:$16 sps:$4 sm:$0xff]  }
 0x240   :  { %2736 = vmatprep.subr.bf16.mxu1 %v6422_v13  ;;  %v6495_v13 = vld [vmem:[#allocation5 + $0xae0] ss:$16 sps:$4 sm:$0xff]  }
 0x242   :  { %2696 = vmatpush1.bf16.msra.mxu0 %v6417_v14  ;;  %v2302_v14 = vpack.c.bf16 %v7428_v16, %v7428_v16  ;;  %v6501_v16 = vld [vmem:[#allocation5 + $0xac0] ss:$16 sps:$4 sm:$0xff]  }
 0x243   :  { %2737 = vmatpush1.bf16.msra.mxu1 %v6420_v15  ;;  %2697 = vmatprep.subr.bf16.mxu0 %v6425_v18  ;;  %v6498_v15 = vld [vmem:[#allocation5 + $0xae8] ss:$16 sps:$4 sm:$0xff]   ;;  %v6503_v18 = vld [vmem:[#allocation5 + $0xac4] ss:$16 sps:$4 sm:$0xff]  }
 0x244   :  { %2738 = vmatprep.subr.bf16.mxu1 %v6428_v19 }
 0x246   :  { %2698 = vmatpush1.bf16.msra.mxu0 %v6423_v20 }
 0x247   :  { %2739 = vmatpush1.bf16.msra.mxu1 %v6426_v22  ;;  %2699 = vmatprep.subr.bf16.mxu0 %v6431_v26  ;;  %v2786_v22 = vpack.c.bf16 %v7431_v17, %v7431_v17  ;;  %v6506_v26 = vld [vmem:[#allocation5 + $0xacc] ss:$16 sps:$4 sm:$0xff]  }
 0x248   :  { %2740 = vmatprep.subr.bf16.mxu1 %v6434_v27 }
 0x24a   :  { %2700 = vmatpush1.bf16.msra.mxu0 %v6429_v29 }
 0x24b   :  { %2741 = vmatpush1.bf16.msra.mxu1 %v6432_v30  ;;  %2701 = vmatprep.subr.bf16.mxu0 %v6437_v32 }
 0x24c   :  { %2742 = vmatprep.subr.bf16.mxu1 %v6440_v33  ;;  %v6504_v33 = vld [vmem:[#allocation5 + $0xac8] ss:$16 sps:$4 sm:$0xff]  }
 0x24e   :  { %2702 = vmatpush1.bf16.msra.mxu0 %v6435_v35  ;;  %v6509_v35 = vld [vmem:[#allocation5 + $0xaa4] ss:$16 sps:$4 sm:$0xff]  }
 0x24f   :  { %2743 = vmatpush1.bf16.msra.mxu1 %v6438_v36  ;;  %2703 = vmatprep.subr.bf16.mxu0 %v6443_v37 }
 0x250   :  { %2744 = vmatprep.subr.bf16.mxu1 %v6446_v38  ;;  %v6507_v38 = vld [vmem:[#allocation5 + $0xaa0] ss:$16 sps:$4 sm:$0xff]  }
 0x252   :  { %2704 = vmatpush1.bf16.msra.mxu0 %v6441_v28 }
 0x253   :  { %2745 = vmatpush1.bf16.msra.mxu1 %v6444_v31  ;;  %2705 = vmatprep.subr.bf16.mxu0 %v6449_v39  ;;  %v6510_v39 = vld [vmem:[#allocation5 + $0xaa8] ss:$16 sps:$4 sm:$0xff]  }
 0x254   :  { %2746 = vmatprep.subr.bf16.mxu1 %v6452_v40  ;;  %v6515_v40 = vld [vmem:[#allocation5 + $0xa84] ss:$16 sps:$4 sm:$0xff]  }
 0x256   :  { %2706 = vmatpush2.bf16.msra.mxu0 %v6447_v41  ;;  %v6518_v41 = vld [vmem:[#allocation5 + $0xa8c] ss:$16 sps:$4 sm:$0xff]  }
 0x257   :  { %2747 = vmatpush2.bf16.msra.mxu1 %v6450_v42  ;;  %2707 = vmatprep.subr.bf16.mxu0 %v6455_v51  ;;  %v6521_v42 = vld [vmem:[#allocation5 + $0xa64] ss:$16 sps:$4 sm:$0xff]   ;;  %v6524_v51 = vld [vmem:[#allocation5 + $0xa6c] ss:$16 sps:$4 sm:$0xff]  }
 0x258   :  { %2748 = vmatprep.subr.bf16.mxu1 %v6458_v43  ;;  %v6519_v43 = vld [vmem:[#allocation5 + $0xa60] ss:$16 sps:$4 sm:$0xff]  }
 0x25a   :  { %2708 = vmatpush2.bf16.msra.mxu0 %v6453_v62  ;;  %v6522_v62 = vld [vmem:[#allocation5 + $0xa68] ss:$16 sps:$4 sm:$0xff]  }
 0x25b   :  { %2749 = vmatpush2.bf16.msra.mxu1 %v6456_v44  ;;  %2709 = vmatprep.subr.bf16.mxu0 %v6461_v45  ;;  %v6527_v44 = vld [vmem:[#allocation5 + $0xa44] ss:$16 sps:$4 sm:$0xff]   ;;  %v6530_v45 = vld [vmem:[#allocation5 + $0xa4c] ss:$16 sps:$4 sm:$0xff]  }
 0x25c   :  { %2750 = vmatprep.subr.bf16.mxu1 %v6464_v46  ;;  %v6525_v46 = vld [vmem:[#allocation5 + $0xa40] ss:$16 sps:$4 sm:$0xff]  }
 0x25e   :  { %2710 = vmatpush2.bf16.msra.mxu0 %v6459_v47  ;;  %v6528_v47 = vld [vmem:[#allocation5 + $0xa48] ss:$16 sps:$4 sm:$0xff]  }
 0x25f   :  { %2751 = vmatpush2.bf16.msra.mxu1 %v6462_v48  ;;  %2711 = vmatprep.subr.bf16.mxu0 %v6467_v49  ;;  %v6533_v48 = vld [vmem:[#allocation5 + $0xa24] ss:$16 sps:$4 sm:$0xff]   ;;  %v6536_v49 = vld [vmem:[#allocation5 + $0xa2c] ss:$16 sps:$4 sm:$0xff]  }
 0x260   :  { %2752 = vmatprep.subr.bf16.mxu1 %v6470_v50  ;;  %v6531_v50 = vld [vmem:[#allocation5 + $0xa20] ss:$16 sps:$4 sm:$0xff]  }
 0x262   :  { %2712 = vmatpush2.bf16.msra.mxu0 %v6465_v52  ;;  %v6534_v52 = vld [vmem:[#allocation5 + $0xa28] ss:$16 sps:$4 sm:$0xff]  }
 0x263   :  { %2753 = vmatpush2.bf16.msra.mxu1 %v6468_v53  ;;  %2713 = vmatprep.subr.bf16.mxu0 %v6473_v57  ;;  %v6539_v53 = vld [vmem:[#allocation5 + $0xa04] ss:$16 sps:$4 sm:$0xff]   ;;  %v6542_v57 = vld [vmem:[#allocation5 + $0xa0c] ss:$16 sps:$4 sm:$0xff]  }
 0x264   :  { %2754 = vmatprep.subr.bf16.mxu1 %v6476_v54  ;;  %v6537_v54 = vld [vmem:[#allocation5 + $0xa00] ss:$16 sps:$4 sm:$0xff]  }
 0x266   :  { %2714 = vmatpush2.bf16.msra.mxu0 %v6471_v55  ;;  %v6540_v55 = vld [vmem:[#allocation5 + $0xa08] ss:$16 sps:$4 sm:$0xff]  }
 0x267   :  { %2755 = vmatpush2.bf16.msra.mxu1 %v6474_v3  ;;  %2715 = vmatprep.subr.bf16.mxu0 %v6479_v56  ;;  %v6545_v3 = vld [vmem:[#allocation5 + $0xbe4] ss:$16 sps:$4 sm:$0xff]   ;;  %v6548_v56 = vld [vmem:[#allocation5 + $0xbec] ss:$16 sps:$4 sm:$0xff]  }
 0x268   :  { %2756 = vmatprep.subr.bf16.mxu1 %v6482_v60  ;;  %v6543_v60 = vld [vmem:[#allocation5 + $0xbe0] ss:$16 sps:$4 sm:$0xff]  }
 0x26a   :  { %2716 = vmatpush2.bf16.msra.mxu0 %v6477_v61  ;;  %v6546_v61 = vld [vmem:[#allocation5 + $0xbe8] ss:$16 sps:$4 sm:$0xff]  }
 0x26b   :  { %2757 = vmatpush2.bf16.msra.mxu1 %v6480_v0  ;;  %2717 = vmatprep.subr.bf16.mxu0 %v6485_v2  ;;  %v6551_v0 = vld [vmem:[#allocation5 + $0xbc4] ss:$16 sps:$4 sm:$0xff]   ;;  %v6554_v2 = vld [vmem:[#allocation5 + $0xbcc] ss:$16 sps:$4 sm:$0xff]  }
 0x26c   :  { %2758 = vmatprep.subr.bf16.mxu1 %v6488_v4  ;;  %v6549_v4 = vld [vmem:[#allocation5 + $0xbc0] ss:$16 sps:$4 sm:$0xff]  }
 0x26e   :  { %2718 = vmatpush2.bf16.msra.mxu0 %v6483_v5  ;;  %v6552_v5 = vld [vmem:[#allocation5 + $0xbc8] ss:$16 sps:$4 sm:$0xff]  }
 0x26f   :  { %2759 = vmatpush2.bf16.msra.mxu1 %v6486_v6  ;;  %2719 = vmatprep.subr.bf16.mxu0 %v6491_v7  ;;  %v6557_v6 = vld [vmem:[#allocation5 + $0xba4] ss:$16 sps:$4 sm:$0xff]   ;;  %v6560_v7 = vld [vmem:[#allocation5 + $0xbac] ss:$16 sps:$4 sm:$0xff]  }
 0x270   :  { %2760 = vmatprep.subr.bf16.mxu1 %v6494_v12  ;;  %v6555_v12 = vld [vmem:[#allocation5 + $0xba0] ss:$16 sps:$4 sm:$0xff]  }
 0x272   :  { %2720 = vmatpush2.bf16.msra.mxu0 %v6489_v8  ;;  %v6558_v8 = vld [vmem:[#allocation5 + $0xba8] ss:$16 sps:$4 sm:$0xff]  }
 0x273   :  { %2761 = vmatpush2.bf16.msra.mxu1 %v6492_v9  ;;  %3172 = vmatprep.subr.bf16.mxu0 %v6497_v10  ;;  %v6563_v9 = vld [vmem:[#allocation5 + $0xb84] ss:$16 sps:$4 sm:$0xff]   ;;  %v6566_v10 = vld [vmem:[#allocation5 + $0xb8c] ss:$16 sps:$4 sm:$0xff]  }
 0x274   :  { %3213 = vmatprep.subr.bf16.mxu1 %v6500_v11  ;;  %v6561_v11 = vld [vmem:[#allocation5 + $0xb80] ss:$16 sps:$4 sm:$0xff]  }
 0x275   :  { %v1278_v19 = vpop.f32.mrf.mxu0  ;;  %v1319_v20 = vpop.f32.mrf.mxu1  ;;  %2722 = vmatmul.mubr.bf16.vlgmr.msra.gmra.mxu0 %v2302_v14 }
 0x276   :  { %v7477_v27 = vadd.f32 %v1278_v19, %v7462_v58  ;;  %v7480_v29 = vadd.f32 %v1319_v20, %v7464_v59  ;;  %2763 = vmatmul.mubr.bf16.vlgmr.msra.gmra.mxu1 %v2302_v14  ;;  %3173 = vmatpush1.bf16.msra.mxu0 %v6495_v13  ;;  %v6512_v58 = vld [vmem:[#allocation5 + $0xaac] ss:$16 sps:$4 sm:$0xff]   ;;  %v6564_v13 = vld [vmem:[#allocation5 + $0xb88] ss:$16 sps:$4 sm:$0xff]   ;;  %v6569_v14 = vld [vmem:[#allocation5 + $0xb64] ss:$16 sps:$4 sm:$0xff]  }
 0x277   :  { %3204 = vmatprep.mubr.bf16.mxu0 %v2786_v22  ;;  %3214 = vmatpush1.bf16.msra.mxu1 %v6498_v15  ;;  %v1280_v30 = vpop.f32.mrf.mxu0  ;;  %v1321_v32 = vpop.f32.mrf.mxu1  ;;  %v6572_v15 = vld [vmem:[#allocation5 + $0xb6c] ss:$16 sps:$4 sm:$0xff]   ;;  %v6570_v19 = vld [vmem:[#allocation5 + $0xb68] ss:$16 sps:$4 sm:$0xff]   ;;  %v6575_v20 = vld [vmem:[#allocation5 + $0xb44] ss:$16 sps:$4 sm:$0xff]  }
 0x278   :  { %3245 = vmatprep.mubr.bf16.mxu1 %v2786_v22  ;;  %v7483_v36 = vadd.f32 %v1280_v30, %v7468_v1  ;;  %v7486_v17 = vadd.f32 %v1321_v32, %v7470_v63  ;;  %3174 = vmatprep.subr.bf16.mxu0 %v6503_v18  ;;  %v6513_v1 = vld [vmem:[#allocation5 + $0xa80] ss:$16 sps:$4 sm:$0xff]   ;;  %v6516_v63 = vld [vmem:[#allocation5 + $0xa88] ss:$16 sps:$4 sm:$0xff]   ;;  %v6578_v22 = vld [vmem:[#allocation5 + $0xb4c] ss:$16 sps:$4 sm:$0xff]  }
 0x279   :  { %v1282_v59 = vpop.f32.mrf.mxu0  ;;  %v1323_v37 = vpop.f32.mrf.mxu1  ;;  %3215 = vmatprep.subr.bf16.mxu1 %v6506_v26  ;;  %v6567_v18 = vld [vmem:[#allocation5 + $0xb60] ss:$16 sps:$4 sm:$0xff]   ;;  %v6581_v30 = vld [vmem:[#allocation5 + $0xb24] ss:$16 sps:$4 sm:$0xff]   ;;  %v6584_v32 = vld [vmem:[#allocation5 + $0xb2c] ss:$16 sps:$4 sm:$0xff]  }
 0x27a   :  { %3175 = vmatpush1.bf16.msra.mxu0 %v6501_v16  ;;  %v6573_v26 = vld [vmem:[#allocation5 + $0xb40] ss:$16 sps:$4 sm:$0xff]   ;;  %v6576_v16 = vld [vmem:[#allocation5 + $0xb48] ss:$16 sps:$4 sm:$0xff]   ;;  %v6590_v59 = vld [vmem:[#allocation5 + $0xb0c] ss:$16 sps:$4 sm:$0xff]  }
 0x27b   :  { %3216 = vmatpush1.bf16.msra.mxu1 %v6504_v33  ;;  %v1283_v28 = vpop.f32.mrf.mxu0  ;;  %v1324_v31 = vpop.f32.mrf.mxu1  ;;  %3176 = vmatprep.subr.bf16.mxu0 %v6509_v35  ;;  %v6579_v33 = vld [vmem:[#allocation5 + $0xb20] ss:$16 sps:$4 sm:$0xff]   ;;  %v6582_v35 = vld [vmem:[#allocation5 + $0xb28] ss:$16 sps:$4 sm:$0xff]  }
 0x27c   :  { %3217 = vmatprep.subr.bf16.mxu1 %v6512_v58  ;;  %v6587_v58 = vld [vmem:[#allocation5 + $0xb04] ss:$16 sps:$4 sm:$0xff]   ;;  %v6585_v37 = vld [vmem:[#allocation5 + $0xb00] ss:$16 sps:$4 sm:$0xff]   ;;  %v6596_v31 = vld [vmem:[#allocation5 + $0xcec] ss:$16 sps:$4 sm:$0xff]  }
 0x27d   :  { %v6593_v28 = vld [vmem:[#allocation5 + $0xce4] ss:$16 sps:$4 sm:$0xff]  }
 0x27e   :  { %3177 = vmatpush1.bf16.msra.mxu0 %v6507_v38  ;;  %v6588_v38 = vld [vmem:[#allocation5 + $0xb08] ss:$16 sps:$4 sm:$0xff]  }
 0x27f   :  { %3218 = vmatpush1.bf16.msra.mxu1 %v6510_v39  ;;  %3178 = vmatprep.subr.bf16.mxu0 %v6515_v40  ;;  %v6591_v39 = vld [vmem:[#allocation5 + $0xce0] ss:$16 sps:$4 sm:$0xff]   ;;  %v2785_v40 = vpack.c.bf16 %v7436_v21, %v7436_v21 }
 0x280   :  { %3219 = vmatprep.subr.bf16.mxu1 %v6518_v41  ;;  %v6594_v41 = vld [vmem:[#allocation5 + $0xce8] ss:$16 sps:$4 sm:$0xff]  }
 0x282   :  { %3179 = vmatpush1.bf16.msra.mxu0 %v6513_v1  ;;  %v6599_v1 = vld [vmem:[#allocation5 + $0xcc4] ss:$16 sps:$4 sm:$0xff]  }
 0x283   :  { %3220 = vmatpush1.bf16.msra.mxu1 %v6516_v63  ;;  %3180 = vmatprep.subr.bf16.mxu0 %v6521_v42  ;;  %v3269_v42 = vpack.c.bf16 %v7439_v23, %v7439_v23 }
 0x284   :  { %3221 = vmatprep.subr.bf16.mxu1 %v6524_v51  ;;  %v6602_v51 = vld [vmem:[#allocation5 + $0xccc] ss:$16 sps:$4 sm:$0xff]  }
 0x286   :  { %3181 = vmatpush1.bf16.msra.mxu0 %v6519_v43 }
 0x287   :  { %3222 = vmatpush1.bf16.msra.mxu1 %v6522_v62  ;;  %3182 = vmatprep.subr.bf16.mxu0 %v6527_v44  ;;  %v6597_v44 = vld [vmem:[#allocation5 + $0xcc0] ss:$16 sps:$4 sm:$0xff]  }
 0x288   :  { %3223 = vmatprep.subr.bf16.mxu1 %v6530_v45 }
 0x28a   :  { %3183 = vmatpush1.bf16.msra.mxu0 %v6525_v46  ;;  %v6600_v46 = vld [vmem:[#allocation5 + $0xcc8] ss:$16 sps:$4 sm:$0xff]  }
 0x28b   :  { %3224 = vmatpush1.bf16.msra.mxu1 %v6528_v47  ;;  %3184 = vmatprep.subr.bf16.mxu0 %v6533_v48  ;;  %v6605_v47 = vld [vmem:[#allocation5 + $0xca4] ss:$16 sps:$4 sm:$0xff]  }
 0x28c   :  { %3225 = vmatprep.subr.bf16.mxu1 %v6536_v49 }
 0x28e   :  { %3185 = vmatpush1.bf16.msra.mxu0 %v6531_v50 }
 0x28f   :  { %3226 = vmatpush1.bf16.msra.mxu1 %v6534_v52  ;;  %3186 = vmatprep.subr.bf16.mxu0 %v6539_v53 }
 0x290   :  { %3227 = vmatprep.subr.bf16.mxu1 %v6542_v57  ;;  %v6606_v57 = vld [vmem:[#allocation5 + $0xca8] ss:$16 sps:$4 sm:$0xff]  }
 0x292   :  { %3187 = vmatpush1.bf16.msra.mxu0 %v6537_v54  ;;  %v6611_v54 = vld [vmem:[#allocation5 + $0xc84] ss:$16 sps:$4 sm:$0xff]  }
 0x293   :  { %3228 = vmatpush1.bf16.msra.mxu1 %v6540_v55  ;;  %3188 = vmatprep.subr.bf16.mxu0 %v6545_v3  ;;  %v6609_v3 = vld [vmem:[#allocation5 + $0xc80] ss:$16 sps:$4 sm:$0xff]  }
 0x294   :  { %3229 = vmatprep.subr.bf16.mxu1 %v6548_v56  ;;  %v6612_v56 = vld [vmem:[#allocation5 + $0xc88] ss:$16 sps:$4 sm:$0xff]  }
 0x296   :  { %3189 = vmatpush2.bf16.msra.mxu0 %v6543_v60  ;;  %v6620_v60 = vld [vmem:[#allocation5 + $0xc6c] ss:$16 sps:$4 sm:$0xff]  }
 0x297   :  { %3230 = vmatpush2.bf16.msra.mxu1 %v6546_v61  ;;  %3190 = vmatprep.subr.bf16.mxu0 %v6551_v0  ;;  %v6615_v61 = vld [vmem:[#allocation5 + $0xc60] ss:$16 sps:$4 sm:$0xff]   ;;  %v6618_v0 = vld [vmem:[#allocation5 + $0xc68] ss:$16 sps:$4 sm:$0xff]  }
 0x298   :  { %3231 = vmatprep.subr.bf16.mxu1 %v6554_v2  ;;  %v6623_v2 = vld [vmem:[#allocation5 + $0xc44] ss:$16 sps:$4 sm:$0xff]  }
 0x29a   :  { %3191 = vmatpush2.bf16.msra.mxu0 %v6549_v4  ;;  %v6626_v4 = vld [vmem:[#allocation5 + $0xc4c] ss:$16 sps:$4 sm:$0xff]  }
 0x29b   :  { %3232 = vmatpush2.bf16.msra.mxu1 %v6552_v5  ;;  %3192 = vmatprep.subr.bf16.mxu0 %v6557_v6  ;;  %v6621_v5 = vld [vmem:[#allocation5 + $0xc40] ss:$16 sps:$4 sm:$0xff]   ;;  %v6624_v6 = vld [vmem:[#allocation5 + $0xc48] ss:$16 sps:$4 sm:$0xff]  }
 0x29c   :  { %3233 = vmatprep.subr.bf16.mxu1 %v6560_v7  ;;  %v6629_v7 = vld [vmem:[#allocation5 + $0xc24] ss:$16 sps:$4 sm:$0xff]  }
 0x29e   :  { %3193 = vmatpush2.bf16.msra.mxu0 %v6555_v12  ;;  %v6632_v12 = vld [vmem:[#allocation5 + $0xc2c] ss:$16 sps:$4 sm:$0xff]  }
 0x29f   :  { %3234 = vmatpush2.bf16.msra.mxu1 %v6558_v8  ;;  %3194 = vmatprep.subr.bf16.mxu0 %v6563_v9  ;;  %v6627_v8 = vld [vmem:[#allocation5 + $0xc20] ss:$16 sps:$4 sm:$0xff]   ;;  %v6630_v9 = vld [vmem:[#allocation5 + $0xc28] ss:$16 sps:$4 sm:$0xff]  }
 0x2a0   :  { %3235 = vmatprep.subr.bf16.mxu1 %v6566_v10  ;;  %v6635_v10 = vld [vmem:[#allocation5 + $0xc04] ss:$16 sps:$4 sm:$0xff]  }
 0x2a2   :  { %3195 = vmatpush2.bf16.msra.mxu0 %v6561_v11  ;;  %v6638_v11 = vld [vmem:[#allocation5 + $0xc0c] ss:$16 sps:$4 sm:$0xff]  }
 0x2a3   :  { %3236 = vmatpush2.bf16.msra.mxu1 %v6564_v13  ;;  %3196 = vmatprep.subr.bf16.mxu0 %v6569_v14  ;;  %v6633_v13 = vld [vmem:[#allocation5 + $0xc00] ss:$16 sps:$4 sm:$0xff]   ;;  %v6636_v14 = vld [vmem:[#allocation5 + $0xc08] ss:$16 sps:$4 sm:$0xff]  }
 0x2a4   :  { %3237 = vmatprep.subr.bf16.mxu1 %v6572_v15  ;;  %v6641_v15 = vld [vmem:[#allocation5 + $0xde4] ss:$16 sps:$4 sm:$0xff]  }
 0x2a6   :  { %3197 = vmatpush2.bf16.msra.mxu0 %v6567_v18  ;;  %v6644_v18 = vld [vmem:[#allocation5 + $0xdec] ss:$16 sps:$4 sm:$0xff]  }
 0x2a7   :  { %3238 = vmatpush2.bf16.msra.mxu1 %v6570_v19  ;;  %3198 = vmatprep.subr.bf16.mxu0 %v6575_v20  ;;  %v6639_v19 = vld [vmem:[#allocation5 + $0xde0] ss:$16 sps:$4 sm:$0xff]   ;;  %v6642_v20 = vld [vmem:[#allocation5 + $0xde8] ss:$16 sps:$4 sm:$0xff]  }
 0x2a8   :  { %3239 = vmatprep.subr.bf16.mxu1 %v6578_v22  ;;  %v6647_v22 = vld [vmem:[#allocation5 + $0xdc4] ss:$16 sps:$4 sm:$0xff]  }
 0x2aa   :  { %3199 = vmatpush2.bf16.msra.mxu0 %v6573_v26  ;;  %v6650_v26 = vld [vmem:[#allocation5 + $0xdcc] ss:$16 sps:$4 sm:$0xff]  }
 0x2ab   :  { %3240 = vmatpush2.bf16.msra.mxu1 %v6576_v16  ;;  %3200 = vmatprep.subr.bf16.mxu0 %v6581_v30  ;;  %v6645_v16 = vld [vmem:[#allocation5 + $0xdc0] ss:$16 sps:$4 sm:$0xff]   ;;  %v6648_v30 = vld [vmem:[#allocation5 + $0xdc8] ss:$16 sps:$4 sm:$0xff]  }
 0x2ac   :  { %3241 = vmatprep.subr.bf16.mxu1 %v6584_v32  ;;  %v6653_v32 = vld [vmem:[#allocation5 + $0xda4] ss:$16 sps:$4 sm:$0xff]  }
 0x2ae   :  { %3201 = vmatpush2.bf16.msra.mxu0 %v6579_v33  ;;  %v6656_v33 = vld [vmem:[#allocation5 + $0xdac] ss:$16 sps:$4 sm:$0xff]  }
 0x2af   :  { %3242 = vmatpush2.bf16.msra.mxu1 %v6582_v35  ;;  %3202 = vmatprep.subr.bf16.mxu0 %v6587_v58  ;;  %v6651_v35 = vld [vmem:[#allocation5 + $0xda0] ss:$16 sps:$4 sm:$0xff]   ;;  %v6654_v58 = vld [vmem:[#allocation5 + $0xda8] ss:$16 sps:$4 sm:$0xff]  }
 0x2b0   :  { %3243 = vmatprep.subr.bf16.mxu1 %v6590_v59  ;;  %v6659_v59 = vld [vmem:[#allocation5 + $0xd84] ss:$16 sps:$4 sm:$0xff]  }
 0x2b2   :  { %3203 = vmatpush2.bf16.msra.mxu0 %v6585_v37  ;;  %v6662_v37 = vld [vmem:[#allocation5 + $0xd8c] ss:$16 sps:$4 sm:$0xff]  }
 0x2b3   :  { %3244 = vmatpush2.bf16.msra.mxu1 %v6588_v38  ;;  %3655 = vmatprep.subr.bf16.mxu0 %v6593_v28  ;;  %v6657_v38 = vld [vmem:[#allocation5 + $0xd80] ss:$16 sps:$4 sm:$0xff]   ;;  %v6660_v28 = vld [vmem:[#allocation5 + $0xd88] ss:$16 sps:$4 sm:$0xff]  }
 0x2b4   :  { %3696 = vmatprep.subr.bf16.mxu1 %v6596_v31  ;;  %v6665_v31 = vld [vmem:[#allocation5 + $0xd64] ss:$16 sps:$4 sm:$0xff]  }
 0x2b5   :  { %v1757_v63 = vpop.f32.mrf.mxu0  ;;  %3205 = vmatmul.mubr.bf16.vlgmr.msra.gmra.mxu0 %v2785_v40 }
 0x2b6   :  { %v7493_v43 = vadd.f32 %v1757_v63, %v7477_v27  ;;  %v1798_v62 = vpop.f32.mrf.mxu1  ;;  %3246 = vmatmul.mubr.bf16.vlgmr.msra.gmra.mxu1 %v2785_v40  ;;  %3656 = vmatpush1.bf16.msra.mxu0 %v6591_v39  ;;  %v6608_v27 = vld [vmem:[#allocation5 + $0xcac] ss:$16 sps:$4 sm:$0xff]   ;;  %v6663_v40 = vld [vmem:[#allocation5 + $0xd60] ss:$16 sps:$4 sm:$0xff]  }
 0x2b7   :  { %v7496_v45 = vadd.f32 %v1798_v62, %v7480_v29  ;;  %3687 = vmatprep.mubr.bf16.mxu0 %v3269_v42  ;;  %3697 = vmatpush1.bf16.msra.mxu1 %v6594_v41  ;;  %v1759_v21 = vpop.f32.mrf.mxu0  ;;  %v6603_v29 = vld [vmem:[#allocation5 + $0xca0] ss:$16 sps:$4 sm:$0xff]   ;;  %v6668_v39 = vld [vmem:[#allocation5 + $0xd6c] ss:$16 sps:$4 sm:$0xff]   ;;  %v6666_v41 = vld [vmem:[#allocation5 + $0xd68] ss:$16 sps:$4 sm:$0xff]  }
 0x2b8   :  { %3728 = vmatprep.mubr.bf16.mxu1 %v3269_v42  ;;  %v7499_v48 = vadd.f32 %v1759_v21, %v7483_v36  ;;  %v1800_v23 = vpop.f32.mrf.mxu1  ;;  %3657 = vmatprep.subr.bf16.mxu0 %v6599_v1  ;;  %v6614_v36 = vld [vmem:[#allocation5 + $0xc8c] ss:$16 sps:$4 sm:$0xff]   ;;  %v6671_v1 = vld [vmem:[#allocation5 + $0xd44] ss:$16 sps:$4 sm:$0xff]   ;;  %v6669_v42 = vld [vmem:[#allocation5 + $0xd40] ss:$16 sps:$4 sm:$0xff]  }
 0x2b9   :  { %v7502_v49 = vadd.f32 %v1800_v23, %v7486_v17  ;;  %v1761_v50 = vpop.f32.mrf.mxu0  ;;  %3698 = vmatprep.subr.bf16.mxu1 %v6602_v51  ;;  %v6617_v17 = vld [vmem:[#allocation5 + $0xc64] ss:$16 sps:$4 sm:$0xff]   ;;  %v6674_v63 = vld [vmem:[#allocation5 + $0xd4c] ss:$16 sps:$4 sm:$0xff]   ;;  %v6672_v51 = vld [vmem:[#allocation5 + $0xd48] ss:$16 sps:$4 sm:$0xff]  }
 0x2ba   :  { %v1802_v52 = vpop.f32.mrf.mxu1  ;;  %3658 = vmatpush1.bf16.msra.mxu0 %v6597_v44  ;;  %v6677_v62 = vld [vmem:[#allocation5 + $0xd24] ss:$16 sps:$4 sm:$0xff]   ;;  %v6680_v44 = vld [vmem:[#allocation5 + $0xd2c] ss:$16 sps:$4 sm:$0xff]   ;;  %v6675_v21 = vld [vmem:[#allocation5 + $0xd20] ss:$16 sps:$4 sm:$0xff]  }
 0x2bb   :  { %3699 = vmatpush1.bf16.msra.mxu1 %v6600_v46  ;;  %v1762_v53 = vpop.f32.mrf.mxu0  ;;  %3659 = vmatprep.subr.bf16.mxu0 %v6605_v47  ;;  %v6678_v46 = vld [vmem:[#allocation5 + $0xd28] ss:$16 sps:$4 sm:$0xff]   ;;  %v6683_v47 = vld [vmem:[#allocation5 + $0xd04] ss:$16 sps:$4 sm:$0xff]   ;;  %v6686_v23 = vld [vmem:[#allocation5 + $0xd0c] ss:$16 sps:$4 sm:$0xff]  }
 0x2bc   :  { %v1803_v55 = vpop.f32.mrf.mxu1  ;;  %3700 = vmatprep.subr.bf16.mxu1 %v6608_v27  ;;  %v6681_v27 = vld [vmem:[#allocation5 + $0xd00] ss:$16 sps:$4 sm:$0xff]   ;;  %v6684_v50 = vld [vmem:[#allocation5 + $0xd08] ss:$16 sps:$4 sm:$0xff]   ;;  %v6689_v52 = vld [vmem:[#allocation5 + $0xee4] ss:$16 sps:$4 sm:$0xff]  }
 0x2bd   :  { %v6687_v53 = vld [vmem:[#allocation5 + $0xee0] ss:$16 sps:$4 sm:$0xff]   ;;  %v6695_v55 = vld [vmem:[#allocation5 + $0xec4] ss:$16 sps:$4 sm:$0xff]  }
 0x2be   :  { %3660 = vmatpush1.bf16.msra.mxu0 %v6603_v29  ;;  %v6692_v29 = vld [vmem:[#allocation5 + $0xeec] ss:$16 sps:$4 sm:$0xff]  }
 0x2bf   :  { %3701 = vmatpush1.bf16.msra.mxu1 %v6606_v57  ;;  %3661 = vmatprep.subr.bf16.mxu0 %v6611_v54  ;;  %v3268_v57 = vpack.c.bf16 %v7442_v24, %v7442_v24  ;;  %v6690_v54 = vld [vmem:[#allocation5 + $0xee8] ss:$16 sps:$4 sm:$0xff]  }
 0x2c0   :  { %3702 = vmatprep.subr.bf16.mxu1 %v6614_v36 }
 0x2c2   :  { %3662 = vmatpush1.bf16.msra.mxu0 %v6609_v3  ;;  %v3752_v3 = vpack.c.bf16 %v7445_v25, %v7445_v25 }
 0x2c3   :  { %3703 = vmatpush1.bf16.msra.mxu1 %v6612_v56  ;;  %3663 = vmatprep.subr.bf16.mxu0 %v6617_v17  ;;  %v6698_v56 = vld [vmem:[#allocation5 + $0xecc] ss:$16 sps:$4 sm:$0xff]  }
 0x2c4   :  { %3704 = vmatprep.subr.bf16.mxu1 %v6620_v60 }
 0x2c6   :  { %3664 = vmatpush1.bf16.msra.mxu0 %v6615_v61  ;;  %v6693_v61 = vld [vmem:[#allocation5 + $0xec0] ss:$16 sps:$4 sm:$0xff]  }
 0x2c7   :  { %3705 = vmatpush1.bf16.msra.mxu1 %v6618_v0  ;;  %3665 = vmatprep.subr.bf16.mxu0 %v6623_v2  ;;  %v6696_v2 = vld [vmem:[#allocation5 + $0xec8] ss:$16 sps:$4 sm:$0xff]  }
 0x2c8   :  { %3706 = vmatprep.subr.bf16.mxu1 %v6626_v4  ;;  %v6701_v4 = vld [vmem:[#allocation5 + $0xea4] ss:$16 sps:$4 sm:$0xff]  }
 0x2ca   :  { %3666 = vmatpush1.bf16.msra.mxu0 %v6621_v5 }
 0x2cb   :  { %3707 = vmatpush1.bf16.msra.mxu1 %v6624_v6  ;;  %3667 = vmatprep.subr.bf16.mxu0 %v6629_v7 }
 0x2cc   :  { %3708 = vmatprep.subr.bf16.mxu1 %v6632_v12 }
 0x2ce   :  { %3668 = vmatpush1.bf16.msra.mxu0 %v6627_v8 }
 0x2cf   :  { %3709 = vmatpush1.bf16.msra.mxu1 %v6630_v9  ;;  %3669 = vmatprep.subr.bf16.mxu0 %v6635_v10  ;;  %v6702_v9 = vld [vmem:[#allocation5 + $0xea8] ss:$16 sps:$4 sm:$0xff]   ;;  %v6707_v10 = vld [vmem:[#allocation5 + $0xe84] ss:$16 sps:$4 sm:$0xff]  }
 0x2d0   :  { %3710 = vmatprep.subr.bf16.mxu1 %v6638_v11 }
 0x2d2   :  { %3670 = vmatpush1.bf16.msra.mxu0 %v6633_v13  ;;  %v6705_v13 = vld [vmem:[#allocation5 + $0xe80] ss:$16 sps:$4 sm:$0xff]  }
 0x2d3   :  { %3711 = vmatpush1.bf16.msra.mxu1 %v6636_v14  ;;  %3671 = vmatprep.subr.bf16.mxu0 %v6641_v15  ;;  %v6708_v14 = vld [vmem:[#allocation5 + $0xe88] ss:$16 sps:$4 sm:$0xff]   ;;  %v6716_v15 = vld [vmem:[#allocation5 + $0xe6c] ss:$16 sps:$4 sm:$0xff]  }
 0x2d4   :  { %3712 = vmatprep.subr.bf16.mxu1 %v6644_v18  ;;  %v6711_v18 = vld [vmem:[#allocation5 + $0xe60] ss:$16 sps:$4 sm:$0xff]  }
 0x2d6   :  { %3672 = vmatpush2.bf16.msra.mxu0 %v6639_v19  ;;  %v6714_v19 = vld [vmem:[#allocation5 + $0xe68] ss:$16 sps:$4 sm:$0xff]  }
 0x2d7   :  { %3713 = vmatpush2.bf16.msra.mxu1 %v6642_v20  ;;  %3673 = vmatprep.subr.bf16.mxu0 %v6647_v22  ;;  %v6719_v20 = vld [vmem:[#allocation5 + $0xe44] ss:$16 sps:$4 sm:$0xff]   ;;  %v6722_v22 = vld [vmem:[#allocation5 + $0xe4c] ss:$16 sps:$4 sm:$0xff]  }
 0x2d8   :  { %3714 = vmatprep.subr.bf16.mxu1 %v6650_v26  ;;  %v6717_v26 = vld [vmem:[#allocation5 + $0xe40] ss:$16 sps:$4 sm:$0xff]  }
 0x2da   :  { %3674 = vmatpush2.bf16.msra.mxu0 %v6645_v16  ;;  %v6720_v16 = vld [vmem:[#allocation5 + $0xe48] ss:$16 sps:$4 sm:$0xff]  }
 0x2db   :  { %3715 = vmatpush2.bf16.msra.mxu1 %v6648_v30  ;;  %3675 = vmatprep.subr.bf16.mxu0 %v6653_v32  ;;  %v6725_v30 = vld [vmem:[#allocation5 + $0xe24] ss:$16 sps:$4 sm:$0xff]   ;;  %v6728_v32 = vld [vmem:[#allocation5 + $0xe2c] ss:$16 sps:$4 sm:$0xff]  }
 0x2dc   :  { %3716 = vmatprep.subr.bf16.mxu1 %v6656_v33  ;;  %v6723_v33 = vld [vmem:[#allocation5 + $0xe20] ss:$16 sps:$4 sm:$0xff]  }
 0x2de   :  { %3676 = vmatpush2.bf16.msra.mxu0 %v6651_v35  ;;  %v6726_v35 = vld [vmem:[#allocation5 + $0xe28] ss:$16 sps:$4 sm:$0xff]  }
 0x2df   :  { %3717 = vmatpush2.bf16.msra.mxu1 %v6654_v58  ;;  %3677 = vmatprep.subr.bf16.mxu0 %v6659_v59  ;;  %v6731_v58 = vld [vmem:[#allocation5 + $0xe04] ss:$16 sps:$4 sm:$0xff]   ;;  %v6734_v59 = vld [vmem:[#allocation5 + $0xe0c] ss:$16 sps:$4 sm:$0xff]  }
 0x2e0   :  { %3718 = vmatprep.subr.bf16.mxu1 %v6662_v37  ;;  %v6729_v37 = vld [vmem:[#allocation5 + $0xe00] ss:$16 sps:$4 sm:$0xff]  }
 0x2e2   :  { %3678 = vmatpush2.bf16.msra.mxu0 %v6657_v38  ;;  %v6732_v38 = vld [vmem:[#allocation5 + $0xe08] ss:$16 sps:$4 sm:$0xff]  }
 0x2e3   :  { %3719 = vmatpush2.bf16.msra.mxu1 %v6660_v28  ;;  %3679 = vmatprep.subr.bf16.mxu0 %v6665_v31  ;;  %v6737_v28 = vld [vmem:[#allocation5 + $0xfe4] ss:$16 sps:$4 sm:$0xff]   ;;  %v6740_v31 = vld [vmem:[#allocation5 + $0xfec] ss:$16 sps:$4 sm:$0xff]  }
 0x2e4   :  { %3720 = vmatprep.subr.bf16.mxu1 %v6668_v39  ;;  %v6735_v39 = vld [vmem:[#allocation5 + $0xfe0] ss:$16 sps:$4 sm:$0xff]  }
 0x2e6   :  { %3680 = vmatpush2.bf16.msra.mxu0 %v6663_v40  ;;  %v6738_v40 = vld [vmem:[#allocation5 + $0xfe8] ss:$16 sps:$4 sm:$0xff]  }
 0x2e7   :  { %3721 = vmatpush2.bf16.msra.mxu1 %v6666_v41  ;;  %3681 = vmatprep.subr.bf16.mxu0 %v6671_v1  ;;  %v6743_v41 = vld [vmem:[#allocation5 + $0xfc4] ss:$16 sps:$4 sm:$0xff]   ;;  %v6746_v1 = vld [vmem:[#allocation5 + $0xfcc] ss:$16 sps:$4 sm:$0xff]  }
 0x2e8   :  { %3722 = vmatprep.subr.bf16.mxu1 %v6674_v63  ;;  %v6741_v63 = vld [vmem:[#allocation5 + $0xfc0] ss:$16 sps:$4 sm:$0xff]  }
 0x2ea   :  { %3682 = vmatpush2.bf16.msra.mxu0 %v6669_v42  ;;  %v6744_v42 = vld [vmem:[#allocation5 + $0xfc8] ss:$16 sps:$4 sm:$0xff]  }
 0x2eb   :  { %3723 = vmatpush2.bf16.msra.mxu1 %v6672_v51  ;;  %3683 = vmatprep.subr.bf16.mxu0 %v6677_v62  ;;  %v6749_v51 = vld [vmem:[#allocation5 + $0xfa4] ss:$16 sps:$4 sm:$0xff]   ;;  %v6752_v62 = vld [vmem:[#allocation5 + $0xfac] ss:$16 sps:$4 sm:$0xff]  }
 0x2ec   :  { %3724 = vmatprep.subr.bf16.mxu1 %v6680_v44  ;;  %v6747_v44 = vld [vmem:[#allocation5 + $0xfa0] ss:$16 sps:$4 sm:$0xff]  }
 0x2ee   :  { %3684 = vmatpush2.bf16.msra.mxu0 %v6675_v21  ;;  %v6750_v21 = vld [vmem:[#allocation5 + $0xfa8] ss:$16 sps:$4 sm:$0xff]  }
 0x2ef   :  { %3725 = vmatpush2.bf16.msra.mxu1 %v6678_v46  ;;  %3685 = vmatprep.subr.bf16.mxu0 %v6683_v47  ;;  %v6755_v46 = vld [vmem:[#allocation5 + $0xf84] ss:$16 sps:$4 sm:$0xff]   ;;  %v6758_v47 = vld [vmem:[#allocation5 + $0xf8c] ss:$16 sps:$4 sm:$0xff]  }
 0x2f0   :  { %3726 = vmatprep.subr.bf16.mxu1 %v6686_v23  ;;  %v6753_v23 = vld [vmem:[#allocation5 + $0xf80] ss:$16 sps:$4 sm:$0xff]  }
 0x2f2   :  { %3686 = vmatpush2.bf16.msra.mxu0 %v6681_v27  ;;  %v6756_v27 = vld [vmem:[#allocation5 + $0xf88] ss:$16 sps:$4 sm:$0xff]  }
 0x2f3   :  { %3727 = vmatpush2.bf16.msra.mxu1 %v6684_v50  ;;  %4138 = vmatprep.subr.bf16.mxu0 %v6689_v52  ;;  %v6761_v50 = vld [vmem:[#allocation5 + $0xf64] ss:$16 sps:$4 sm:$0xff]   ;;  %v6764_v52 = vld [vmem:[#allocation5 + $0xf6c] ss:$16 sps:$4 sm:$0xff]  }
 0x2f4   :  { %4179 = vmatprep.subr.bf16.mxu1 %v6692_v29  ;;  %v6759_v29 = vld [vmem:[#allocation5 + $0xf60] ss:$16 sps:$4 sm:$0xff]  }
 0x2f5   :  { %v2240_v36 = vpop.f32.mrf.mxu0  ;;  %3688 = vmatmul.mubr.bf16.vlgmr.msra.gmra.mxu0 %v3268_v57 }
 0x2f6   :  { %v7509_v17 = vadd.f32 %v2240_v36, %v7493_v43  ;;  %v2281_v60 = vpop.f32.mrf.mxu1  ;;  %3729 = vmatmul.mubr.bf16.vlgmr.msra.gmra.mxu1 %v3268_v57  ;;  %4139 = vmatpush1.bf16.msra.mxu0 %v6687_v53  ;;  %v6704_v43 = vld [vmem:[#allocation5 + $0xeac] ss:$16 sps:$4 sm:$0xff]   ;;  %v6762_v53 = vld [vmem:[#allocation5 + $0xf68] ss:$16 sps:$4 sm:$0xff]   ;;  %v6767_v57 = vld [vmem:[#allocation5 + $0xf44] ss:$16 sps:$4 sm:$0xff]  }
 0x2f7   :  { %v7512_v0 = vadd.f32 %v2281_v60, %v7496_v45  ;;  %4170 = vmatprep.mubr.bf16.mxu0 %v3752_v3  ;;  %4180 = vmatpush1.bf16.msra.mxu1 %v6690_v54  ;;  %v2242_v24 = vpop.f32.mrf.mxu0  ;;  %v6699_v45 = vld [vmem:[#allocation5 + $0xea0] ss:$16 sps:$4 sm:$0xff]   ;;  %v6770_v54 = vld [vmem:[#allocation5 + $0xf4c] ss:$16 sps:$4 sm:$0xff]   ;;  %v6768_v36 = vld [vmem:[#allocation5 + $0xf48] ss:$16 sps:$4 sm:$0xff]  }
 0x2f8   :  { %4211 = vmatprep.mubr.bf16.mxu1 %v3752_v3  ;;  %v7515_v5 = vadd.f32 %v2242_v24, %v7499_v48  ;;  %v2283_v25 = vpop.f32.mrf.mxu1  ;;  %4140 = vmatprep.subr.bf16.mxu0 %v6695_v55  ;;  %v6710_v48 = vld [vmem:[#allocation5 + $0xe8c] ss:$16 sps:$4 sm:$0xff]   ;;  %v6765_v55 = vld [vmem:[#allocation5 + $0xf40] ss:$16 sps:$4 sm:$0xff]   ;;  %v6773_v3 = vld [vmem:[#allocation5 + $0xf24] ss:$16 sps:$4 sm:$0xff]  }
 0x2f9   :  { %v7518_v6 = vadd.f32 %v2283_v25, %v7502_v49  ;;  %v2244_v7 = vpop.f32.mrf.mxu0  ;;  %4181 = vmatprep.subr.bf16.mxu1 %v6698_v56  ;;  %v6713_v49 = vld [vmem:[#allocation5 + $0xe64] ss:$16 sps:$4 sm:$0xff]   ;;  %v6776_v56 = vld [vmem:[#allocation5 + $0xf2c] ss:$16 sps:$4 sm:$0xff]   ;;  %v6771_v60 = vld [vmem:[#allocation5 + $0xf20] ss:$16 sps:$4 sm:$0xff]  }
 0x2fa   :  { %v2285_v12 = vpop.f32.mrf.mxu1  ;;  %4141 = vmatpush1.bf16.msra.mxu0 %v6693_v61  ;;  %v6774_v61 = vld [vmem:[#allocation5 + $0xf28] ss:$16 sps:$4 sm:$0xff]   ;;  %v6779_v24 = vld [vmem:[#allocation5 + $0xf04] ss:$16 sps:$4 sm:$0xff]  }
 0x2fb   :  { %4182 = vmatpush1.bf16.msra.mxu1 %v6696_v2  ;;  %v2245_v8 = vpop.f32.mrf.mxu0  ;;  %4142 = vmatprep.subr.bf16.mxu0 %v6701_v4  ;;  %v6782_v2 = vld [vmem:[#allocation5 + $0xf0c] ss:$16 sps:$4 sm:$0xff]   ;;  %v6777_v4 = vld [vmem:[#allocation5 + $0xf00] ss:$16 sps:$4 sm:$0xff]   ;;  %v6780_v25 = vld [vmem:[#allocation5 + $0xf08] ss:$16 sps:$4 sm:$0xff]  }
 0x2fc   :  { %v2286_v11 = vpop.f32.mrf.mxu1  ;;  %4183 = vmatprep.subr.bf16.mxu1 %v6704_v43  ;;  %v3751_v43 = vpack.c.bf16 %v7450_v34, %v7450_v34 }
 0x2fe   :  { %4143 = vmatpush1.bf16.msra.mxu0 %v6699_v45 }
 0x2ff   :  { %4184 = vmatpush1.bf16.msra.mxu1 %v6702_v9  ;;  %4144 = vmatprep.subr.bf16.mxu0 %v6707_v10 }
 0x300   :  { %4185 = vmatprep.subr.bf16.mxu1 %v6710_v48 }
 0x302   :  { %4145 = vmatpush1.bf16.msra.mxu0 %v6705_v13 }
 0x303   :  { %4186 = vmatpush1.bf16.msra.mxu1 %v6708_v14  ;;  %4146 = vmatprep.subr.bf16.mxu0 %v6713_v49 }
 0x304   :  { %4187 = vmatprep.subr.bf16.mxu1 %v6716_v15  ;;  %v6783_v15 = vld [vmem:[#allocation8 + $0x70] ss:$8 sps:$4 sm:$0xff]  }
 0x306   :  { %4147 = vmatpush1.bf16.msra.mxu0 %v6711_v18  ;;  %v6786_v18 = vld [vmem:[#allocation8 + $0x170] ss:$8 sps:$4 sm:$0xff]  }
 0x307   :  { %4188 = vmatpush1.bf16.msra.mxu1 %v6714_v19  ;;  %4148 = vmatprep.subr.bf16.mxu0 %v6719_v20  ;;  %v6788_v19 = vld [vmem:[#allocation8 + $0x174] ss:$8 sps:$4 sm:$0xff]   ;;  %v6791_v20 = vld [vmem:[#allocation8 + $0x64] ss:$8 sps:$4 sm:$0xff]  }
 0x308   :  { %4189 = vmatprep.subr.bf16.mxu1 %v6722_v22  ;;  %v6789_v22 = vld [vmem:[#allocation8 + $0x60] ss:$8 sps:$4 sm:$0xff]  }
 0x30a   :  { %4149 = vmatpush1.bf16.msra.mxu0 %v6717_v26  ;;  %v6797_v26 = vld [vmem:[#allocation8 + $0x54] ss:$8 sps:$4 sm:$0xff]  }
 0x30b   :  { %4190 = vmatpush1.bf16.msra.mxu1 %v6720_v16  ;;  %4150 = vmatprep.subr.bf16.mxu0 %v6725_v30  ;;  %v6795_v16 = vld [vmem:[#allocation8 + $0x50] ss:$8 sps:$4 sm:$0xff]  }
 0x30c   :  { %4191 = vmatprep.subr.bf16.mxu1 %v6728_v32  ;;  %v6798_v30 = vld [vmem:[#allocation8 + $0x150] ss:$8 sps:$4 sm:$0xff]   ;;  %v6803_v32 = vld [vmem:[#allocation8 + $0x44] ss:$8 sps:$4 sm:$0xff]  }
 0x30e   :  { %4151 = vmatpush1.bf16.msra.mxu0 %v6723_v33  ;;  %v6806_v33 = vld [vmem:[#allocation8 + $0x144] ss:$8 sps:$4 sm:$0xff]  }
 0x30f   :  { %4192 = vmatpush1.bf16.msra.mxu1 %v6726_v35  ;;  %4152 = vmatprep.subr.bf16.mxu0 %v6731_v58  ;;  %v6801_v35 = vld [vmem:[#allocation8 + $0x40] ss:$8 sps:$4 sm:$0xff]  }
 0x310   :  { %4193 = vmatprep.subr.bf16.mxu1 %v6734_v59  ;;  %v6804_v58 = vld [vmem:[#allocation8 + $0x140] ss:$8 sps:$4 sm:$0xff]   ;;  %v6809_v59 = vld [vmem:[#allocation8 + $0x34] ss:$8 sps:$4 sm:$0xff]  }
 0x312   :  { %4153 = vmatpush1.bf16.msra.mxu0 %v6729_v37  ;;  %v6812_v37 = vld [vmem:[#allocation8 + $0x134] ss:$8 sps:$4 sm:$0xff]  }
 0x313   :  { %4194 = vmatpush1.bf16.msra.mxu1 %v6732_v38  ;;  %4154 = vmatprep.subr.bf16.mxu0 %v6737_v28  ;;  %v6807_v38 = vld [vmem:[#allocation8 + $0x30] ss:$8 sps:$4 sm:$0xff]  }
 0x314   :  { %4195 = vmatprep.subr.bf16.mxu1 %v6740_v31  ;;  %v6810_v28 = vld [vmem:[#allocation8 + $0x130] ss:$8 sps:$4 sm:$0xff]   ;;  %v6815_v31 = vld [vmem:[#allocation8 + $0x24] ss:$8 sps:$4 sm:$0xff]  }
 0x316   :  { %4155 = vmatpush2.bf16.msra.mxu0 %v6735_v39  ;;  %v6818_v39 = vld [vmem:[#allocation8 + $0x124] ss:$8 sps:$4 sm:$0xff]  }
 0x317   :  { %4196 = vmatpush2.bf16.msra.mxu1 %v6738_v40  ;;  %4156 = vmatprep.subr.bf16.mxu0 %v6743_v41  ;;  %v6813_v40 = vld [vmem:[#allocation8 + $0x20] ss:$8 sps:$4 sm:$0xff]  }
 0x318   :  { %4197 = vmatprep.subr.bf16.mxu1 %v6746_v1  ;;  %v6816_v41 = vld [vmem:[#allocation8 + $0x120] ss:$8 sps:$4 sm:$0xff]   ;;  %v6821_v1 = vld [vmem:[#allocation8 + $0x14] ss:$8 sps:$4 sm:$0xff]  }
 0x31a   :  { %4157 = vmatpush2.bf16.msra.mxu0 %v6741_v63  ;;  %v6824_v63 = vld [vmem:[#allocation8 + $0x114] ss:$8 sps:$4 sm:$0xff]  }
 0x31b   :  { %4198 = vmatpush2.bf16.msra.mxu1 %v6744_v42  ;;  %4158 = vmatprep.subr.bf16.mxu0 %v6749_v51  ;;  %v6819_v42 = vld [vmem:[#allocation8 + $0x10] ss:$8 sps:$4 sm:$0xff]  }
 0x31c   :  { %4199 = vmatprep.subr.bf16.mxu1 %v6752_v62  ;;  %v6822_v51 = vld [vmem:[#allocation8 + $0x110] ss:$8 sps:$4 sm:$0xff]   ;;  %v6827_v62 = vld [vmem:[#allocation8 + $0x4] ss:$8 sps:$4 sm:$0xff]  }
 0x31e   :  { %4159 = vmatpush2.bf16.msra.mxu0 %v6747_v44  ;;  %v6830_v44 = vld [vmem:[#allocation8 + $0x104] ss:$8 sps:$4 sm:$0xff]  }
 0x31f   :  { %4200 = vmatpush2.bf16.msra.mxu1 %v6750_v21  ;;  %4160 = vmatprep.subr.bf16.mxu0 %v6755_v46  ;;  %v6825_v21 = vld [vmem:[#allocation8] ss:$8 sps:$4 sm:$0xff]  }
 0x320   :  { %4201 = vmatprep.subr.bf16.mxu1 %v6758_v47  ;;  %v6828_v46 = vld [vmem:[#allocation8 + $0x100] ss:$8 sps:$4 sm:$0xff]   ;;  %v6833_v47 = vld [vmem:[#allocation8 + $0xf4] ss:$8 sps:$4 sm:$0xff]  }
 0x322   :  { %4161 = vmatpush2.bf16.msra.mxu0 %v6753_v23  ;;  %v6836_v23 = vld [vmem:[#allocation8 + $0x1f4] ss:$8 sps:$4 sm:$0xff]  }
 0x323   :  { %4202 = vmatpush2.bf16.msra.mxu1 %v6756_v27  ;;  %4162 = vmatprep.subr.bf16.mxu0 %v6761_v50  ;;  %v6831_v27 = vld [vmem:[#allocation8 + $0xf0] ss:$8 sps:$4 sm:$0xff]  }
 0x324   :  { %4203 = vmatprep.subr.bf16.mxu1 %v6764_v52  ;;  %v6834_v50 = vld [vmem:[#allocation8 + $0x1f0] ss:$8 sps:$4 sm:$0xff]   ;;  %v6839_v52 = vld [vmem:[#allocation8 + $0xe4] ss:$8 sps:$4 sm:$0xff]  }
 0x326   :  { %4163 = vmatpush2.bf16.msra.mxu0 %v6759_v29  ;;  %v6842_v29 = vld [vmem:[#allocation8 + $0x1e4] ss:$8 sps:$4 sm:$0xff]  }
 0x327   :  { %4204 = vmatpush2.bf16.msra.mxu1 %v6762_v53  ;;  %4164 = vmatprep.subr.bf16.mxu0 %v6767_v57  ;;  %v6837_v53 = vld [vmem:[#allocation8 + $0xe0] ss:$8 sps:$4 sm:$0xff]  }
 0x328   :  { %4205 = vmatprep.subr.bf16.mxu1 %v6770_v54  ;;  %v6840_v57 = vld [vmem:[#allocation8 + $0x1e0] ss:$8 sps:$4 sm:$0xff]   ;;  %v6845_v54 = vld [vmem:[#allocation8 + $0xd4] ss:$8 sps:$4 sm:$0xff]  }
 0x32a   :  { %4165 = vmatpush2.bf16.msra.mxu0 %v6765_v55  ;;  %v6848_v55 = vld [vmem:[#allocation8 + $0x1d4] ss:$8 sps:$4 sm:$0xff]  }
 0x32b   :  { %4206 = vmatpush2.bf16.msra.mxu1 %v6768_v36  ;;  %4166 = vmatprep.subr.bf16.mxu0 %v6773_v3  ;;  %v6843_v36 = vld [vmem:[#allocation8 + $0xd0] ss:$8 sps:$4 sm:$0xff]  }
 0x32c   :  { %4207 = vmatprep.subr.bf16.mxu1 %v6776_v56  ;;  %v6846_v3 = vld [vmem:[#allocation8 + $0x1d0] ss:$8 sps:$4 sm:$0xff]   ;;  %v6851_v56 = vld [vmem:[#allocation8 + $0xc4] ss:$8 sps:$4 sm:$0xff]  }
 0x32e   :  { %4167 = vmatpush2.bf16.msra.mxu0 %v6771_v60  ;;  %v6854_v60 = vld [vmem:[#allocation8 + $0x1c4] ss:$8 sps:$4 sm:$0xff]  }
 0x32f   :  { %4208 = vmatpush2.bf16.msra.mxu1 %v6774_v61  ;;  %4168 = vmatprep.subr.bf16.mxu0 %v6779_v24  ;;  %v6849_v61 = vld [vmem:[#allocation8 + $0xc0] ss:$8 sps:$4 sm:$0xff]  }
 0x330   :  { %4209 = vmatprep.subr.bf16.mxu1 %v6782_v2  ;;  %v6852_v24 = vld [vmem:[#allocation8 + $0x1c0] ss:$8 sps:$4 sm:$0xff]   ;;  %v6857_v2 = vld [vmem:[#allocation8 + $0xb4] ss:$8 sps:$4 sm:$0xff]  }
 0x332   :  { %4169 = vmatpush2.bf16.msra.mxu0 %v6777_v4  ;;  %v6860_v4 = vld [vmem:[#allocation8 + $0x1b4] ss:$8 sps:$4 sm:$0xff]  }
 0x333   :  { %4210 = vmatpush2.bf16.msra.mxu1 %v6780_v25  ;;  %v6855_v25 = vld [vmem:[#allocation8 + $0xb0] ss:$8 sps:$4 sm:$0xff]  }
 0x334   :  { %4695 = vmatprep.subr.bf16.mxu1 %v6788_v19 }
 0x335   :  { %v2723_v7 = vpop.f32.mrf.mxu0  ;;  %4171 = vmatmul.mubr.bf16.vlgmr.msra.gmra.mxu0 %v3751_v43 }
 0x336   :  { %v7523_v12 = vadd.f32 %v2723_v7, %v7509_v17  ;;  %v2764_v45 = vpop.f32.mrf.mxu1  ;;  %4212 = vmatmul.mubr.bf16.vlgmr.msra.gmra.mxu1 %v3751_v43  ;;  %v6785_v17 = vld [vmem:[#allocation8 + $0x74] ss:$8 sps:$4 sm:$0xff]   ;;  %v6858_v43 = vld [vmem:[#allocation8 + $0x1b0] ss:$8 sps:$4 sm:$0xff]  }
 0x337   :  { %v7526_v8 = vadd.f32 %v2764_v45, %v7512_v0  ;;  %v2725_v9 = vpop.f32.mrf.mxu0  ;;  %4654 = vmatprep.subr.bf16.mxu0 %v6785_v17  ;;  %v6794_v0 = vld [vmem:[#allocation8 + $0x164] ss:$8 sps:$4 sm:$0xff]   ;;  %4696 = vmatpush1.bf16.msra.mxu1 %v6786_v18 }
 0x338   :  { %v7529_v10 = vadd.f32 %v2725_v9, %v7515_v5  ;;  %v2766_v11 = vpop.f32.mrf.mxu1  ;;  %4655 = vmatpush1.bf16.msra.mxu0 %v6783_v15  ;;  %v6792_v5 = vld [vmem:[#allocation8 + $0x160] ss:$8 sps:$4 sm:$0xff]   ;;  %4697 = vmatprep.subr.bf16.mxu1 %v6794_v0  ;;  %v6863_v0 = vld [vmem:[#allocation8 + $0xa4] ss:$8 sps:$4 sm:$0xff]  }
 0x339   :  { %v7532_v48 = vadd.f32 %v2766_v11, %v7518_v6  ;;  %v2727_v13 = vpop.f32.mrf.mxu0  ;;  %4656 = vmatprep.subr.bf16.mxu0 %v6791_v20  ;;  %v6800_v6 = vld [vmem:[#allocation8 + $0x154] ss:$8 sps:$4 sm:$0xff]   ;;  %v6861_v20 = vld [vmem:[#allocation8 + $0xa0] ss:$8 sps:$4 sm:$0xff]  }
 0x33a   :  { %v2768_v34 = vpop.f32.mrf.mxu1 }
 0x33b   :  { %v2728_v14 = vpop.f32.mrf.mxu0  ;;  %4698 = vmatpush1.bf16.msra.mxu1 %v6792_v5  ;;  %v6866_v5 = vld [vmem:[#allocation8 + $0x1a4] ss:$8 sps:$4 sm:$0xff]  }
 0x33c   :  { %v2769_v49 = vpop.f32.mrf.mxu1  ;;  %4657 = vmatpush1.bf16.msra.mxu0 %v6789_v22  ;;  %4699 = vmatprep.subr.bf16.mxu1 %v6800_v6  ;;  %v6864_v22 = vld [vmem:[#allocation8 + $0x1a0] ss:$8 sps:$4 sm:$0xff]   ;;  %v6875_v6 = vld [vmem:[#allocation8 + $0x84] ss:$8 sps:$4 sm:$0xff]  }
 0x33d   :  { %4658 = vmatprep.subr.bf16.mxu0 %v6797_v26  ;;  %v6869_v26 = vld [vmem:[#allocation8 + $0x94] ss:$8 sps:$4 sm:$0xff]  }
 0x33f   :  { %4700 = vmatpush1.bf16.msra.mxu1 %v6798_v30  ;;  %v6876_v30 = vld [vmem:[#allocation8 + $0x180] ss:$8 sps:$4 sm:$0xff]  }
 0x340   :  { %4659 = vmatpush1.bf16.msra.mxu0 %v6795_v16  ;;  %4701 = vmatprep.subr.bf16.mxu1 %v6806_v33  ;;  %v6873_v16 = vld [vmem:[#allocation8 + $0x80] ss:$8 sps:$4 sm:$0xff]  }
 0x341   :  { %4660 = vmatprep.subr.bf16.mxu0 %v6803_v32 }
 0x343   :  { %4702 = vmatpush1.bf16.msra.mxu1 %v6804_v58 }
 0x344   :  { %4661 = vmatpush1.bf16.msra.mxu0 %v6801_v35  ;;  %4703 = vmatprep.subr.bf16.mxu1 %v6812_v37 }
 0x345   :  { %4662 = vmatprep.subr.bf16.mxu0 %v6809_v59 }
 0x347   :  { %4704 = vmatpush1.bf16.msra.mxu1 %v6810_v28 }
 0x348   :  { %4663 = vmatpush1.bf16.msra.mxu0 %v6807_v38  ;;  %4705 = vmatprep.subr.bf16.mxu1 %v6818_v39 }
 0x349   :  { %4664 = vmatprep.subr.bf16.mxu0 %v6815_v31 }
 0x34b   :  { %4706 = vmatpush1.bf16.msra.mxu1 %v6816_v41 }
 0x34c   :  { %4665 = vmatpush1.bf16.msra.mxu0 %v6813_v40  ;;  %4707 = vmatprep.subr.bf16.mxu1 %v6824_v63  ;;  %v4226_v40 = vlaneseq  ;;  %v4224_v63 = vld [vmem:[#allocation7] sm:$0xf] }
 0x34d   :  { %4666 = vmatprep.subr.bf16.mxu0 %v6821_v1 }
 0x34e   :  { %v4227_v41 = vshrl.u32 %v4226_v40, 7  ;;  %v6886_v40 = vld [vmem:[#allocation11 + $0x20] sm:$0xff]  }
 0x34f   :  { %4708 = vmatpush1.bf16.msra.mxu1 %v6822_v51 }
 0x350   :  { %4667 = vmatpush1.bf16.msra.mxu0 %v6819_v42  ;;  %4709 = vmatprep.subr.bf16.mxu1 %v6830_v44  ;;  %v4228_v1 = vsub.s32 0, %v4227_v41  ;;  %v4236_v42 = vsub.s32 2, %v4227_v41  ;;  %v4232_v51 = vsub.s32 1, %v4227_v41 }
 0x351   :  { %4668 = vmatprep.subr.bf16.mxu0 %v6827_v62  ;;  %v4240_v62 = vsub.s32 3, %v4227_v41  ;;  %v6887_v41 = vld [vmem:[#allocation11 + $0x58] sm:$0xff]  }
 0x352   :  { %v4229_v44 = vrot.slane %v4224_v63, %v4228_v1 }
 0x353   :  { %4710 = vmatpush1.bf16.msra.mxu1 %v6828_v46  ;;  %v4237_v46 = vrot.slane %v4224_v63, %v4236_v42  ;;  %v6890_v42 = vld [vmem:[#allocation11 + $0x10] sm:$0xff]  }
 0x354   :  { %4669 = vmatpush1.bf16.msra.mxu0 %v6825_v21  ;;  %4711 = vmatprep.subr.bf16.mxu1 %v6836_v23 }
 0x355   :  { %4670 = vmatprep.subr.bf16.mxu0 %v6833_v47 }
 0x357   :  { %4712 = vmatpush2.bf16.msra.mxu1 %v6834_v50  ;;  %v4233_v50 = vrot.slane %v4224_v63, %v4232_v51 }
 0x358   :  { %4671 = vmatpush2.bf16.msra.mxu0 %v6831_v27  ;;  %4713 = vmatprep.subr.bf16.mxu1 %v6842_v29 }
 0x359   :  { %4672 = vmatprep.subr.bf16.mxu0 %v6839_v52 }
 0x35b   :  { %4714 = vmatpush2.bf16.msra.mxu1 %v6840_v57  ;;  %v4241_v57 = vrot.slane %v4224_v63, %v4240_v62  ;;  %v6889_v63 = vld [vmem:[#allocation11 + $0x50] sm:$0xff]   ;;  %v6892_v62 = vld [vmem:[#allocation11 + $0x8] sm:$0xff]  }
 0x35c   :  { %4673 = vmatpush2.bf16.msra.mxu0 %v6837_v53  ;;  %4715 = vmatprep.subr.bf16.mxu1 %v6848_v55 }
 0x35d   :  { %4674 = vmatprep.subr.bf16.mxu0 %v6845_v54 }
 0x35f   :  { %4716 = vmatpush2.bf16.msra.mxu1 %v6846_v3 }
 0x360   :  { %4675 = vmatpush2.bf16.msra.mxu0 %v6843_v36  ;;  %4717 = vmatprep.subr.bf16.mxu1 %v6854_v60 }
 0x361   :  { %4676 = vmatprep.subr.bf16.mxu0 %v6851_v56 }
 0x363   :  { %4718 = vmatpush2.bf16.msra.mxu1 %v6852_v24 }
 0x364   :  { %4677 = vmatpush2.bf16.msra.mxu0 %v6849_v61  ;;  %4719 = vmatprep.subr.bf16.mxu1 %v6860_v4 }
 0x365   :  { %4678 = vmatprep.subr.bf16.mxu0 %v6857_v2 }
 0x367   :  { %4720 = vmatpush2.bf16.msra.mxu1 %v6858_v43 }
 0x368   :  { %4679 = vmatpush2.bf16.msra.mxu0 %v6855_v25  ;;  %4721 = vmatprep.subr.bf16.mxu1 %v6866_v5 }
 0x369   :  { %4680 = vmatprep.subr.bf16.mxu0 %v6863_v0  ;;  %v4322_v0 = vld [vmem:[#allocation10] sm:$0x3] }
 0x36a   :  { %v4331_v5 = vrot.slane %v4322_v0, %v4232_v51  ;;  %v6891_v51 = vld [vmem:[#allocation11 + $0x48] sm:$0xff]  }
 0x36b   :  { %4722 = vmatpush2.bf16.msra.mxu1 %v6864_v22  ;;  %v4327_v22 = vrot.slane %v4322_v0, %v4228_v1  ;;  %v6888_v1 = vld [vmem:[#allocation11 + $0x18] sm:$0xff]  }
 0x36c   :  { %4681 = vmatpush2.bf16.msra.mxu0 %v6861_v20  ;;  %v6884_v20 = vld [vmem:[#allocation11 + $0x28] sm:$0xff]  }
 0x36d   :  { %4682 = vmatprep.subr.bf16.mxu0 %v6869_v26 }
 0x375   :  { %v3206_v7 = vpop.f32.mrf.mxu0 }
 0x376   :  { %v3254_v45 = vadd.f32 %v3206_v7, %v7523_v12  ;;  %v3247_v9 = vpop.f32.mrf.mxu1  ;;  %v6867_v12 = vld [vmem:[#allocation8 + $0x90] ss:$8 sps:$4 sm:$0xff]  }
 0x377   :  { %v3256_v11 = vadd.f32 %v3247_v9, %v7526_v8  ;;  %v3208_v13 = vpop.f32.mrf.mxu0  ;;  %v6872_v8 = vld [vmem:[#allocation8 + $0x194] ss:$8 sps:$4 sm:$0xff]   ;;  %4683 = vmatpush2.bf16.msra.mxu0 %v6867_v12 }
 0x378   :  { %v3255_v34 = vadd.f32 %v3208_v13, %v7529_v10  ;;  %v3249_v14 = vpop.f32.mrf.mxu1  ;;  %v6870_v10 = vld [vmem:[#allocation8 + $0x190] ss:$8 sps:$4 sm:$0xff]   ;;  %4723 = vmatprep.subr.bf16.mxu1 %v6872_v8  ;;  %4684 = vmatprep.subr.bf16.mxu0 %v6875_v6 }
 0x379   :  { %v3257_v49 = vadd.f32 %v3249_v14, %v7532_v48  ;;  %v3210_v15 = vpop.f32.mrf.mxu0  ;;  %v6878_v48 = vld [vmem:[#allocation8 + $0x184] ss:$8 sps:$4 sm:$0xff]   ;;  %4724 = vmatpush2.bf16.msra.mxu1 %v6870_v10 }
 0x37a   :  { %v3251_v17 = vpop.f32.mrf.mxu1  ;;  %4725 = vmatprep.subr.bf16.mxu1 %v6878_v48  ;;  %v6880_v15 = vld [vmem:[#allocation11 + $0x38] sm:$0xff]  }
 0x37b   :  { %v3211_v18 = vpop.f32.mrf.mxu0  ;;  %4685 = vmatpush2.bf16.msra.mxu0 %v6873_v16  ;;  %v6881_v17 = vld [vmem:[#allocation11 + $0x70] sm:$0xff]  }
 0x37c   :  { %v3252_v19 = vpop.f32.mrf.mxu1  ;;  %v6882_v18 = vld [vmem:[#allocation11 + $0x30] sm:$0xff]  }
 0x37d   :  { %4726 = vmatpush2.bf16.msra.mxu1 %v6876_v30  ;;  %v6883_v19 = vld [vmem:[#allocation11 + $0x68] sm:$0xff]  }
 0x3b5   :  { %v3689_v32 = vpop.f32.mrf.mxu0 }
 0x3b6   :  { %v3737_v33 = vadd.f32 %v3689_v32, %v3254_v45  ;;  %v3730_v35 = vpop.f32.mrf.mxu1 }
 0x3b7   :  { %v3739_v58 = vadd.f32 %v3730_v35, %v3256_v11  ;;  %v3691_v59 = vpop.f32.mrf.mxu0 }
 0x3b8   :  { %v3732_v37 = vpop.f32.mrf.mxu1  ;;  %v3738_v47 = vadd.f32 %v3691_v59, %v3255_v34 }
 0x3b9   :  { %v3693_v38 = vpop.f32.mrf.mxu0  ;;  %v3740_v52 = vadd.f32 %v3732_v37, %v3257_v49  ;;  %v6879_v49 = vld [vmem:[#allocation11 + $0x78] sm:$0xff]  }
 0x3ba   :  { %v3734_v28 = vpop.f32.mrf.mxu1  ;;  %5898 = vmatprep.subr.bf16.mxu0 %v6879_v49  ;;  %v6909_v49 = vld [vmem:[#allocation17 + $0x40] sm:$0xff]  }
 0x3bb   :  { %v3694_v31 = vpop.f32.mrf.mxu0 }
 0x3bc   :  { %v3735_v39 = vpop.f32.mrf.mxu1 }
 0x3bd   :  { %v6885_v39 = vld [vmem:[#allocation11 + $0x60] sm:$0xff]  }
 0x3f5   :  { %v4172_v21 = vpop.f32.mrf.mxu0 }
 0x3f6   :  { %v4220_v23 = vadd.f32 %v4172_v21, %v3737_v33  ;;  %v4213_v27 = vpop.f32.mrf.mxu1  ;;  %v6894_v21 = vld [vmem:[#allocation11] sm:$0xff]  }
 0x3f7   :  { %v4222_v29 = vadd.f32 %v4213_v27, %v3739_v58  ;;  %v4174_v53 = vpop.f32.mrf.mxu0  ;;  %v6912_v27 = vld [vmem:[#allocation14 + $0x30] sm:$0xff]  }
 0x3f8   :  { %v4246_v54 = vadd.f32 %v4229_v44, %v4220_v23  ;;  %v4221_v55 = vadd.f32 %v4174_v53, %v3738_v47  ;;  %v4215_v36 = vpop.f32.mrf.mxu1  ;;  %v6893_v44 = vld [vmem:[#allocation11 + $0x40] sm:$0xff]   ;;  %v7215_v23 = vmov 0.0  }
 0x3f9   :  { %v4248_v3 = vadd.f32 %v4237_v46, %v4222_v29  ;;  %v4223_v56 = vadd.f32 %v4215_v36, %v3740_v52  ;;  %v4176_v60 = vpop.f32.mrf.mxu0  ;;  %v6895_v46 = vld [vmem:[#allocation17 + $0x78] sm:$0xff]   ;;  %5951 = vmatprep.subr.bf16.mxu1 %v7215_v23 }
 0x3fa   :  { %v4247_v61 = vadd.f32 %v4233_v50, %v4221_v55  ;;  %v4217_v24 = vpop.f32.mrf.mxu1  ;;  %v4250_v2 = vmax.f32 %v4246_v54, 0.0  ;;  %v6911_v47 = vld [vmem:[#allocation14 + $0x38] sm:$0xff]   ;;  %v6913_v50 = vld [vmem:[#allocation14 + $0x28] sm:$0xff]   ;;  %v6914_v52 = vld [vmem:[#allocation14 + $0x20] sm:$0xff]  }
 0x3fb   :  { %v4249_v4 = vadd.f32 %v4241_v57, %v4223_v56  ;;  %v4177_v25 = vpop.f32.mrf.mxu0  ;;  %v4252_v43 = vmax.f32 %v4248_v3, 0.0  ;;  %v6915_v29 = vld [vmem:[#allocation14 + $0x18] sm:$0xff]  }
 0x3fc   :  { %v4251_v7 = vmax.f32 %v4247_v61, 0.0  ;;  %v4218_v45 = vpop.f32.mrf.mxu1  ;;  %v4254_v13 = vpack.c.bf16 %v4250_v2, %v4250_v2  ;;  %v6896_v60 = vld [vmem:[#allocation17 + $0x38] sm:$0xff]   ;;  %v6897_v61 = vld [vmem:[#allocation17 + $0x70] sm:$0xff]   ;;  %v6900_v25 = vld [vmem:[#allocation17 + $0x28] sm:$0xff]  }
 0x3fd   :  { %v4253_v9 = vmax.f32 %v4249_v4, 0.0  ;;  %v4256_v14 = vpack.c.bf16 %v4252_v43, %v4252_v43  ;;  %v6898_v2 = vld [vmem:[#allocation17 + $0x30] sm:$0xff]   ;;  %v6899_v4 = vld [vmem:[#allocation17 + $0x68] sm:$0xff]   ;;  %v6901_v43 = vld [vmem:[#allocation17 + $0x60] sm:$0xff]  }
 0x3fe   :  { %v4255_v11 = vpack.c.bf16 %v4251_v7, %v4251_v7  ;;  %v6902_v7 = vld [vmem:[#allocation17 + $0x20] sm:$0xff]   ;;  %v6903_v45 = vld [vmem:[#allocation17 + $0x58] sm:$0xff]  }
 0x3ff   :  { %v4257_v34 = vpack.c.bf16 %v4253_v9, %v4253_v9  ;;  %v6904_v9 = vld [vmem:[#allocation17 + $0x18] sm:$0xff]  }
 0x400   :  { %4686 = vmatprep.mubr.bf16.mxu0 %v4255_v11  ;;  %v6905_v11 = vld [vmem:[#allocation17 + $0x50] sm:$0xff]  }
 0x401   :  { %4727 = vmatprep.mubr.bf16.mxu1 %v4257_v34  ;;  %4687 = vmatmul.mubr.bf16.vlgmr.msra.gmra.mxu0 %v4254_v13  ;;  %v6906_v13 = vld [vmem:[#allocation17 + $0x10] sm:$0xff]   ;;  %v6907_v34 = vld [vmem:[#allocation17 + $0x48] sm:$0xff]  }
 0x402   :  { %4728 = vmatmul.mubr.bf16.vlgmr.msra.gmra.mxu1 %v4256_v14  ;;  %5899 = vmatpush3.bf16.msra.mxu0 %v6880_v15  ;;  %v6908_v14 = vld [vmem:[#allocation17 + $0x8] sm:$0xff]   ;;  %v6910_v15 = vld [vmem:[#allocation17] sm:$0xff]  }
 0x403   :  { %5900 = vmatprep.subr.bf16.mxu0 %v6881_v17  ;;  %5952 = vmatpush3.bf16.msra.mxu1 %v6911_v47 }
 0x404   :  { %5953 = vmatprep.subr.bf16.mxu1 %v7215_v23  ;;  %5967 = vmatprep.mubr.msk.bf16.mxu1 %vm7216_vm4, %v7215_v23 }
 0x406   :  { %5901 = vmatpush3.bf16.msra.mxu0 %v6882_v18  ;;  %v6916_v18 = vld [vmem:[#allocation14 + $0x10] sm:$0xff]  }
 0x407   :  { %5902 = vmatprep.subr.bf16.mxu0 %v6883_v19  ;;  %5954 = vmatpush3.bf16.msra.mxu1 %v6912_v27  ;;  %v6917_v19 = vld [vmem:[#allocation14 + $0x8] sm:$0xff]  }
 0x408   :  { %5955 = vmatprep.subr.bf16.mxu1 %v7215_v23 }
 0x40a   :  { %5903 = vmatpush3.bf16.msra.mxu0 %v6884_v20  ;;  %v6918_v20 = vld [vmem:[#allocation14] sm:$0xff]  }
 0x40b   :  { %5904 = vmatprep.subr.bf16.mxu0 %v6885_v39  ;;  %5956 = vmatpush3.bf16.msra.mxu1 %v6913_v50 }
 0x40c   :  { %5957 = vmatprep.subr.bf16.mxu1 %v7215_v23 }
 0x40e   :  { %5905 = vmatpush3.bf16.msra.mxu0 %v6886_v40 }
 0x40f   :  { %5906 = vmatprep.subr.bf16.mxu0 %v6887_v41  ;;  %5958 = vmatpush3.bf16.msra.mxu1 %v6914_v52 }
 0x410   :  { %5959 = vmatprep.subr.bf16.mxu1 %v7215_v23 }
 0x412   :  { %5907 = vmatpush3.bf16.msra.mxu0 %v6888_v1 }
 0x413   :  { %5908 = vmatprep.subr.bf16.mxu0 %v6889_v63  ;;  %5960 = vmatpush3.bf16.msra.mxu1 %v6915_v29 }
 0x414   :  { %5961 = vmatprep.subr.bf16.mxu1 %v7215_v23 }
 0x416   :  { %5909 = vmatpush3.bf16.msra.mxu0 %v6890_v42 }
 0x417   :  { %5910 = vmatprep.subr.bf16.mxu0 %v6891_v51  ;;  %5962 = vmatpush3.bf16.msra.mxu1 %v6916_v18 }
 0x418   :  { %5963 = vmatprep.subr.bf16.mxu1 %v7215_v23 }
 0x41a   :  { %5911 = vmatpush3.bf16.msra.mxu0 %v6892_v62 }
 0x41b   :  { %5912 = vmatprep.subr.bf16.mxu0 %v6893_v44  ;;  %5964 = vmatpush3.bf16.msra.mxu1 %v6917_v19 }
 0x41c   :  { %5965 = vmatprep.subr.bf16.mxu1 %v7215_v23 }
 0x41e   :  { %5913 = vmatpush3.bf16.msra.mxu0 %v6894_v21 }
 0x41f   :  { %5929 = vmatprep.subr.bf16.mxu0 %v6895_v46  ;;  %5966 = vmatpush3.bf16.msra.mxu1 %v6918_v20 }
 0x4c1   :  { %v4688_v26 = vpop.f32.mrf.mxu0 }
 0x4c2   :  { %v4689_v12 = vadd.f32 %v4688_v26, %v4327_v22  ;;  %v4729_v8 = vpop.f32.mrf.mxu1  ;;  %v5855_v22 = vld [vmem:[#allocation13] ss:$0 sm:$0xff] }
 0x4c3   :  { %v4690_v10 = vpop.f32.mrf.mxu0 }
 0x4c4   :  { %v7538_v6 = vadd.f32 %v4729_v8, %v4689_v12  ;;  %v4691_v48 = vadd.f32 %v4690_v10, %v4331_v5  ;;  %v4731_v16 = vpop.f32.mrf.mxu1 }
 0x4c5   :  { %v4692_v30 = vpop.f32.mrf.mxu0 }
 0x4c6   :  { %v7540_v32 = vadd.f32 %v4731_v16, %v4691_v48  ;;  %v4733_v33 = vpop.f32.mrf.mxu1  ;;  %v4736_v35 = vmul.f32 %v7538_v6, %v7538_v6  ;;  %v5040_v17 = vpack.c.bf16 %v7538_v6, %v7538_v6  ;;  %v5881_v30 = vld [vmem:[#allocation19] ss:$0 sm:$0xff] }
 0x4c7   :  { %v4693_v58 = vpop.f32.mrf.mxu0 }
 0x4c8   :  { %v4734_v59 = vpop.f32.mrf.mxu1  ;;  %v4737_v37 = vmul.f32 %v7540_v32, %v7540_v32  ;;  %v4739_v38 = vsel %vm4738_vm3, %v4736_v35, 0.0  ;;  %v5041_v24 = vpack.c.bf16 %v7540_v32, %v7540_v32 }
 0x4ca   :  { %v4740_v28 = vsel %vm4738_vm3, %v4737_v37, 0.0 }
 0x4cb   :  { %v4741_v31 = vadd.f32 %v4740_v28, %v4739_v38 }
 0x4cd   :  { %4742 = vadd.xlane.f32.xlu0 %v4741_v31 }
 0x556   :  { %v4743_v53 = vpop.xlane.xlu0 %4742 }
 0x557   :  { %v4744_v57 = vmax.f32 %v4743_v53, 1e-24 }
 0x559   :  { %6919 = vrsqrt.f32 %v4744_v57 }
 0x566   :  { %v6920_v54 = vpop.eup %6919 }
 0x567   :  { %v4747_v55 = vmul.f32 %v6920_v54, %v7540_v32  ;;  %v4746_v36 = vmul.f32 %v6920_v54, %v7538_v6 }
 0x569   :  { %v4749_v3 = vpack.c.bf16 %v4747_v55, %v4747_v55  ;;  %v4748_v56 = vpack.c.bf16 %v4746_v36, %v4746_v36 }
 0x56b   :  { %4917 = vmatprep.mubr.bf16.mxu0 %v4749_v3 }
 0x56c   :  { %4918 = vmatmul.mubr.bf16.vlgmr.msra.gmra.mxu0 %v4748_v56 }
 0x56d   :  { %5930 = vmatpush3.bf16.msra.mxu0 %v6896_v60  ;;  %5209 = vmatprep.mubr.bf16.mxu0 %v5041_v24 }
 0x56e   :  { %5931 = vmatprep.subr.bf16.mxu0 %v6897_v61 }
 0x571   :  { %5932 = vmatpush3.bf16.msra.mxu0 %v6898_v2 }
 0x572   :  { %5933 = vmatprep.subr.bf16.mxu0 %v6899_v4 }
 0x575   :  { %5934 = vmatpush3.bf16.msra.mxu0 %v6900_v25 }
 0x576   :  { %5935 = vmatprep.subr.bf16.mxu0 %v6901_v43 }
 0x579   :  { %5936 = vmatpush3.bf16.msra.mxu0 %v6902_v7 }
 0x57a   :  { %5937 = vmatprep.subr.bf16.mxu0 %v6903_v45 }
 0x57d   :  { %5938 = vmatpush3.bf16.msra.mxu0 %v6904_v9 }
 0x57e   :  { %5939 = vmatprep.subr.bf16.mxu0 %v6905_v11 }
 0x581   :  { %5940 = vmatpush3.bf16.msra.mxu0 %v6906_v13 }
 0x582   :  { %5941 = vmatprep.subr.bf16.mxu0 %v6907_v34 }
 0x585   :  { %5942 = vmatpush3.bf16.msra.mxu0 %v6908_v14 }
 0x586   :  { %5943 = vmatprep.subr.bf16.mxu0 %v6909_v49 }
 0x589   :  { %5944 = vmatpush3.bf16.msra.mxu0 %v6910_v15 }
 0x58c   :  { %5210 = vmatmul.mubr.bf16.vlgmr.msra.gmra.mxu0 %v5040_v17 }
 0x62c   :  { %v5914_v0 = vpop.f32.mrf.mxu0 }
 0x62e   :  { %v5915_v5 = vpop.f32.mrf.mxu0 }
 0x62f   :  { %v5916_v26 = vadd.f32 %v5915_v5, %v5914_v0 }
 0x630   :  { %v5917_v12 = vpop.f32.mrf.mxu0 }
 0x631   :  { %v4920_v8 = vadd.f32 %v5916_v26, %v5855_v22 }
 0x632   :  { %v5918_v10 = vpop.f32.mrf.mxu0 }
 0x633   :  { %v4925_v6 = vmax.f32 %v4920_v8, 0.0 }
 0x635   :  { %v4926_v48 = vpack.c.bf16 %v4925_v6, %v4925_v6 }
 0x637   :  { %5968 = vmatmul.mubr.bf16.vlgmr.msra.gmra.mxu1 %v4926_v48 }
 0x64c   :  { %v5945_v16 = vpop.f32.mrf.mxu0 }
 0x64e   :  { %v5946_v32 = vpop.f32.mrf.mxu0 }
 0x64f   :  { %v5947_v33 = vadd.f32 %v5946_v32, %v5945_v16 }
 0x650   :  { %v5948_v35 = vpop.f32.mrf.mxu0 }
 0x651   :  { %v5212_v58 = vadd.f32 %v5947_v33, %v5881_v30 }
 0x652   :  { %v5949_v59 = vpop.f32.mrf.mxu0 }
 0x653   :  { %5217 = vst [vmem:[#allocation21] sm:$0x3] %v5212_v58 }
 0x654   :  { %7152 = shalt.err (!%p7149_p3)
}
 0x655   :  { %5237 = dma.vmem_to_hbm [thread:$0]  %s5235_s9, 32, %s7580_s13, [#allocation22]   ;;  %v5872_v37 = vld [vmem:[#allocation16] ss:$0 sm:$0xff] }
 0x656   :  { %s7218_s24 = smov [#allocation20]  }
 0x657   :  { %s5224_s25 = sshll.u32 %s7218_s24, 4  ;;  %s5225_s25 = int_to_ptr.vmem [resolvable:$true] %s5224_s25 }
 0x658   :  { %s7161_s27 = scalar_lea.vmem %s5225_s25, 32  ;;  %p7166_p5 = scmp.lt.s32.totalorder %s5225_s25, %s5225_s25 }
 0x659   :  { %p7162_p4 = scmp.ne.s32.totalorder %s5225_s25, %s7161_s27  ;;  %p7167_p6 = scmp.lt.s32.totalorder %s7161_s27, %s7161_s27 }
 0x65b   :  { %p7168_p7 = por %p7167_p6, %p7166_p5 }
 0x65d   :  { %p7169_p8 = pnand %p7168_p7, %p7162_p4 }
 0x6f7   :  { %v5032_v38 = vpop.f32.mrf.mxu1 }
 0x6f8   :  { %v5033_v28 = vadd.f32 %v5872_v37, %v5032_v38 }
 0x6f9   :  { %v5969_v31 = vpop.f32.mrf.mxu1 }
 0x6fa   :  { %v5038_v39 = vmax.f32 %v5033_v28, 0.0 }
 0x6fb   :  { %v5035_v40 = vpop.f32.mrf.mxu1 }
 0x6fc   :  { %5039 = vst [vmem:[#allocation20] sm:$0x3] %v5038_v39 }
 0x6fd   :  { %v5970_v41 = vpop.f32.mrf.mxu1 }
 0x6fe   :  { %7172 = shalt.err (!%p7169_p8)
}
 0x6ff   :  { %5227 = dma.vmem_to_hbm [thread:$0]  %s5225_s25, 32, %s7579_s12, [#allocation4]  }
 0x700   :  { %7193 = dma.done.wait [#allocation4], 32  }
 0x701   :  { %7194 = vsyncadd [#allocation4], 4294967264 }
 0x702   :  { %7195 = dma.done.wait [#allocation22], 32  }
 0x703   :  { %7196 = vsyncadd [#allocation22], 4294967264 }
 0x704   :  { %5244 = vsyncpa [#allocation3], 1 }
 0x705   :  { %5245 = vsyncpa [#allocation6], 1 }
 0x706   :  { %5246 = vsyncpa [#allocation9], 1 }
 0x707   :  { %5247 = vsyncpa [#allocation12], 1 }
 0x708   :  { %5248 = vsyncpa [#allocation15], 1 }
 0x709   :  { %5249 = vsyncpa [#allocation18], 1 }
 0x70a   :  { %5250 = vsyncpa [#allocation4], 1 }
 0x70b   :  { %5251 = vsyncpa [#allocation22], 1 }

</bundles_post_ra>
